<compile_context>
chip_gen: v6e
topology: v6e:2x2x1
jax: 0.10.0
libtpu: 0.0.40
codegen_flags: <defaults>
</compile_context>

<pallas_src>
import math
from functools import partial

import jax
import jax.numpy as jnp
from jax.experimental import pallas as pl
from jax.experimental.pallas import tpu as pltpu

NEG_SLOPE = 0.2
ROW_TILE = 512            # point-row tile for edgeconv / conv6 / head
KNN_TQ = 128              # query-row tile for knn
KNN_CHUNK = 512           # key-chunk width (lanes) per knn grid step
VMEM_LIMIT = 32 * 1024 * 1024


def _leaky(y):
    # LeakyReLU(0.2) == max(y, 0.2*y) for slope < 1
    return jnp.maximum(y, NEG_SLOPE * y)


def _round_up(a, m):
    return (a + m - 1) // m * m


# ---------------------------------------------------------------------------
# knn: chunked pairwise scores + running top-k merge.
# score = 2<q,key> - ||key||^2 (the -||q||^2 row constant is dropped); the 2x
# and -||key||^2 are folded into the matmul via augmented operands.
# ---------------------------------------------------------------------------
def _make_knn_kernel(k, cn):
    def kernel(q_ref, kT_ref, out_ref, cv_ref, ci_ref):
        c = pl.program_id(2)

        @pl.when(c == 0)
        def _():
            cv_ref[...] = jnp.full(cv_ref.shape, -jnp.inf, jnp.float32)
            ci_ref[...] = jnp.zeros(ci_ref.shape, jnp.float32)

        q = q_ref[0]                                   # (tq, C+1) f32  [2*x | 1]
        kc = kT_ref[0]                                 # (C+1, cn) f32  [x^T ; -||x||^2]
        s = jnp.dot(q, kc, preferred_element_type=jnp.float32)          # (tq, cn)
        tq = s.shape[0]

        base = (c * cn).astype(jnp.float32)
        colf = base + jax.lax.broadcasted_iota(jnp.int32, s.shape, 1).astype(jnp.float32)
        kcol = jax.lax.broadcasted_iota(jnp.int32, (tq, k), 1)

        cv = cv_ref[...]                               # running top-k values (sorted desc)
        ci = ci_ref[...]                               # running top-k indices (as f32)
        new_cv = cv
        new_ci = ci
        big = jnp.float32(1e9)
        for p in range(k):                 # merge this chunk into the candidate buffer
            m = jnp.maximum(jnp.max(cv, axis=1, keepdims=True),
                            jnp.max(s, axis=1, keepdims=True))
            sel = jnp.minimum(                          # lowest global index among maxima
                jnp.min(jnp.where(cv >= m, ci, big), axis=1, keepdims=True),
                jnp.min(jnp.where(s >= m, colf, big), axis=1, keepdims=True))
            new_cv = jnp.where(kcol == p, m, new_cv)
            new_ci = jnp.where(kcol == p, sel, new_ci)
            cv = jnp.where(ci == sel, -jnp.inf, cv)     # consume from old candidates
            s = jnp.where(colf == sel, -jnp.inf, s)     # or from the chunk
        cv_ref[...] = new_cv
        ci_ref[...] = new_ci

        @pl.when(c == pl.num_programs(2) - 1)
        def _():
            out_ref[0] = new_ci.astype(jnp.int32)

    return kernel


def knn_idx(x_bnc, k):
    """k nearest neighbors (self included), per batch. Returns (B, N, k) int32."""
    B, N, C = x_bnc.shape
    x = x_bnc.astype(jnp.float32)                      # knn stays in f32 for parity

    tq = min(KNN_TQ, _round_up(N, 8))
    nq = _round_up(N, tq)
    cn = KNN_CHUNK if N >= KNN_CHUNK else _round_up(N, 128)
    nk = _round_up(N, cn)

    q = jnp.concatenate([2.0 * x, jnp.ones((B, N, 1), jnp.float32)], axis=-1)
    if nq != N:
        q = jnp.pad(q, ((0, 0), (0, nq - N), (0, 0)))

    kT = jnp.transpose(x, (0, 2, 1))                   # (B, C, N) channels-major keys
    ksq = jnp.sum(x * x, axis=-1)                      # (B, N)
    if nk != N:                                        # mask padded key columns
        kT = jnp.pad(kT, ((0, 0), (0, 0), (0, nk - N)))
        ksq = jnp.concatenate(
            [ksq, jnp.full((B, nk - N), 1e30, jnp.float32)], axis=1)
    kTa = jnp.concatenate([kT, -ksq[:, None, :]], axis=1)   # (B, C+1, nk)

    out = pl.pallas_call(
        _make_knn_kernel(k, cn),
        grid=(B, nq // tq, nk // cn),
        in_specs=[pl.BlockSpec((1, tq, C + 1), lambda b, i, c: (b, i, 0)),
                  pl.BlockSpec((1, C + 1, cn), lambda b, i, c: (b, 0, c))],
        out_specs=pl.BlockSpec((1, tq, k), lambda b, i, c: (b, i, 0)),
        out_shape=jax.ShapeDtypeStruct((B, nq, k), jnp.int32),
        scratch_shapes=[pltpu.VMEM((tq, k), jnp.float32),
                        pltpu.VMEM((tq, k), jnp.float32)],
        compiler_params=pltpu.CompilerParams(
            dimension_semantics=("parallel", "parallel", "arbitrary"),
            vmem_limit_bytes=VMEM_LIMIT),
    )(q, kTa)
    return out[:, :N]


# ---------------------------------------------------------------------------
# Neighbor gather: produce (k, B*N, C) directly (no big HBM transpose).
# ---------------------------------------------------------------------------
def gather_neighbors(feats_flat, idx):
    """feats_flat: (B*N, C) bf16; idx: (B, N, k) int32 -> (k, B*N, C)."""
    # TODO(synk): the int-index gather stays in plain JAX; a fused DMA gather
    # (PrefetchScalarGridSpec + make_async_copy) is possible.
    B, N, k = idx.shape
    base = (jnp.arange(B, dtype=jnp.int32) * N)[:, None, None]
    flat = jnp.transpose((idx + base).reshape(B * N, k))       # (k, B*N) small int32
    return jnp.take(feats_flat, flat, axis=0)                  # (k, B*N, C)


# ---------------------------------------------------------------------------
# EdgeConv kernel: cat(neighbor - center, center) @ W (+BN+LeakyReLU) x layers,
# then max over the k neighbors.  The concat is never materialized: the first
# layer's weight is split into (diff, center) halves, and the k copies are
# folded into the matmul M dimension (one matmul per layer).  bf16 streaming,
# f32 accumulation.
# ---------------------------------------------------------------------------
def _make_edgeconv_kernel(k, n_layers, c_in, out_dtype):
    def kernel(*refs):
        nbr_ref, ctr_ref = refs[0], refs[1]
        out_ref = refs[-1]
        prm = refs[2:-1]

        nbr = nbr_ref[...]                         # (k, tn, c_in) bf16
        ctr = ctr_ref[...]                         # (tn, c_in) bf16
        tn = ctr.shape[0]

        w1d, w1c = prm[0][...], prm[1][...]        # bf16 halves of first weight
        s1, b1 = prm[2][...], prm[3][...]          # f32 folded BN

        diff = (nbr - ctr[None]).reshape(k * tn, c_in)
        y = jnp.dot(diff, w1d, preferred_element_type=jnp.float32)       # (k*tn, c1)
        yc = jnp.dot(ctr, w1c, preferred_element_type=jnp.float32)       # (tn, c1)
        c1 = y.shape[-1]
        y = _leaky((y.reshape(k, tn, c1) + yc[None]) * s1 + b1).reshape(k * tn, c1)

        pi = 4
        for _ in range(1, n_layers):
            w, s, b = prm[pi][...], prm[pi + 1][...], prm[pi + 2][...]
            pi += 3
            y = _leaky(jnp.dot(y.astype(jnp.bfloat16), w,
                               preferred_element_type=jnp.float32) * s + b)

        c_out = y.shape[-1]
        y = y.reshape(k, tn, c_out)
        acc = y[0]
        for j in range(1, k):                      # max over neighbors
            acc = jnp.maximum(acc, y[j])
        out_ref[...] = acc.astype(out_dtype)

    return kernel


def edgeconv(nbr_kbc, ctr_bc, layers, out_dtype=jnp.float32, tile=ROW_TILE):
    """nbr_kbc: (k, BN, C) bf16 gathered neighbors, ctr_bc: (BN, C) bf16 centers.
    layers: [(W, scale, bias), ...]; W of layer 0 has 2C input rows.
    Returns (BN, C_out) in out_dtype."""
    k, BN, C = nbr_kbc.shape
    c_out = layers[-1][0].shape[1]
    tn = min(tile, _round_up(BN, 8))
    bn_pad = _round_up(BN, tn)
    if bn_pad != BN:                               # pad rows instead of a fallback path
        nbr_kbc = jnp.pad(nbr_kbc, ((0, 0), (0, bn_pad - BN), (0, 0)))
        ctr_bc = jnp.pad(ctr_bc, ((0, bn_pad - BN), (0, 0)))

    w1, s1, b1 = layers[0]
    w1 = w1.astype(jnp.bfloat16)
    w1d, w1c = w1[:C], w1[C:]                      # (neighbor-center | center) halves
    const2 = lambda i: (0, 0)
    args = [nbr_kbc, ctr_bc, w1d, w1c, s1, b1]
    in_specs = [pl.BlockSpec((k, tn, C), lambda i: (0, i, 0)),
                pl.BlockSpec((tn, C), lambda i: (i, 0)),
                pl.BlockSpec(w1d.shape, const2),
                pl.BlockSpec(w1c.shape, const2),
                pl.BlockSpec(s1.shape, const2),
                pl.BlockSpec(b1.shape, const2)]
    for (w, s, b) in layers[1:]:
        wb = w.astype(jnp.bfloat16)
        args += [wb, s, b]
        in_specs += [pl.BlockSpec(wb.shape, const2),
                     pl.BlockSpec(s.shape, const2),
                     pl.BlockSpec(b.shape, const2)]

    out = pl.pallas_call(
        _make_edgeconv_kernel(k, len(layers), C, out_dtype),
        grid=(bn_pad // tn,),
        in_specs=in_specs,
        out_specs=pl.BlockSpec((tn, c_out), lambda i: (i, 0)),
        out_shape=jax.ShapeDtypeStruct((bn_pad, c_out), out_dtype),
        compiler_params=pltpu.CompilerParams(
            dimension_semantics=("parallel",),
            vmem_limit_bytes=VMEM_LIMIT),
    )(*args)
    return out[:BN]


# ---------------------------------------------------------------------------
# conv6 (192 -> emb) + global max over points: single K=192 bf16 matmul per tile,
# running max over N tiles in the resident output block.
# ---------------------------------------------------------------------------
def _conv6_kernel(x_ref, w_ref, s_ref, b_ref, out_ref):
    j = pl.program_id(1)

    @pl.when(j == 0)
    def _():
        out_ref[...] = jnp.full(out_ref.shape, -jnp.inf, jnp.float32)

    y = jnp.dot(x_ref[0], w_ref[...], preferred_element_type=jnp.float32)  # (tn, emb)
    y = _leaky(y * s_ref[...] + b_ref[...])
    out_ref[0] = jnp.maximum(out_ref[0], jnp.max(y, axis=0, keepdims=True))


def conv6_globalmax(xcat, p6, tn):
    """xcat: (B, N_pad, 192) bf16 -> (B, 1, emb) f32 global max of conv6."""
    # TODO(synk): on v7x with very small B, a second parallel axis over emb columns
    # would keep both TensorCores busy; skipped here for simplicity.
    B, n_pad, _ = xcat.shape
    w6, s6, b6 = p6
    w6b = w6.astype(jnp.bfloat16)
    emb = w6.shape[1]
    const = lambda b, j: (0, 0)
    return pl.pallas_call(
        _conv6_kernel,
        grid=(B, n_pad // tn),
        in_specs=[pl.BlockSpec((1, tn, 192), lambda b, j: (b, j, 0)),
                  pl.BlockSpec(w6b.shape, const),
                  pl.BlockSpec(s6.shape, const),
                  pl.BlockSpec(b6.shape, const)],
        out_specs=pl.BlockSpec((1, 1, emb), lambda b, j: (b, 0, 0)),
        out_shape=jax.ShapeDtypeStruct((B, 1, emb), jnp.float32),
        compiler_params=pltpu.CompilerParams(
            dimension_semantics=("parallel", "arbitrary"),
            vmem_limit_bytes=VMEM_LIMIT),
    )(xcat, w6b, s6, b6)


# ---------------------------------------------------------------------------
# Head: conv7 -> conv8 -> (dropout = identity) -> conv9.
# The global branch of conv7 (g @ W7_global) is hoisted outside; the local
# branch is one K=192 bf16 matmul.  conv9 logits stay f32; output padded to
# 16 lanes only (sliced to 13 outside).
# ---------------------------------------------------------------------------
def _head_kernel(yg_ref, x_ref, w7_ref, s7_ref, b7_ref,
                 w8_ref, s8_ref, b8_ref, w9_ref, out_ref):
    y = jnp.dot(x_ref[0], w7_ref[...], preferred_element_type=jnp.float32) + yg_ref[0]
    y = _leaky(y * s7_ref[...] + b7_ref[...])
    y = _leaky(jnp.dot(y.astype(jnp.bfloat16), w8_ref[...],
                       preferred_element_type=jnp.float32) * s8_ref[...] + b8_ref[...])
    # TODO(synk): nn.Dropout(p) is an inference-time identity here.
    out_ref[0] = jnp.dot(y, w9_ref[...], preferred_element_type=jnp.float32)


def head(yg, xcat, p7, p8, w9, tn):
    """yg: (B, 1, 512) hoisted global @ W7_global; xcat: (B, N_pad, 192) bf16."""
    B, n_pad, _ = xcat.shape
    w7, s7, b7 = p7
    w8, s8, b8 = p8
    emb = w7.shape[0] - 192
    w7x = w7[emb:].astype(jnp.bfloat16)                  # (192, 512) local-feature half
    w8b = w8.astype(jnp.bfloat16)
    w9p = jnp.pad(w9, ((0, 0), (0, 16 - w9.shape[1])))   # (256, 16) f32, 13 -> 16 lanes
    const = lambda b, j: (0, 0)
    return pl.pallas_call(
        _head_kernel,
        grid=(B, n_pad // tn),
        in_specs=[pl.BlockSpec((1, 1, 512), lambda b, j: (b, 0, 0)),
                  pl.BlockSpec((1, tn, 192), lambda b, j: (b, j, 0)),
                  pl.BlockSpec(w7x.shape, const),
                  pl.BlockSpec(s7.shape, const), pl.BlockSpec(b7.shape, const),
                  pl.BlockSpec(w8b.shape, const),
                  pl.BlockSpec(s8.shape, const), pl.BlockSpec(b8.shape, const),
                  pl.BlockSpec(w9p.shape, const)],
        out_specs=pl.BlockSpec((1, tn, 16), lambda b, j: (b, j, 0)),
        out_shape=jax.ShapeDtypeStruct((B, n_pad, 16), jnp.float32),
        compiler_params=pltpu.CompilerParams(
            dimension_semantics=("parallel", "parallel"),
            vmem_limit_bytes=VMEM_LIMIT),
    )(yg, xcat, w7x, s7, b7, w8b, s8, b8, w9p)


# ---------------------------------------------------------------------------
# Parameters (deterministic, synthetic) — BatchNorm folded into (scale, bias)
# ---------------------------------------------------------------------------
def _fold_bn(gamma, beta, mean, var, eps=1e-5):
    scale = gamma / jnp.sqrt(var + eps)
    bias = beta - mean * scale
    return scale.reshape(1, -1).astype(jnp.float32), bias.reshape(1, -1).astype(jnp.float32)


def _make_conv_bn(key, c_in, c_out):
    kw, kg, kb, km, kv = jax.random.split(key, 5)
    w = jax.random.normal(kw, (c_in, c_out), jnp.float32) / math.sqrt(c_in)
    gamma = 1.0 + 0.1 * jax.random.normal(kg, (c_out,), jnp.float32)
    beta = 0.1 * jax.random.normal(kb, (c_out,), jnp.float32)
    mean = 0.1 * jax.random.normal(km, (c_out,), jnp.float32)
    var = jnp.abs(jax.random.normal(kv, (c_out,), jnp.float32)) + 0.5
    s, b = _fold_bn(gamma, beta, mean, var)
    return w, s, b


def make_params(key, emb_dims=1024):
    ks = jax.random.split(key, 9)
    return {
        "conv1": _make_conv_bn(ks[0], 18, 64),
        "conv2": _make_conv_bn(ks[1], 64, 64),
        "conv3": _make_conv_bn(ks[2], 128, 64),
        "conv4": _make_conv_bn(ks[3], 64, 64),
        "conv5": _make_conv_bn(ks[4], 128, 64),
        "conv6": _make_conv_bn(ks[5], 192, emb_dims),
        "conv7": _make_conv_bn(ks[6], emb_dims + 192, 512),
        "conv8": _make_conv_bn(ks[7], 512, 256),
        "conv9": jax.random.normal(ks[8], (256, 13), jnp.float32) / math.sqrt(256.0),
    }


# ---------------------------------------------------------------------------
# Full forward pass (mirrors dgcnn_semseg_s3dis_teacher.forward, eval mode)
# ---------------------------------------------------------------------------
def dgcnn_forward(x_bcn, params, k):
    B, _, N = x_bcn.shape
    BN = B * N
    x = jnp.transpose(x_bcn, (0, 2, 1)).astype(jnp.float32)      # (B, N, 9)

    # EdgeConv block 1 (dim9=True: knn on xyz channels 6:9, features = all 9 ch)
    idx = knn_idx(x[:, :, 6:], k)
    x_flat = x.astype(jnp.bfloat16).reshape(BN, 9)
    x1 = edgeconv(gather_neighbors(x_flat, idx), x_flat,
                  [params["conv1"], params["conv2"]]).reshape(B, N, 64)   # f32 (for knn)

    # EdgeConv block 2
    idx = knn_idx(x1, k)
    x1_flat = x1.astype(jnp.bfloat16).reshape(BN, 64)
    x2 = edgeconv(gather_neighbors(x1_flat, idx), x1_flat,
                  [params["conv3"], params["conv4"]]).reshape(B, N, 64)   # f32 (for knn)

    # EdgeConv block 3
    idx = knn_idx(x2, k)
    x2_flat = x2.astype(jnp.bfloat16).reshape(BN, 64)
    x3_flat = edgeconv(gather_neighbors(x2_flat, idx), x2_flat,
                       [params["conv5"]], out_dtype=jnp.bfloat16)         # (BN, 64) bf16

    # Single (B, N, 192) bf16 concat feeds both conv6 and conv7 (K=192 matmuls).
    xcat = jnp.concatenate([x1_flat, x2_flat, x3_flat], axis=-1).reshape(B, N, 192)

    tn = min(ROW_TILE, _round_up(N, 8))
    n_pad = _round_up(N, tn)
    if n_pad != N:   # edge padding keeps the global max over points unchanged
        xcat = jnp.pad(xcat, ((0, 0), (0, n_pad - N), (0, 0)), mode="edge")

    g = conv6_globalmax(xcat, params["conv6"], tn)                # (B, 1, emb) f32
    emb = g.shape[-1]
    yg = jnp.matmul(g, params["conv7"][0][:emb])                  # hoisted global branch
    out = head(yg, xcat, params["conv7"], params["conv8"],
               params["conv9"], tn)                               # (B, n_pad, 16)
    out = out[:, :N, :13]
    return jnp.transpose(out, (0, 2, 1))                          # (B, 13, N)


if __name__ == "__main__":
    B, N, K = 2, 16, 4           # batch, points, knn-k (small test shapes)
    EMB = 1024                   # conv7 in-channels 1216 = emb_dims + 192 => emb_dims = 1024

    key = jax.random.PRNGKey(0)
    kx, kp = jax.random.split(key)
    x = jax.random.normal(kx, (B, 9, N), jnp.float32)   # PyTorch NCW-style input (B, 9, N)
    params = make_params(kp, EMB)

    fwd = jax.jit(partial(dgcnn_forward, k=K))
    out = jax.block_until_ready(fwd(x, params))

    assert out.shape == (B, 13, N), out.shape
    assert bool(jnp.all(jnp.isfinite(out)))
    print("KERNEL_OK")
</pallas_src>

<mosaic_0001>
module attributes {stable_mosaic.version = 11 : i64} {
  func.func @kernel(%arg0: i32, %arg1: i32, %arg2: i32, %arg3: memref<1x16x4xf32, #tpu.memory_space<vmem>>, %arg4: memref<1x4x128xf32, #tpu.memory_space<vmem>>, %arg5: memref<1x16x4xi32, #tpu.memory_space<vmem>>, %arg6: memref<16x4xf32, #tpu.memory_space<vmem>>, %arg7: memref<16x4xf32, #tpu.memory_space<vmem>>) attributes {dimension_semantics = [#tpu.dimension_semantics<parallel>, #tpu.dimension_semantics<parallel>, #tpu.dimension_semantics<arbitrary>], iteration_bounds = array<i64: 2, 1, 1>, scalar_prefetch = 0 : i64, scratch_operands = 2 : i64, tpu.core_type = #tpu.core_type<tc>, window_params = [{transform_indices = @transform_0, window_bounds = array<i64: 1, 16, 4>}, {transform_indices = @transform_1, window_bounds = array<i64: 1, 4, 128>}, {transform_indices = @transform_2, window_bounds = array<i64: 1, 16, 4>}]} {
    %c0_i32 = arith.constant 0 : i32
    %0 = arith.cmpi eq, %arg2, %c0_i32 : i32
    %1 = arith.extui %0 : i1 to i32
    %c0_i32_0 = arith.constant 0 : i32
    %2 = arith.cmpi ne, %1, %c0_i32_0 : i32
    scf.if %2 {
      %cst_51 = arith.constant 0xFF800000 : f32
      %158 = vector.broadcast %cst_51 : f32 to vector<16x4xf32>
      %c0_52 = arith.constant 0 : index
      %c0_53 = arith.constant 0 : index
      %159 = vector.load %arg6[%c0_52, %c0_53] : memref<16x4xf32, #tpu.memory_space<vmem>>, vector<16x4xf32>
      tpu.vector_store %arg6[%c0_52, %c0_53], %158 {strides = array<i32>} : memref<16x4xf32, #tpu.memory_space<vmem>>, vector<16x4xf32>,
      %cst_54 = arith.constant 0.000000e+00 : f32
      %160 = vector.broadcast %cst_54 : f32 to vector<16x4xf32>
      %c0_55 = arith.constant 0 : index
      %c0_56 = arith.constant 0 : index
      %161 = vector.load %arg7[%c0_55, %c0_56] : memref<16x4xf32, #tpu.memory_space<vmem>>, vector<16x4xf32>
      tpu.vector_store %arg7[%c0_55, %c0_56], %160 {strides = array<i32>} : memref<16x4xf32, #tpu.memory_space<vmem>>, vector<16x4xf32>,
    } else {
    }
    %c0 = arith.constant 0 : index
    %c0_1 = arith.constant 0 : index
    %c0_2 = arith.constant 0 : index
    %3 = vector.load %arg3[%c0, %c0_1, %c0_2] : memref<1x16x4xf32, #tpu.memory_space<vmem>>, vector<1x16x4xf32>
    %4 = vector.shape_cast %3 : vector<1x16x4xf32> to vector<16x4xf32>
    %c0_3 = arith.constant 0 : index
    %c0_4 = arith.constant 0 : index
    %c0_5 = arith.constant 0 : index
    %5 = vector.load %arg4[%c0_3, %c0_4, %c0_5] : memref<1x4x128xf32, #tpu.memory_space<vmem>>, vector<1x4x128xf32>
    %6 = vector.shape_cast %5 : vector<1x4x128xf32> to vector<4x128xf32>
    %cst = arith.constant dense<0.000000e+00> : vector<16x128xf32>
    %7 = tpu.matmul %4, %6, %cst {dimension_numbers = #tpu.dot_dimension_numbers<[1], [0], [0], [1], [0, 0, 1, 1], [], []>} : vector<16x4xf32>, vector<4x128xf32>, vector<16x128xf32> -> vector<16x128xf32>
    %c128_i32 = arith.constant 128 : i32
    %8 = arith.muli %arg2, %c128_i32 : i32
    %9 = arith.sitofp %8 : i32 to f32
    %10 = tpu.iota {dimensions = array<i32: 1>} : vector<16x128xi32>
    %11 = arith.sitofp %10 : vector<16x128xi32> to vector<16x128xf32>
    %12 = vector.broadcast %9 : f32 to vector<16x128xf32>
    %13 = arith.addf %12, %11 : vector<16x128xf32>
    %14 = tpu.iota {dimensions = array<i32: 1>} : vector<16x4xi32>
    %c0_6 = arith.constant 0 : index
    %c0_7 = arith.constant 0 : index
    %15 = vector.load %arg6[%c0_6, %c0_7] : memref<16x4xf32, #tpu.memory_space<vmem>>, vector<16x4xf32>
    %c0_8 = arith.constant 0 : index
    %c0_9 = arith.constant 0 : index
    %16 = vector.load %arg7[%c0_8, %c0_9] : memref<16x4xf32, #tpu.memory_space<vmem>>, vector<16x4xf32>
    %cst_10 = arith.constant dense<0xFF800000> : vector<16xf32>
    %17 = vector.multi_reduction <maximumf>, %15, %cst_10 [1] : vector<16x4xf32> to vector<16xf32>
    %18 = vector.shape_cast %17 : vector<16xf32> to vector<16x1xf32>
    %cst_11 = arith.constant dense<0xFF800000> : vector<16xf32>
    %19 = vector.multi_reduction <maximumf>, %7, %cst_11 [1] : vector<16x128xf32> to vector<16xf32>
    %20 = vector.shape_cast %19 : vector<16xf32> to vector<16x1xf32>
    %21 = arith.maximumf %18, %20 : vector<16x1xf32>
    %22 = vector.broadcast %21 : vector<16x1xf32> to vector<16x4xf32>
    %23 = arith.cmpf oge, %15, %22 : vector<16x4xf32>
    %cst_12 = arith.constant 1.000000e+09 : f32
    %24 = vector.broadcast %cst_12 : f32 to vector<16x4xf32>
    %25 = arith.select %23, %16, %24 : vector<16x4xi1>, vector<16x4xf32>
    %cst_13 = arith.constant dense<0x7F800000> : vector<16xf32>
    %26 = vector.multi_reduction <minimumf>, %25, %cst_13 [1] : vector<16x4xf32> to vector<16xf32>
    %27 = vector.shape_cast %26 : vector<16xf32> to vector<16x1xf32>
    %28 = vector.broadcast %21 : vector<16x1xf32> to vector<16x128xf32>
    %29 = arith.cmpf oge, %7, %28 : vector<16x128xf32>
    %cst_14 = arith.constant 1.000000e+09 : f32
    %30 = vector.broadcast %cst_14 : f32 to vector<16x128xf32>
    %31 = arith.select %29, %13, %30 : vector<16x128xi1>, vector<16x128xf32>
    %cst_15 = arith.constant dense<0x7F800000> : vector<16xf32>
    %32 = vector.multi_reduction <minimumf>, %31, %cst_15 [1] : vector<16x128xf32> to vector<16xf32>
    %33 = vector.shape_cast %32 : vector<16xf32> to vector<16x1xf32>
    %34 = arith.minimumf %27, %33 : vector<16x1xf32>
    %c0_i32_16 = arith.constant 0 : i32
    %35 = vector.broadcast %c0_i32_16 : i32 to vector<16x4xi32>
    %36 = arith.cmpi eq, %14, %35 : vector<16x4xi32>
    %37 = vector.shape_cast %21 : vector<16x1xf32> to vector<16x1xf32>
    %38 = vector.broadcast %37 : vector<16x1xf32> to vector<16x4xf32>
    %39 = arith.select %36, %38, %15 : vector<16x4xi1>, vector<16x4xf32>
    %c0_i32_17 = arith.constant 0 : i32
    %40 = vector.broadcast %c0_i32_17 : i32 to vector<16x4xi32>
    %41 = arith.cmpi eq, %14, %40 : vector<16x4xi32>
    %42 = vector.shape_cast %34 : vector<16x1xf32> to vector<16x1xf32>
    %43 = vector.broadcast %42 : vector<16x1xf32> to vector<16x4xf32>
    %44 = arith.select %41, %43, %16 : vector<16x4xi1>, vector<16x4xf32>
    %45 = vector.broadcast %34 : vector<16x1xf32> to vector<16x4xf32>
    %46 = arith.cmpf oeq, %16, %45 : vector<16x4xf32>
    %cst_18 = arith.constant 0xFF800000 : f32
    %47 = vector.broadcast %cst_18 : f32 to vector<16x4xf32>
    %48 = arith.select %46, %47, %15 : vector<16x4xi1>, vector<16x4xf32>
    %49 = vector.broadcast %34 : vector<16x1xf32> to vector<16x128xf32>
    %50 = arith.cmpf oeq, %13, %49 : vector<16x128xf32>
    %cst_19 = arith.constant 0xFF800000 : f32
    %51 = vector.broadcast %cst_19 : f32 to vector<16x128xf32>
    %52 = arith.select %50, %51, %7 : vector<16x128xi1>, vector<16x128xf32>
    %cst_20 = arith.constant dense<0xFF800000> : vector<16xf32>
    %53 = vector.multi_reduction <maximumf>, %48, %cst_20 [1] : vector<16x4xf32> to vector<16xf32>
    %54 = vector.shape_cast %53 : vector<16xf32> to vector<16x1xf32>
    %cst_21 = arith.constant dense<0xFF800000> : vector<16xf32>
    %55 = vector.multi_reduction <maximumf>, %52, %cst_21 [1] : vector<16x128xf32> to vector<16xf32>
    %56 = vector.shape_cast %55 : vector<16xf32> to vector<16x1xf32>
    %57 = arith.maximumf %54, %56 : vector<16x1xf32>
    %58 = vector.broadcast %57 : vector<16x1xf32> to vector<16x4xf32>
    %59 = arith.cmpf oge, %48, %58 : vector<16x4xf32>
    %cst_22 = arith.constant 1.000000e+09 : f32
    %60 = vector.broadcast %cst_22 : f32 to vector<16x4xf32>
    %61 = arith.select %59, %16, %60 : vector<16x4xi1>, vector<16x4xf32>
    %cst_23 = arith.constant dense<0x7F800000> : vector<16xf32>
    %62 = vector.multi_reduction <minimumf>, %61, %cst_23 [1] : vector<16x4xf32> to vector<16xf32>
    %63 = vector.shape_cast %62 : vector<16xf32> to vector<16x1xf32>
    %64 = vector.broadcast %57 : vector<16x1xf32> to vector<16x128xf32>
    %65 = arith.cmpf oge, %52, %64 : vector<16x128xf32>
    %cst_24 = arith.constant 1.000000e+09 : f32
    %66 = vector.broadcast %cst_24 : f32 to vector<16x128xf32>
    %67 = arith.select %65, %13, %66 : vector<16x128xi1>, vector<16x128xf32>
    %cst_25 = arith.constant dense<0x7F800000> : vector<16xf32>
    %68 = vector.multi_reduction <minimumf>, %67, %cst_25 [1] : vector<16x128xf32> to vector<16xf32>
    %69 = vector.shape_cast %68 : vector<16xf32> to vector<16x1xf32>
    %70 = arith.minimumf %63, %69 : vector<16x1xf32>
    %c1_i32 = arith.constant 1 : i32
    %71 = vector.broadcast %c1_i32 : i32 to vector<16x4xi32>
    %72 = arith.cmpi eq, %14, %71 : vector<16x4xi32>
    %73 = vector.shape_cast %57 : vector<16x1xf32> to vector<16x1xf32>
    %74 = vector.broadcast %73 : vector<16x1xf32> to vector<16x4xf32>
    %75 = arith.select %72, %74, %39 : vector<16x4xi1>, vector<16x4xf32>
    %c1_i32_26 = arith.constant 1 : i32
    %76 = vector.broadcast %c1_i32_26 : i32 to vector<16x4xi32>
    %77 = arith.cmpi eq, %14, %76 : vector<16x4xi32>
    %78 = vector.shape_cast %70 : vector<16x1xf32> to vector<16x1xf32>
    %79 = vector.broadcast %78 : vector<16x1xf32> to vector<16x4xf32>
    %80 = arith.select %77, %79, %44 : vector<16x4xi1>, vector<16x4xf32>
    %81 = vector.broadcast %70 : vector<16x1xf32> to vector<16x4xf32>
    %82 = arith.cmpf oeq, %16, %81 : vector<16x4xf32>
    %cst_27 = arith.constant 0xFF800000 : f32
    %83 = vector.broadcast %cst_27 : f32 to vector<16x4xf32>
    %84 = arith.select %82, %83, %48 : vector<16x4xi1>, vector<16x4xf32>
    %85 = vector.broadcast %70 : vector<16x1xf32> to vector<16x128xf32>
    %86 = arith.cmpf oeq, %13, %85 : vector<16x128xf32>
    %cst_28 = arith.constant 0xFF800000 : f32
    %87 = vector.broadcast %cst_28 : f32 to vector<16x128xf32>
    %88 = arith.select %86, %87, %52 : vector<16x128xi1>, vector<16x128xf32>
    %cst_29 = arith.constant dense<0xFF800000> : vector<16xf32>
    %89 = vector.multi_reduction <maximumf>, %84, %cst_29 [1] : vector<16x4xf32> to vector<16xf32>
    %90 = vector.shape_cast %89 : vector<16xf32> to vector<16x1xf32>
    %cst_30 = arith.constant dense<0xFF800000> : vector<16xf32>
    %91 = vector.multi_reduction <maximumf>, %88, %cst_30 [1] : vector<16x128xf32> to vector<16xf32>
    %92 = vector.shape_cast %91 : vector<16xf32> to vector<16x1xf32>
    %93 = arith.maximumf %90, %92 : vector<16x1xf32>
    %94 = vector.broadcast %93 : vector<16x1xf32> to vector<16x4xf32>
    %95 = arith.cmpf oge, %84, %94 : vector<16x4xf32>
    %cst_31 = arith.constant 1.000000e+09 : f32
    %96 = vector.broadcast %cst_31 : f32 to vector<16x4xf32>
    %97 = arith.select %95, %16, %96 : vector<16x4xi1>, vector<16x4xf32>
    %cst_32 = arith.constant dense<0x7F800000> : vector<16xf32>
    %98 = vector.multi_reduction <minimumf>, %97, %cst_32 [1] : vector<16x4xf32> to vector<16xf32>
    %99 = vector.shape_cast %98 : vector<16xf32> to vector<16x1xf32>
    %100 = vector.broadcast %93 : vector<16x1xf32> to vector<16x128xf32>
    %101 = arith.cmpf oge, %88, %100 : vector<16x128xf32>
    %cst_33 = arith.constant 1.000000e+09 : f32
    %102 = vector.broadcast %cst_33 : f32 to vector<16x128xf32>
    %103 = arith.select %101, %13, %102 : vector<16x128xi1>, vector<16x128xf32>
    %cst_34 = arith.constant dense<0x7F800000> : vector<16xf32>
    %104 = vector.multi_reduction <minimumf>, %103, %cst_34 [1] : vector<16x128xf32> to vector<16xf32>
    %105 = vector.shape_cast %104 : vector<16xf32> to vector<16x1xf32>
    %106 = arith.minimumf %99, %105 : vector<16x1xf32>
    %c2_i32 = arith.constant 2 : i32
    %107 = vector.broadcast %c2_i32 : i32 to vector<16x4xi32>
    %108 = arith.cmpi eq, %14, %107 : vector<16x4xi32>
    %109 = vector.shape_cast %93 : vector<16x1xf32> to vector<16x1xf32>
    %110 = vector.broadcast %109 : vector<16x1xf32> to vector<16x4xf32>
    %111 = arith.select %108, %110, %75 : vector<16x4xi1>, vector<16x4xf32>
    %c2_i32_35 = arith.constant 2 : i32
    %112 = vector.broadcast %c2_i32_35 : i32 to vector<16x4xi32>
    %113 = arith.cmpi eq, %14, %112 : vector<16x4xi32>
    %114 = vector.shape_cast %106 : vector<16x1xf32> to vector<16x1xf32>
    %115 = vector.broadcast %114 : vector<16x1xf32> to vector<16x4xf32>
    %116 = arith.select %113, %115, %80 : vector<16x4xi1>, vector<16x4xf32>
    %117 = vector.broadcast %106 : vector<16x1xf32> to vector<16x4xf32>
    %118 = arith.cmpf oeq, %16, %117 : vector<16x4xf32>
    %cst_36 = arith.constant 0xFF800000 : f32
    %119 = vector.broadcast %cst_36 : f32 to vector<16x4xf32>
    %120 = arith.select %118, %119, %84 : vector<16x4xi1>, vector<16x4xf32>
    %121 = vector.broadcast %106 : vector<16x1xf32> to vector<16x128xf32>
    %122 = arith.cmpf oeq, %13, %121 : vector<16x128xf32>
    %cst_37 = arith.constant 0xFF800000 : f32
    %123 = vector.broadcast %cst_37 : f32 to vector<16x128xf32>
    %124 = arith.select %122, %123, %88 : vector<16x128xi1>, vector<16x128xf32>
    %cst_38 = arith.constant dense<0xFF800000> : vector<16xf32>
    %125 = vector.multi_reduction <maximumf>, %120, %cst_38 [1] : vector<16x4xf32> to vector<16xf32>
    %126 = vector.shape_cast %125 : vector<16xf32> to vector<16x1xf32>
    %cst_39 = arith.constant dense<0xFF800000> : vector<16xf32>
    %127 = vector.multi_reduction <maximumf>, %124, %cst_39 [1] : vector<16x128xf32> to vector<16xf32>
    %128 = vector.shape_cast %127 : vector<16xf32> to vector<16x1xf32>
    %129 = arith.maximumf %126, %128 : vector<16x1xf32>
    %130 = vector.broadcast %129 : vector<16x1xf32> to vector<16x4xf32>
    %131 = arith.cmpf oge, %120, %130 : vector<16x4xf32>
    %cst_40 = arith.constant 1.000000e+09 : f32
    %132 = vector.broadcast %cst_40 : f32 to vector<16x4xf32>
    %133 = arith.select %131, %16, %132 : vector<16x4xi1>, vector<16x4xf32>
    %cst_41 = arith.constant dense<0x7F800000> : vector<16xf32>
    %134 = vector.multi_reduction <minimumf>, %133, %cst_41 [1] : vector<16x4xf32> to vector<16xf32>
    %135 = vector.shape_cast %134 : vector<16xf32> to vector<16x1xf32>
    %136 = vector.broadcast %129 : vector<16x1xf32> to vector<16x128xf32>
    %137 = arith.cmpf oge, %124, %136 : vector<16x128xf32>
    %cst_42 = arith.constant 1.000000e+09 : f32
    %138 = vector.broadcast %cst_42 : f32 to vector<16x128xf32>
    %139 = arith.select %137, %13, %138 : vector<16x128xi1>, vector<16x128xf32>
    %cst_43 = arith.constant dense<0x7F800000> : vector<16xf32>
    %140 = vector.multi_reduction <minimumf>, %139, %cst_43 [1] : vector<16x128xf32> to vector<16xf32>
    %141 = vector.shape_cast %140 : vector<16xf32> to vector<16x1xf32>
    %142 = arith.minimumf %135, %141 : vector<16x1xf32>
    %c3_i32 = arith.constant 3 : i32
    %143 = vector.broadcast %c3_i32 : i32 to vector<16x4xi32>
    %144 = arith.cmpi eq, %14, %143 : vector<16x4xi32>
    %145 = vector.shape_cast %129 : vector<16x1xf32> to vector<16x1xf32>
    %146 = vector.broadcast %145 : vector<16x1xf32> to vector<16x4xf32>
    %147 = arith.select %144, %146, %111 : vector<16x4xi1>, vector<16x4xf32>
    %c3_i32_44 = arith.constant 3 : i32
    %148 = vector.broadcast %c3_i32_44 : i32 to vector<16x4xi32>
    %149 = arith.cmpi eq, %14, %148 : vector<16x4xi32>
    %150 = vector.shape_cast %142 : vector<16x1xf32> to vector<16x1xf32>
    %151 = vector.broadcast %150 : vector<16x1xf32> to vector<16x4xf32>
    %152 = arith.select %149, %151, %116 : vector<16x4xi1>, vector<16x4xf32>
    %c0_45 = arith.constant 0 : index
    %c0_46 = arith.constant 0 : index
    %153 = vector.load %arg6[%c0_45, %c0_46] : memref<16x4xf32, #tpu.memory_space<vmem>>, vector<16x4xf32>
    tpu.vector_store %arg6[%c0_45, %c0_46], %147 {strides = array<i32>} : memref<16x4xf32, #tpu.memory_space<vmem>>, vector<16x4xf32>,
    %c0_47 = arith.constant 0 : index
    %c0_48 = arith.constant 0 : index
    %154 = vector.load %arg7[%c0_47, %c0_48] : memref<16x4xf32, #tpu.memory_space<vmem>>, vector<16x4xf32>
    tpu.vector_store %arg7[%c0_47, %c0_48], %152 {strides = array<i32>} : memref<16x4xf32, #tpu.memory_space<vmem>>, vector<16x4xf32>,
    %c0_i32_49 = arith.constant 0 : i32
    %155 = arith.cmpi eq, %arg2, %c0_i32_49 : i32
    %156 = arith.extui %155 : i1 to i32
    %c0_i32_50 = arith.constant 0 : i32
    %157 = arith.cmpi ne, %156, %c0_i32_50 : i32
    scf.if %157 {
      %158 = arith.fptosi %152 : vector<16x4xf32> to vector<16x4xi32>
      %c0_51 = arith.constant 0 : index
      %c0_52 = arith.constant 0 : index
      %c0_53 = arith.constant 0 : index
      %159 = vector.load %arg5[%c0_51, %c0_52, %c0_53] : memref<1x16x4xi32, #tpu.memory_space<vmem>>, vector<1x16x4xi32>
      %160 = vector.shape_cast %159 : vector<1x16x4xi32> to vector<16x4xi32>
      %161 = vector.shape_cast %158 : vector<16x4xi32> to vector<1x16x4xi32>
      tpu.vector_store %arg5[%c0_51, %c0_52, %c0_53], %161 {strides = array<i32>} : memref<1x16x4xi32, #tpu.memory_space<vmem>>, vector<1x16x4xi32>,
    } else {
    }
    return
  }
  func.func @transform_0(%arg0: i32, %arg1: i32, %arg2: i32) -> (i32, i32, i32) {
    %c0_i32 = arith.constant 0 : i32
    %c0_i32_0 = arith.constant 0 : i32
    return %arg0, %arg1, %c0_i32 : i32, i32, i32
  }
  func.func @transform_1(%arg0: i32, %arg1: i32, %arg2: i32) -> (i32, i32, i32) {
    %c0_i32 = arith.constant 0 : i32
    %c0_i32_0 = arith.constant 0 : i32
    return %arg0, %c0_i32, %arg2 : i32, i32, i32
  }
  func.func @transform_2(%arg0: i32, %arg1: i32, %arg2: i32) -> (i32, i32, i32) {
    %c0_i32 = arith.constant 0 : i32
    %c0_i32_0 = arith.constant 0 : i32
    return %arg0, %arg1, %c0_i32 : i32, i32, i32
  }
}

module attributes {stable_mosaic.version = 11 : i64} {
  func.func @kernel(%arg0: i32, %arg1: i32, %arg2: i32, %arg3: memref<1x16x65xf32, #tpu.memory_space<vmem>>, %arg4: memref<1x65x128xf32, #tpu.memory_space<vmem>>, %arg5: memref<1x16x4xi32, #tpu.memory_space<vmem>>, %arg6: memref<16x4xf32, #tpu.memory_space<vmem>>, %arg7: memref<16x4xf32, #tpu.memory_space<vmem>>) attributes {dimension_semantics = [#tpu.dimension_semantics<parallel>, #tpu.dimension_semantics<parallel>, #tpu.dimension_semantics<arbitrary>], iteration_bounds = array<i64: 2, 1, 1>, scalar_prefetch = 0 : i64, scratch_operands = 2 : i64, tpu.core_type = #tpu.core_type<tc>, window_params = [{transform_indices = @transform_0, window_bounds = array<i64: 1, 16, 65>}, {transform_indices = @transform_1, window_bounds = array<i64: 1, 65, 128>}, {transform_indices = @transform_2, window_bounds = array<i64: 1, 16, 4>}]} {
    %c0_i32 = arith.constant 0 : i32
    %0 = arith.cmpi eq, %arg2, %c0_i32 : i32
    %1 = arith.extui %0 : i1 to i32
    %c0_i32_0 = arith.constant 0 : i32
    %2 = arith.cmpi ne, %1, %c0_i32_0 : i32
    scf.if %2 {
      %cst_51 = arith.constant 0xFF800000 : f32
      %158 = vector.broadcast %cst_51 : f32 to vector<16x4xf32>
      %c0_52 = arith.constant 0 : index
      %c0_53 = arith.constant 0 : index
      %159 = vector.load %arg6[%c0_52, %c0_53] : memref<16x4xf32, #tpu.memory_space<vmem>>, vector<16x4xf32>
      tpu.vector_store %arg6[%c0_52, %c0_53], %158 {strides = array<i32>} : memref<16x4xf32, #tpu.memory_space<vmem>>, vector<16x4xf32>,
      %cst_54 = arith.constant 0.000000e+00 : f32
      %160 = vector.broadcast %cst_54 : f32 to vector<16x4xf32>
      %c0_55 = arith.constant 0 : index
      %c0_56 = arith.constant 0 : index
      %161 = vector.load %arg7[%c0_55, %c0_56] : memref<16x4xf32, #tpu.memory_space<vmem>>, vector<16x4xf32>
      tpu.vector_store %arg7[%c0_55, %c0_56], %160 {strides = array<i32>} : memref<16x4xf32, #tpu.memory_space<vmem>>, vector<16x4xf32>,
    } else {
    }
    %c0 = arith.constant 0 : index
    %c0_1 = arith.constant 0 : index
    %c0_2 = arith.constant 0 : index
    %3 = vector.load %arg3[%c0, %c0_1, %c0_2] : memref<1x16x65xf32, #tpu.memory_space<vmem>>, vector<1x16x65xf32>
    %4 = vector.shape_cast %3 : vector<1x16x65xf32> to vector<16x65xf32>
    %c0_3 = arith.constant 0 : index
    %c0_4 = arith.constant 0 : index
    %c0_5 = arith.constant 0 : index
    %5 = vector.load %arg4[%c0_3, %c0_4, %c0_5] : memref<1x65x128xf32, #tpu.memory_space<vmem>>, vector<1x65x128xf32>
    %6 = vector.shape_cast %5 : vector<1x65x128xf32> to vector<65x128xf32>
    %cst = arith.constant dense<0.000000e+00> : vector<16x128xf32>
    %7 = tpu.matmul %4, %6, %cst {dimension_numbers = #tpu.dot_dimension_numbers<[1], [0], [0], [1], [0, 0, 1, 1], [], []>} : vector<16x65xf32>, vector<65x128xf32>, vector<16x128xf32> -> vector<16x128xf32>
    %c128_i32 = arith.constant 128 : i32
    %8 = arith.muli %arg2, %c128_i32 : i32
    %9 = arith.sitofp %8 : i32 to f32
    %10 = tpu.iota {dimensions = array<i32: 1>} : vector<16x128xi32>
    %11 = arith.sitofp %10 : vector<16x128xi32> to vector<16x128xf32>
    %12 = vector.broadcast %9 : f32 to vector<16x128xf32>
    %13 = arith.addf %12, %11 : vector<16x128xf32>
    %14 = tpu.iota {dimensions = array<i32: 1>} : vector<16x4xi32>
    %c0_6 = arith.constant 0 : index
    %c0_7 = arith.constant 0 : index
    %15 = vector.load %arg6[%c0_6, %c0_7] : memref<16x4xf32, #tpu.memory_space<vmem>>, vector<16x4xf32>
    %c0_8 = arith.constant 0 : index
    %c0_9 = arith.constant 0 : index
    %16 = vector.load %arg7[%c0_8, %c0_9] : memref<16x4xf32, #tpu.memory_space<vmem>>, vector<16x4xf32>
    %cst_10 = arith.constant dense<0xFF800000> : vector<16xf32>
    %17 = vector.multi_reduction <maximumf>, %15, %cst_10 [1] : vector<16x4xf32> to vector<16xf32>
    %18 = vector.shape_cast %17 : vector<16xf32> to vector<16x1xf32>
    %cst_11 = arith.constant dense<0xFF800000> : vector<16xf32>
    %19 = vector.multi_reduction <maximumf>, %7, %cst_11 [1] : vector<16x128xf32> to vector<16xf32>
    %20 = vector.shape_cast %19 : vector<16xf32> to vector<16x1xf32>
    %21 = arith.maximumf %18, %20 : vector<16x1xf32>
    %22 = vector.broadcast %21 : vector<16x1xf32> to vector<16x4xf32>
    %23 = arith.cmpf oge, %15, %22 : vector<16x4xf32>
    %cst_12 = arith.constant 1.000000e+09 : f32
    %24 = vector.broadcast %cst_12 : f32 to vector<16x4xf32>
    %25 = arith.select %23, %16, %24 : vector<16x4xi1>, vector<16x4xf32>
    %cst_13 = arith.constant dense<0x7F800000> : vector<16xf32>
    %26 = vector.multi_reduction <minimumf>, %25, %cst_13 [1] : vector<16x4xf32> to vector<16xf32>
    %27 = vector.shape_cast %26 : vector<16xf32> to vector<16x1xf32>
    %28 = vector.broadcast %21 : vector<16x1xf32> to vector<16x128xf32>
    %29 = arith.cmpf oge, %7, %28 : vector<16x128xf32>
    %cst_14 = arith.constant 1.000000e+09 : f32
    %30 = vector.broadcast %cst_14 : f32 to vector<16x128xf32>
    %31 = arith.select %29, %13, %30 : vector<16x128xi1>, vector<16x128xf32>
    %cst_15 = arith.constant dense<0x7F800000> : vector<16xf32>
    %32 = vector.multi_reduction <minimumf>, %31, %cst_15 [1] : vector<16x128xf32> to vector<16xf32>
    %33 = vector.shape_cast %32 : vector<16xf32> to vector<16x1xf32>
    %34 = arith.minimumf %27, %33 : vector<16x1xf32>
    %c0_i32_16 = arith.constant 0 : i32
    %35 = vector.broadcast %c0_i32_16 : i32 to vector<16x4xi32>
    %36 = arith.cmpi eq, %14, %35 : vector<16x4xi32>
    %37 = vector.shape_cast %21 : vector<16x1xf32> to vector<16x1xf32>
    %38 = vector.broadcast %37 : vector<16x1xf32> to vector<16x4xf32>
    %39 = arith.select %36, %38, %15 : vector<16x4xi1>, vector<16x4xf32>
    %c0_i32_17 = arith.constant 0 : i32
    %40 = vector.broadcast %c0_i32_17 : i32 to vector<16x4xi32>
    %41 = arith.cmpi eq, %14, %40 : vector<16x4xi32>
    %42 = vector.shape_cast %34 : vector<16x1xf32> to vector<16x1xf32>
    %43 = vector.broadcast %42 : vector<16x1xf32> to vector<16x4xf32>
    %44 = arith.select %41, %43, %16 : vector<16x4xi1>, vector<16x4xf32>
    %45 = vector.broadcast %34 : vector<16x1xf32> to vector<16x4xf32>
    %46 = arith.cmpf oeq, %16, %45 : vector<16x4xf32>
    %cst_18 = arith.constant 0xFF800000 : f32
    %47 = vector.broadcast %cst_18 : f32 to vector<16x4xf32>
    %48 = arith.select %46, %47, %15 : vector<16x4xi1>, vector<16x4xf32>
    %49 = vector.broadcast %34 : vector<16x1xf32> to vector<16x128xf32>
    %50 = arith.cmpf oeq, %13, %49 : vector<16x128xf32>
    %cst_19 = arith.constant 0xFF800000 : f32
    %51 = vector.broadcast %cst_19 : f32 to vector<16x128xf32>
    %52 = arith.select %50, %51, %7 : vector<16x128xi1>, vector<16x128xf32>
    %cst_20 = arith.constant dense<0xFF800000> : vector<16xf32>
    %53 = vector.multi_reduction <maximumf>, %48, %cst_20 [1] : vector<16x4xf32> to vector<16xf32>
    %54 = vector.shape_cast %53 : vector<16xf32> to vector<16x1xf32>
    %cst_21 = arith.constant dense<0xFF800000> : vector<16xf32>
    %55 = vector.multi_reduction <maximumf>, %52, %cst_21 [1] : vector<16x128xf32> to vector<16xf32>
    %56 = vector.shape_cast %55 : vector<16xf32> to vector<16x1xf32>
    %57 = arith.maximumf %54, %56 : vector<16x1xf32>
    %58 = vector.broadcast %57 : vector<16x1xf32> to vector<16x4xf32>
    %59 = arith.cmpf oge, %48, %58 : vector<16x4xf32>
    %cst_22 = arith.constant 1.000000e+09 : f32
    %60 = vector.broadcast %cst_22 : f32 to vector<16x4xf32>
    %61 = arith.select %59, %16, %60 : vector<16x4xi1>, vector<16x4xf32>
    %cst_23 = arith.constant dense<0x7F800000> : vector<16xf32>
    %62 = vector.multi_reduction <minimumf>, %61, %cst_23 [1] : vector<16x4xf32> to vector<16xf32>
    %63 = vector.shape_cast %62 : vector<16xf32> to vector<16x1xf32>
    %64 = vector.broadcast %57 : vector<16x1xf32> to vector<16x128xf32>
    %65 = arith.cmpf oge, %52, %64 : vector<16x128xf32>
    %cst_24 = arith.constant 1.000000e+09 : f32
    %66 = vector.broadcast %cst_24 : f32 to vector<16x128xf32>
    %67 = arith.select %65, %13, %66 : vector<16x128xi1>, vector<16x128xf32>
    %cst_25 = arith.constant dense<0x7F800000> : vector<16xf32>
    %68 = vector.multi_reduction <minimumf>, %67, %cst_25 [1] : vector<16x128xf32> to vector<16xf32>
    %69 = vector.shape_cast %68 : vector<16xf32> to vector<16x1xf32>
    %70 = arith.minimumf %63, %69 : vector<16x1xf32>
    %c1_i32 = arith.constant 1 : i32
    %71 = vector.broadcast %c1_i32 : i32 to vector<16x4xi32>
    %72 = arith.cmpi eq, %14, %71 : vector<16x4xi32>
    %73 = vector.shape_cast %57 : vector<16x1xf32> to vector<16x1xf32>
    %74 = vector.broadcast %73 : vector<16x1xf32> to vector<16x4xf32>
    %75 = arith.select %72, %74, %39 : vector<16x4xi1>, vector<16x4xf32>
    %c1_i32_26 = arith.constant 1 : i32
    %76 = vector.broadcast %c1_i32_26 : i32 to vector<16x4xi32>
    %77 = arith.cmpi eq, %14, %76 : vector<16x4xi32>
    %78 = vector.shape_cast %70 : vector<16x1xf32> to vector<16x1xf32>
    %79 = vector.broadcast %78 : vector<16x1xf32> to vector<16x4xf32>
    %80 = arith.select %77, %79, %44 : vector<16x4xi1>, vector<16x4xf32>
    %81 = vector.broadcast %70 : vector<16x1xf32> to vector<16x4xf32>
    %82 = arith.cmpf oeq, %16, %81 : vector<16x4xf32>
    %cst_27 = arith.constant 0xFF800000 : f32
    %83 = vector.broadcast %cst_27 : f32 to vector<16x4xf32>
    %84 = arith.select %82, %83, %48 : vector<16x4xi1>, vector<16x4xf32>
    %85 = vector.broadcast %70 : vector<16x1xf32> to vector<16x128xf32>
    %86 = arith.cmpf oeq, %13, %85 : vector<16x128xf32>
    %cst_28 = arith.constant 0xFF800000 : f32
    %87 = vector.broadcast %cst_28 : f32 to vector<16x128xf32>
    %88 = arith.select %86, %87, %52 : vector<16x128xi1>, vector<16x128xf32>
    %cst_29 = arith.constant dense<0xFF800000> : vector<16xf32>
    %89 = vector.multi_reduction <maximumf>, %84, %cst_29 [1] : vector<16x4xf32> to vector<16xf32>
    %90 = vector.shape_cast %89 : vector<16xf32> to vector<16x1xf32>
    %cst_30 = arith.constant dense<0xFF800000> : vector<16xf32>
    %91 = vector.multi_reduction <maximumf>, %88, %cst_30 [1] : vector<16x128xf32> to vector<16xf32>
    %92 = vector.shape_cast %91 : vector<16xf32> to vector<16x1xf32>
    %93 = arith.maximumf %90, %92 : vector<16x1xf32>
    %94 = vector.broadcast %93 : vector<16x1xf32> to vector<16x4xf32>
    %95 = arith.cmpf oge, %84, %94 : vector<16x4xf32>
    %cst_31 = arith.constant 1.000000e+09 : f32
    %96 = vector.broadcast %cst_31 : f32 to vector<16x4xf32>
    %97 = arith.select %95, %16, %96 : vector<16x4xi1>, vector<16x4xf32>
    %cst_32 = arith.constant dense<0x7F800000> : vector<16xf32>
    %98 = vector.multi_reduction <minimumf>, %97, %cst_32 [1] : vector<16x4xf32> to vector<16xf32>
    %99 = vector.shape_cast %98 : vector<16xf32> to vector<16x1xf32>
    %100 = vector.broadcast %93 : vector<16x1xf32> to vector<16x128xf32>
    %101 = arith.cmpf oge, %88, %100 : vector<16x128xf32>
    %cst_33 = arith.constant 1.000000e+09 : f32
    %102 = vector.broadcast %cst_33 : f32 to vector<16x128xf32>
    %103 = arith.select %101, %13, %102 : vector<16x128xi1>, vector<16x128xf32>
    %cst_34 = arith.constant dense<0x7F800000> : vector<16xf32>
    %104 = vector.multi_reduction <minimumf>, %103, %cst_34 [1] : vector<16x128xf32> to vector<16xf32>
    %105 = vector.shape_cast %104 : vector<16xf32> to vector<16x1xf32>
    %106 = arith.minimumf %99, %105 : vector<16x1xf32>
    %c2_i32 = arith.constant 2 : i32
    %107 = vector.broadcast %c2_i32 : i32 to vector<16x4xi32>
    %108 = arith.cmpi eq, %14, %107 : vector<16x4xi32>
    %109 = vector.shape_cast %93 : vector<16x1xf32> to vector<16x1xf32>
    %110 = vector.broadcast %109 : vector<16x1xf32> to vector<16x4xf32>
    %111 = arith.select %108, %110, %75 : vector<16x4xi1>, vector<16x4xf32>
    %c2_i32_35 = arith.constant 2 : i32
    %112 = vector.broadcast %c2_i32_35 : i32 to vector<16x4xi32>
    %113 = arith.cmpi eq, %14, %112 : vector<16x4xi32>
    %114 = vector.shape_cast %106 : vector<16x1xf32> to vector<16x1xf32>
    %115 = vector.broadcast %114 : vector<16x1xf32> to vector<16x4xf32>
    %116 = arith.select %113, %115, %80 : vector<16x4xi1>, vector<16x4xf32>
    %117 = vector.broadcast %106 : vector<16x1xf32> to vector<16x4xf32>
    %118 = arith.cmpf oeq, %16, %117 : vector<16x4xf32>
    %cst_36 = arith.constant 0xFF800000 : f32
    %119 = vector.broadcast %cst_36 : f32 to vector<16x4xf32>
    %120 = arith.select %118, %119, %84 : vector<16x4xi1>, vector<16x4xf32>
    %121 = vector.broadcast %106 : vector<16x1xf32> to vector<16x128xf32>
    %122 = arith.cmpf oeq, %13, %121 : vector<16x128xf32>
    %cst_37 = arith.constant 0xFF800000 : f32
    %123 = vector.broadcast %cst_37 : f32 to vector<16x128xf32>
    %124 = arith.select %122, %123, %88 : vector<16x128xi1>, vector<16x128xf32>
    %cst_38 = arith.constant dense<0xFF800000> : vector<16xf32>
    %125 = vector.multi_reduction <maximumf>, %120, %cst_38 [1] : vector<16x4xf32> to vector<16xf32>
    %126 = vector.shape_cast %125 : vector<16xf32> to vector<16x1xf32>
    %cst_39 = arith.constant dense<0xFF800000> : vector<16xf32>
    %127 = vector.multi_reduction <maximumf>, %124, %cst_39 [1] : vector<16x128xf32> to vector<16xf32>
    %128 = vector.shape_cast %127 : vector<16xf32> to vector<16x1xf32>
    %129 = arith.maximumf %126, %128 : vector<16x1xf32>
    %130 = vector.broadcast %129 : vector<16x1xf32> to vector<16x4xf32>
    %131 = arith.cmpf oge, %120, %130 : vector<16x4xf32>
    %cst_40 = arith.constant 1.000000e+09 : f32
    %132 = vector.broadcast %cst_40 : f32 to vector<16x4xf32>
    %133 = arith.select %131, %16, %132 : vector<16x4xi1>, vector<16x4xf32>
    %cst_41 = arith.constant dense<0x7F800000> : vector<16xf32>
    %134 = vector.multi_reduction <minimumf>, %133, %cst_41 [1] : vector<16x4xf32> to vector<16xf32>
    %135 = vector.shape_cast %134 : vector<16xf32> to vector<16x1xf32>
    %136 = vector.broadcast %129 : vector<16x1xf32> to vector<16x128xf32>
    %137 = arith.cmpf oge, %124, %136 : vector<16x128xf32>
    %cst_42 = arith.constant 1.000000e+09 : f32
    %138 = vector.broadcast %cst_42 : f32 to vector<16x128xf32>
    %139 = arith.select %137, %13, %138 : vector<16x128xi1>, vector<16x128xf32>
    %cst_43 = arith.constant dense<0x7F800000> : vector<16xf32>
    %140 = vector.multi_reduction <minimumf>, %139, %cst_43 [1] : vector<16x128xf32> to vector<16xf32>
    %141 = vector.shape_cast %140 : vector<16xf32> to vector<16x1xf32>
    %142 = arith.minimumf %135, %141 : vector<16x1xf32>
    %c3_i32 = arith.constant 3 : i32
    %143 = vector.broadcast %c3_i32 : i32 to vector<16x4xi32>
    %144 = arith.cmpi eq, %14, %143 : vector<16x4xi32>
    %145 = vector.shape_cast %129 : vector<16x1xf32> to vector<16x1xf32>
    %146 = vector.broadcast %145 : vector<16x1xf32> to vector<16x4xf32>
    %147 = arith.select %144, %146, %111 : vector<16x4xi1>, vector<16x4xf32>
    %c3_i32_44 = arith.constant 3 : i32
    %148 = vector.broadcast %c3_i32_44 : i32 to vector<16x4xi32>
    %149 = arith.cmpi eq, %14, %148 : vector<16x4xi32>
    %150 = vector.shape_cast %142 : vector<16x1xf32> to vector<16x1xf32>
    %151 = vector.broadcast %150 : vector<16x1xf32> to vector<16x4xf32>
    %152 = arith.select %149, %151, %116 : vector<16x4xi1>, vector<16x4xf32>
    %c0_45 = arith.constant 0 : index
    %c0_46 = arith.constant 0 : index
    %153 = vector.load %arg6[%c0_45, %c0_46] : memref<16x4xf32, #tpu.memory_space<vmem>>, vector<16x4xf32>
    tpu.vector_store %arg6[%c0_45, %c0_46], %147 {strides = array<i32>} : memref<16x4xf32, #tpu.memory_space<vmem>>, vector<16x4xf32>,
    %c0_47 = arith.constant 0 : index
    %c0_48 = arith.constant 0 : index
    %154 = vector.load %arg7[%c0_47, %c0_48] : memref<16x4xf32, #tpu.memory_space<vmem>>, vector<16x4xf32>
    tpu.vector_store %arg7[%c0_47, %c0_48], %152 {strides = array<i32>} : memref<16x4xf32, #tpu.memory_space<vmem>>, vector<16x4xf32>,
    %c0_i32_49 = arith.constant 0 : i32
    %155 = arith.cmpi eq, %arg2, %c0_i32_49 : i32
    %156 = arith.extui %155 : i1 to i32
    %c0_i32_50 = arith.constant 0 : i32
    %157 = arith.cmpi ne, %156, %c0_i32_50 : i32
    scf.if %157 {
      %158 = arith.fptosi %152 : vector<16x4xf32> to vector<16x4xi32>
      %c0_51 = arith.constant 0 : index
      %c0_52 = arith.constant 0 : index
      %c0_53 = arith.constant 0 : index
      %159 = vector.load %arg5[%c0_51, %c0_52, %c0_53] : memref<1x16x4xi32, #tpu.memory_space<vmem>>, vector<1x16x4xi32>
      %160 = vector.shape_cast %159 : vector<1x16x4xi32> to vector<16x4xi32>
      %161 = vector.shape_cast %158 : vector<16x4xi32> to vector<1x16x4xi32>
      tpu.vector_store %arg5[%c0_51, %c0_52, %c0_53], %161 {strides = array<i32>} : memref<1x16x4xi32, #tpu.memory_space<vmem>>, vector<1x16x4xi32>,
    } else {
    }
    return
  }
  func.func @transform_0(%arg0: i32, %arg1: i32, %arg2: i32) -> (i32, i32, i32) {
    %c0_i32 = arith.constant 0 : i32
    %c0_i32_0 = arith.constant 0 : i32
    return %arg0, %arg1, %c0_i32 : i32, i32, i32
  }
  func.func @transform_1(%arg0: i32, %arg1: i32, %arg2: i32) -> (i32, i32, i32) {
    %c0_i32 = arith.constant 0 : i32
    %c0_i32_0 = arith.constant 0 : i32
    return %arg0, %c0_i32, %arg2 : i32, i32, i32
  }
  func.func @transform_2(%arg0: i32, %arg1: i32, %arg2: i32) -> (i32, i32, i32) {
    %c0_i32 = arith.constant 0 : i32
    %c0_i32_0 = arith.constant 0 : i32
    return %arg0, %arg1, %c0_i32 : i32, i32, i32
  }
}

module attributes {stable_mosaic.version = 11 : i64} {
  func.func @kernel(%arg0: i32, %arg1: memref<4x32x9xbf16, #tpu.memory_space<vmem>>, %arg2: memref<32x9xbf16, #tpu.memory_space<vmem>>, %arg3: memref<9x64xbf16, #tpu.memory_space<vmem>>, %arg4: memref<9x64xbf16, #tpu.memory_space<vmem>>, %arg5: memref<1x64xf32, #tpu.memory_space<vmem>>, %arg6: memref<1x64xf32, #tpu.memory_space<vmem>>, %arg7: memref<64x64xbf16, #tpu.memory_space<vmem>>, %arg8: memref<1x64xf32, #tpu.memory_space<vmem>>, %arg9: memref<1x64xf32, #tpu.memory_space<vmem>>, %arg10: memref<32x64xf32, #tpu.memory_space<vmem>>) attributes {dimension_semantics = [#tpu.dimension_semantics<parallel>], iteration_bounds = array<i64: 1>, scalar_prefetch = 0 : i64, scratch_operands = 0 : i64, tpu.core_type = #tpu.core_type<tc>, window_params = [{transform_indices = @transform_0, window_bounds = array<i64: 4, 32, 9>}, {transform_indices = @transform_1, window_bounds = array<i64: 32, 9>}, {pipeline_mode = #tpu.pipeline_mode<synchronous>, transform_indices = @transform_2, window_bounds = array<i64: 9, 64>}, {pipeline_mode = #tpu.pipeline_mode<synchronous>, transform_indices = @transform_3, window_bounds = array<i64: 9, 64>}, {pipeline_mode = #tpu.pipeline_mode<synchronous>, transform_indices = @transform_4, window_bounds = array<i64: 1, 64>}, {pipeline_mode = #tpu.pipeline_mode<synchronous>, transform_indices = @transform_5, window_bounds = array<i64: 1, 64>}, {pipeline_mode = #tpu.pipeline_mode<synchronous>, transform_indices = @transform_6, window_bounds = array<i64: 64, 64>}, {pipeline_mode = #tpu.pipeline_mode<synchronous>, transform_indices = @transform_7, window_bounds = array<i64: 1, 64>}, {pipeline_mode = #tpu.pipeline_mode<synchronous>, transform_indices = @transform_8, window_bounds = array<i64: 1, 64>}, {transform_indices = @transform_9, window_bounds = array<i64: 32, 64>}]} {
    %c0 = arith.constant 0 : index
    %c0_0 = arith.constant 0 : index
    %c0_1 = arith.constant 0 : index
    %0 = vector.load %arg1[%c0, %c0_0, %c0_1] : memref<4x32x9xbf16, #tpu.memory_space<vmem>>, vector<4x32x9xbf16>
    %c0_2 = arith.constant 0 : index
    %c0_3 = arith.constant 0 : index
    %1 = vector.load %arg2[%c0_2, %c0_3] : memref<32x9xbf16, #tpu.memory_space<vmem>>, vector<32x9xbf16>
    %c0_4 = arith.constant 0 : index
    %c0_5 = arith.constant 0 : index
    %2 = vector.load %arg3[%c0_4, %c0_5] : memref<9x64xbf16, #tpu.memory_space<vmem>>, vector<9x64xbf16>
    %c0_6 = arith.constant 0 : index
    %c0_7 = arith.constant 0 : index
    %3 = vector.load %arg4[%c0_6, %c0_7] : memref<9x64xbf16, #tpu.memory_space<vmem>>, vector<9x64xbf16>
    %c0_8 = arith.constant 0 : index
    %c0_9 = arith.constant 0 : index
    %4 = vector.load %arg5[%c0_8, %c0_9] : memref<1x64xf32, #tpu.memory_space<vmem>>, vector<1x64xf32>
    %c0_10 = arith.constant 0 : index
    %c0_11 = arith.constant 0 : index
    %5 = vector.load %arg6[%c0_10, %c0_11] : memref<1x64xf32, #tpu.memory_space<vmem>>, vector<1x64xf32>
    %6 = vector.shape_cast %1 : vector<32x9xbf16> to vector<1x32x9xbf16>
    %7 = vector.broadcast %6 : vector<1x32x9xbf16> to vector<4x32x9xbf16>
    %8 = arith.subf %0, %7 : vector<4x32x9xbf16>
    %9 = vector.shape_cast %8 : vector<4x32x9xbf16> to vector<128x9xbf16>
    %cst = arith.constant dense<0.000000e+00> : vector<128x64xf32>
    %10 = tpu.matmul %9, %2, %cst {dimension_numbers = #tpu.dot_dimension_numbers<[1], [0], [0], [1], [0, 0, 1, 1], [], []>} : vector<128x9xbf16>, vector<9x64xbf16>, vector<128x64xf32> -> vector<128x64xf32>
    %cst_12 = arith.constant dense<0.000000e+00> : vector<32x64xf32>
    %11 = tpu.matmul %1, %3, %cst_12 {dimension_numbers = #tpu.dot_dimension_numbers<[1], [0], [0], [1], [0, 0, 1, 1], [], []>} : vector<32x9xbf16>, vector<9x64xbf16>, vector<32x64xf32> -> vector<32x64xf32>
    %12 = vector.shape_cast %10 : vector<128x64xf32> to vector<4x32x64xf32>
    %13 = vector.shape_cast %11 : vector<32x64xf32> to vector<1x32x64xf32>
    %14 = vector.broadcast %13 : vector<1x32x64xf32> to vector<4x32x64xf32>
    %15 = arith.addf %12, %14 : vector<4x32x64xf32>
    %16 = vector.shape_cast %4 : vector<1x64xf32> to vector<1x1x64xf32>
    %17 = vector.broadcast %16 : vector<1x1x64xf32> to vector<4x32x64xf32>
    %18 = arith.mulf %15, %17 : vector<4x32x64xf32>
    %19 = vector.shape_cast %5 : vector<1x64xf32> to vector<1x1x64xf32>
    %20 = vector.broadcast %19 : vector<1x1x64xf32> to vector<4x32x64xf32>
    %21 = arith.addf %18, %20 : vector<4x32x64xf32>
    %cst_13 = arith.constant 2.000000e-01 : f32
    %22 = vector.broadcast %cst_13 : f32 to vector<4x32x64xf32>
    %23 = arith.mulf %22, %21 : vector<4x32x64xf32>
    %24 = arith.maximumf %21, %23 : vector<4x32x64xf32>
    %25 = vector.shape_cast %24 : vector<4x32x64xf32> to vector<128x64xf32>
    %c0_14 = arith.constant 0 : index
    %c0_15 = arith.constant 0 : index
    %26 = vector.load %arg7[%c0_14, %c0_15] : memref<64x64xbf16, #tpu.memory_space<vmem>>, vector<64x64xbf16>
    %c0_16 = arith.constant 0 : index
    %c0_17 = arith.constant 0 : index
    %27 = vector.load %arg8[%c0_16, %c0_17] : memref<1x64xf32, #tpu.memory_space<vmem>>, vector<1x64xf32>
    %c0_18 = arith.constant 0 : index
    %c0_19 = arith.constant 0 : index
    %28 = vector.load %arg9[%c0_18, %c0_19] : memref<1x64xf32, #tpu.memory_space<vmem>>, vector<1x64xf32>
    %29 = arith.truncf %25 : vector<128x64xf32> to vector<128x64xbf16>
    %cst_20 = arith.constant dense<0.000000e+00> : vector<128x64xf32>
    %30 = tpu.matmul %29, %26, %cst_20 {dimension_numbers = #tpu.dot_dimension_numbers<[1], [0], [0], [1], [0, 0, 1, 1], [], []>} : vector<128x64xbf16>, vector<64x64xbf16>, vector<128x64xf32> -> vector<128x64xf32>
    %31 = vector.broadcast %27 : vector<1x64xf32> to vector<128x64xf32>
    %32 = arith.mulf %30, %31 : vector<128x64xf32>
    %33 = vector.broadcast %28 : vector<1x64xf32> to vector<128x64xf32>
    %34 = arith.addf %32, %33 : vector<128x64xf32>
    %cst_21 = arith.constant 2.000000e-01 : f32
    %35 = vector.broadcast %cst_21 : f32 to vector<128x64xf32>
    %36 = arith.mulf %35, %34 : vector<128x64xf32>
    %37 = arith.maximumf %34, %36 : vector<128x64xf32>
    %38 = vector.shape_cast %37 : vector<128x64xf32> to vector<4x32x64xf32>
    %39 = vector.extract_strided_slice %38 {offsets = [0, 0, 0], sizes = [1, 32, 64], strides = [1, 1, 1]} : vector<4x32x64xf32> to vector<1x32x64xf32>
    %40 = vector.shape_cast %39 : vector<1x32x64xf32> to vector<32x64xf32>
    %41 = vector.extract_strided_slice %38 {offsets = [1, 0, 0], sizes = [1, 32, 64], strides = [1, 1, 1]} : vector<4x32x64xf32> to vector<1x32x64xf32>
    %42 = vector.shape_cast %41 : vector<1x32x64xf32> to vector<32x64xf32>
    %43 = arith.maximumf %40, %42 : vector<32x64xf32>
    %44 = vector.extract_strided_slice %38 {offsets = [2, 0, 0], sizes = [1, 32, 64], strides = [1, 1, 1]} : vector<4x32x64xf32> to vector<1x32x64xf32>
    %45 = vector.shape_cast %44 : vector<1x32x64xf32> to vector<32x64xf32>
    %46 = arith.maximumf %43, %45 : vector<32x64xf32>
    %47 = vector.extract_strided_slice %38 {offsets = [3, 0, 0], sizes = [1, 32, 64], strides = [1, 1, 1]} : vector<4x32x64xf32> to vector<1x32x64xf32>
    %48 = vector.shape_cast %47 : vector<1x32x64xf32> to vector<32x64xf32>
    %49 = arith.maximumf %46, %48 : vector<32x64xf32>
    %c0_22 = arith.constant 0 : index
    %c0_23 = arith.constant 0 : index
    %50 = vector.load %arg10[%c0_22, %c0_23] : memref<32x64xf32, #tpu.memory_space<vmem>>, vector<32x64xf32>
    tpu.vector_store %arg10[%c0_22, %c0_23], %49 {strides = array<i32>} : memref<32x64xf32, #tpu.memory_space<vmem>>, vector<32x64xf32>,
    return
  }
  func.func @transform_0(%arg0: i32) -> (i32, i32, i32) {
    %c0_i32 = arith.constant 0 : i32
    %c0_i32_0 = arith.constant 0 : i32
    %c0_i32_1 = arith.constant 0 : i32
    return %c0_i32, %arg0, %c0_i32_0 : i32, i32, i32
  }
  func.func @transform_1(%arg0: i32) -> (i32, i32) {
    %c0_i32 = arith.constant 0 : i32
    %c0_i32_0 = arith.constant 0 : i32
    return %arg0, %c0_i32 : i32, i32
  }
  func.func @transform_2(%arg0: i32) -> (i32, i32) {
    %c0_i32 = arith.constant 0 : i32
    %c0_i32_0 = arith.constant 0 : i32
    %c0_i32_1 = arith.constant 0 : i32
    return %c0_i32, %c0_i32_0 : i32, i32
  }
  func.func @transform_3(%arg0: i32) -> (i32, i32) {
    %c0_i32 = arith.constant 0 : i32
    %c0_i32_0 = arith.constant 0 : i32
    %c0_i32_1 = arith.constant 0 : i32
    return %c0_i32, %c0_i32_0 : i32, i32
  }
  func.func @transform_4(%arg0: i32) -> (i32, i32) {
    %c0_i32 = arith.constant 0 : i32
    %c0_i32_0 = arith.constant 0 : i32
    %c0_i32_1 = arith.constant 0 : i32
    return %c0_i32, %c0_i32_0 : i32, i32
  }
  func.func @transform_5(%arg0: i32) -> (i32, i32) {
    %c0_i32 = arith.constant 0 : i32
    %c0_i32_0 = arith.constant 0 : i32
    %c0_i32_1 = arith.constant 0 : i32
    return %c0_i32, %c0_i32_0 : i32, i32
  }
  func.func @transform_6(%arg0: i32) -> (i32, i32) {
    %c0_i32 = arith.constant 0 : i32
    %c0_i32_0 = arith.constant 0 : i32
    %c0_i32_1 = arith.constant 0 : i32
    return %c0_i32, %c0_i32_0 : i32, i32
  }
  func.func @transform_7(%arg0: i32) -> (i32, i32) {
    %c0_i32 = arith.constant 0 : i32
    %c0_i32_0 = arith.constant 0 : i32
    %c0_i32_1 = arith.constant 0 : i32
    return %c0_i32, %c0_i32_0 : i32, i32
  }
  func.func @transform_8(%arg0: i32) -> (i32, i32) {
    %c0_i32 = arith.constant 0 : i32
    %c0_i32_0 = arith.constant 0 : i32
    %c0_i32_1 = arith.constant 0 : i32
    return %c0_i32, %c0_i32_0 : i32, i32
  }
  func.func @transform_9(%arg0: i32) -> (i32, i32) {
    %c0_i32 = arith.constant 0 : i32
    %c0_i32_0 = arith.constant 0 : i32
    return %arg0, %c0_i32 : i32, i32
  }
}

module attributes {stable_mosaic.version = 11 : i64} {
  func.func @kernel(%arg0: i32, %arg1: memref<4x32x64xbf16, #tpu.memory_space<vmem>>, %arg2: memref<32x64xbf16, #tpu.memory_space<vmem>>, %arg3: memref<64x64xbf16, #tpu.memory_space<vmem>>, %arg4: memref<64x64xbf16, #tpu.memory_space<vmem>>, %arg5: memref<1x64xf32, #tpu.memory_space<vmem>>, %arg6: memref<1x64xf32, #tpu.memory_space<vmem>>, %arg7: memref<64x64xbf16, #tpu.memory_space<vmem>>, %arg8: memref<1x64xf32, #tpu.memory_space<vmem>>, %arg9: memref<1x64xf32, #tpu.memory_space<vmem>>, %arg10: memref<32x64xf32, #tpu.memory_space<vmem>>) attributes {dimension_semantics = [#tpu.dimension_semantics<parallel>], iteration_bounds = array<i64: 1>, scalar_prefetch = 0 : i64, scratch_operands = 0 : i64, tpu.core_type = #tpu.core_type<tc>, window_params = [{transform_indices = @transform_0, window_bounds = array<i64: 4, 32, 64>}, {transform_indices = @transform_1, window_bounds = array<i64: 32, 64>}, {pipeline_mode = #tpu.pipeline_mode<synchronous>, transform_indices = @transform_2, window_bounds = array<i64: 64, 64>}, {pipeline_mode = #tpu.pipeline_mode<synchronous>, transform_indices = @transform_3, window_bounds = array<i64: 64, 64>}, {pipeline_mode = #tpu.pipeline_mode<synchronous>, transform_indices = @transform_4, window_bounds = array<i64: 1, 64>}, {pipeline_mode = #tpu.pipeline_mode<synchronous>, transform_indices = @transform_5, window_bounds = array<i64: 1, 64>}, {pipeline_mode = #tpu.pipeline_mode<synchronous>, transform_indices = @transform_6, window_bounds = array<i64: 64, 64>}, {pipeline_mode = #tpu.pipeline_mode<synchronous>, transform_indices = @transform_7, window_bounds = array<i64: 1, 64>}, {pipeline_mode = #tpu.pipeline_mode<synchronous>, transform_indices = @transform_8, window_bounds = array<i64: 1, 64>}, {transform_indices = @transform_9, window_bounds = array<i64: 32, 64>}]} {
    %c0 = arith.constant 0 : index
    %c0_0 = arith.constant 0 : index
    %c0_1 = arith.constant 0 : index
    %0 = vector.load %arg1[%c0, %c0_0, %c0_1] : memref<4x32x64xbf16, #tpu.memory_space<vmem>>, vector<4x32x64xbf16>
    %c0_2 = arith.constant 0 : index
    %c0_3 = arith.constant 0 : index
    %1 = vector.load %arg2[%c0_2, %c0_3] : memref<32x64xbf16, #tpu.memory_space<vmem>>, vector<32x64xbf16>
    %c0_4 = arith.constant 0 : index
    %c0_5 = arith.constant 0 : index
    %2 = vector.load %arg3[%c0_4, %c0_5] : memref<64x64xbf16, #tpu.memory_space<vmem>>, vector<64x64xbf16>
    %c0_6 = arith.constant 0 : index
    %c0_7 = arith.constant 0 : index
    %3 = vector.load %arg4[%c0_6, %c0_7] : memref<64x64xbf16, #tpu.memory_space<vmem>>, vector<64x64xbf16>
    %c0_8 = arith.constant 0 : index
    %c0_9 = arith.constant 0 : index
    %4 = vector.load %arg5[%c0_8, %c0_9] : memref<1x64xf32, #tpu.memory_space<vmem>>, vector<1x64xf32>
    %c0_10 = arith.constant 0 : index
    %c0_11 = arith.constant 0 : index
    %5 = vector.load %arg6[%c0_10, %c0_11] : memref<1x64xf32, #tpu.memory_space<vmem>>, vector<1x64xf32>
    %6 = vector.shape_cast %1 : vector<32x64xbf16> to vector<1x32x64xbf16>
    %7 = vector.broadcast %6 : vector<1x32x64xbf16> to vector<4x32x64xbf16>
    %8 = arith.subf %0, %7 : vector<4x32x64xbf16>
    %9 = vector.shape_cast %8 : vector<4x32x64xbf16> to vector<128x64xbf16>
    %cst = arith.constant dense<0.000000e+00> : vector<128x64xf32>
    %10 = tpu.matmul %9, %2, %cst {dimension_numbers = #tpu.dot_dimension_numbers<[1], [0], [0], [1], [0, 0, 1, 1], [], []>} : vector<128x64xbf16>, vector<64x64xbf16>, vector<128x64xf32> -> vector<128x64xf32>
    %cst_12 = arith.constant dense<0.000000e+00> : vector<32x64xf32>
    %11 = tpu.matmul %1, %3, %cst_12 {dimension_numbers = #tpu.dot_dimension_numbers<[1], [0], [0], [1], [0, 0, 1, 1], [], []>} : vector<32x64xbf16>, vector<64x64xbf16>, vector<32x64xf32> -> vector<32x64xf32>
    %12 = vector.shape_cast %10 : vector<128x64xf32> to vector<4x32x64xf32>
    %13 = vector.shape_cast %11 : vector<32x64xf32> to vector<1x32x64xf32>
    %14 = vector.broadcast %13 : vector<1x32x64xf32> to vector<4x32x64xf32>
    %15 = arith.addf %12, %14 : vector<4x32x64xf32>
    %16 = vector.shape_cast %4 : vector<1x64xf32> to vector<1x1x64xf32>
    %17 = vector.broadcast %16 : vector<1x1x64xf32> to vector<4x32x64xf32>
    %18 = arith.mulf %15, %17 : vector<4x32x64xf32>
    %19 = vector.shape_cast %5 : vector<1x64xf32> to vector<1x1x64xf32>
    %20 = vector.broadcast %19 : vector<1x1x64xf32> to vector<4x32x64xf32>
    %21 = arith.addf %18, %20 : vector<4x32x64xf32>
    %cst_13 = arith.constant 2.000000e-01 : f32
    %22 = vector.broadcast %cst_13 : f32 to vector<4x32x64xf32>
    %23 = arith.mulf %22, %21 : vector<4x32x64xf32>
    %24 = arith.maximumf %21, %23 : vector<4x32x64xf32>
    %25 = vector.shape_cast %24 : vector<4x32x64xf32> to vector<128x64xf32>
    %c0_14 = arith.constant 0 : index
    %c0_15 = arith.constant 0 : index
    %26 = vector.load %arg7[%c0_14, %c0_15] : memref<64x64xbf16, #tpu.memory_space<vmem>>, vector<64x64xbf16>
    %c0_16 = arith.constant 0 : index
    %c0_17 = arith.constant 0 : index
    %27 = vector.load %arg8[%c0_16, %c0_17] : memref<1x64xf32, #tpu.memory_space<vmem>>, vector<1x64xf32>
    %c0_18 = arith.constant 0 : index
    %c0_19 = arith.constant 0 : index
    %28 = vector.load %arg9[%c0_18, %c0_19] : memref<1x64xf32, #tpu.memory_space<vmem>>, vector<1x64xf32>
    %29 = arith.truncf %25 : vector<128x64xf32> to vector<128x64xbf16>
    %cst_20 = arith.constant dense<0.000000e+00> : vector<128x64xf32>
    %30 = tpu.matmul %29, %26, %cst_20 {dimension_numbers = #tpu.dot_dimension_numbers<[1], [0], [0], [1], [0, 0, 1, 1], [], []>} : vector<128x64xbf16>, vector<64x64xbf16>, vector<128x64xf32> -> vector<128x64xf32>
    %31 = vector.broadcast %27 : vector<1x64xf32> to vector<128x64xf32>
    %32 = arith.mulf %30, %31 : vector<128x64xf32>
    %33 = vector.broadcast %28 : vector<1x64xf32> to vector<128x64xf32>
    %34 = arith.addf %32, %33 : vector<128x64xf32>
    %cst_21 = arith.constant 2.000000e-01 : f32
    %35 = vector.broadcast %cst_21 : f32 to vector<128x64xf32>
    %36 = arith.mulf %35, %34 : vector<128x64xf32>
    %37 = arith.maximumf %34, %36 : vector<128x64xf32>
    %38 = vector.shape_cast %37 : vector<128x64xf32> to vector<4x32x64xf32>
    %39 = vector.extract_strided_slice %38 {offsets = [0, 0, 0], sizes = [1, 32, 64], strides = [1, 1, 1]} : vector<4x32x64xf32> to vector<1x32x64xf32>
    %40 = vector.shape_cast %39 : vector<1x32x64xf32> to vector<32x64xf32>
    %41 = vector.extract_strided_slice %38 {offsets = [1, 0, 0], sizes = [1, 32, 64], strides = [1, 1, 1]} : vector<4x32x64xf32> to vector<1x32x64xf32>
    %42 = vector.shape_cast %41 : vector<1x32x64xf32> to vector<32x64xf32>
    %43 = arith.maximumf %40, %42 : vector<32x64xf32>
    %44 = vector.extract_strided_slice %38 {offsets = [2, 0, 0], sizes = [1, 32, 64], strides = [1, 1, 1]} : vector<4x32x64xf32> to vector<1x32x64xf32>
    %45 = vector.shape_cast %44 : vector<1x32x64xf32> to vector<32x64xf32>
    %46 = arith.maximumf %43, %45 : vector<32x64xf32>
    %47 = vector.extract_strided_slice %38 {offsets = [3, 0, 0], sizes = [1, 32, 64], strides = [1, 1, 1]} : vector<4x32x64xf32> to vector<1x32x64xf32>
    %48 = vector.shape_cast %47 : vector<1x32x64xf32> to vector<32x64xf32>
    %49 = arith.maximumf %46, %48 : vector<32x64xf32>
    %c0_22 = arith.constant 0 : index
    %c0_23 = arith.constant 0 : index
    %50 = vector.load %arg10[%c0_22, %c0_23] : memref<32x64xf32, #tpu.memory_space<vmem>>, vector<32x64xf32>
    tpu.vector_store %arg10[%c0_22, %c0_23], %49 {strides = array<i32>} : memref<32x64xf32, #tpu.memory_space<vmem>>, vector<32x64xf32>,
    return
  }
  func.func @transform_0(%arg0: i32) -> (i32, i32, i32) {
    %c0_i32 = arith.constant 0 : i32
    %c0_i32_0 = arith.constant 0 : i32
    %c0_i32_1 = arith.constant 0 : i32
    return %c0_i32, %arg0, %c0_i32_0 : i32, i32, i32
  }
  func.func @transform_1(%arg0: i32) -> (i32, i32) {
    %c0_i32 = arith.constant 0 : i32
    %c0_i32_0 = arith.constant 0 : i32
    return %arg0, %c0_i32 : i32, i32
  }
  func.func @transform_2(%arg0: i32) -> (i32, i32) {
    %c0_i32 = arith.constant 0 : i32
    %c0_i32_0 = arith.constant 0 : i32
    %c0_i32_1 = arith.constant 0 : i32
    return %c0_i32, %c0_i32_0 : i32, i32
  }
  func.func @transform_3(%arg0: i32) -> (i32, i32) {
    %c0_i32 = arith.constant 0 : i32
    %c0_i32_0 = arith.constant 0 : i32
    %c0_i32_1 = arith.constant 0 : i32
    return %c0_i32, %c0_i32_0 : i32, i32
  }
  func.func @transform_4(%arg0: i32) -> (i32, i32) {
    %c0_i32 = arith.constant 0 : i32
    %c0_i32_0 = arith.constant 0 : i32
    %c0_i32_1 = arith.constant 0 : i32
    return %c0_i32, %c0_i32_0 : i32, i32
  }
  func.func @transform_5(%arg0: i32) -> (i32, i32) {
    %c0_i32 = arith.constant 0 : i32
    %c0_i32_0 = arith.constant 0 : i32
    %c0_i32_1 = arith.constant 0 : i32
    return %c0_i32, %c0_i32_0 : i32, i32
  }
  func.func @transform_6(%arg0: i32) -> (i32, i32) {
    %c0_i32 = arith.constant 0 : i32
    %c0_i32_0 = arith.constant 0 : i32
    %c0_i32_1 = arith.constant 0 : i32
    return %c0_i32, %c0_i32_0 : i32, i32
  }
  func.func @transform_7(%arg0: i32) -> (i32, i32) {
    %c0_i32 = arith.constant 0 : i32
    %c0_i32_0 = arith.constant 0 : i32
    %c0_i32_1 = arith.constant 0 : i32
    return %c0_i32, %c0_i32_0 : i32, i32
  }
  func.func @transform_8(%arg0: i32) -> (i32, i32) {
    %c0_i32 = arith.constant 0 : i32
    %c0_i32_0 = arith.constant 0 : i32
    %c0_i32_1 = arith.constant 0 : i32
    return %c0_i32, %c0_i32_0 : i32, i32
  }
  func.func @transform_9(%arg0: i32) -> (i32, i32) {
    %c0_i32 = arith.constant 0 : i32
    %c0_i32_0 = arith.constant 0 : i32
    return %arg0, %c0_i32 : i32, i32
  }
}

module attributes {stable_mosaic.version = 11 : i64} {
  func.func @kernel(%arg0: i32, %arg1: memref<4x32x64xbf16, #tpu.memory_space<vmem>>, %arg2: memref<32x64xbf16, #tpu.memory_space<vmem>>, %arg3: memref<64x64xbf16, #tpu.memory_space<vmem>>, %arg4: memref<64x64xbf16, #tpu.memory_space<vmem>>, %arg5: memref<1x64xf32, #tpu.memory_space<vmem>>, %arg6: memref<1x64xf32, #tpu.memory_space<vmem>>, %arg7: memref<32x64xbf16, #tpu.memory_space<vmem>>) attributes {dimension_semantics = [#tpu.dimension_semantics<parallel>], iteration_bounds = array<i64: 1>, scalar_prefetch = 0 : i64, scratch_operands = 0 : i64, tpu.core_type = #tpu.core_type<tc>, window_params = [{transform_indices = @transform_0, window_bounds = array<i64: 4, 32, 64>}, {transform_indices = @transform_1, window_bounds = array<i64: 32, 64>}, {pipeline_mode = #tpu.pipeline_mode<synchronous>, transform_indices = @transform_2, window_bounds = array<i64: 64, 64>}, {pipeline_mode = #tpu.pipeline_mode<synchronous>, transform_indices = @transform_3, window_bounds = array<i64: 64, 64>}, {pipeline_mode = #tpu.pipeline_mode<synchronous>, transform_indices = @transform_4, window_bounds = array<i64: 1, 64>}, {pipeline_mode = #tpu.pipeline_mode<synchronous>, transform_indices = @transform_5, window_bounds = array<i64: 1, 64>}, {transform_indices = @transform_6, window_bounds = array<i64: 32, 64>}]} {
    %c0 = arith.constant 0 : index
    %c0_0 = arith.constant 0 : index
    %c0_1 = arith.constant 0 : index
    %0 = vector.load %arg1[%c0, %c0_0, %c0_1] : memref<4x32x64xbf16, #tpu.memory_space<vmem>>, vector<4x32x64xbf16>
    %c0_2 = arith.constant 0 : index
    %c0_3 = arith.constant 0 : index
    %1 = vector.load %arg2[%c0_2, %c0_3] : memref<32x64xbf16, #tpu.memory_space<vmem>>, vector<32x64xbf16>
    %c0_4 = arith.constant 0 : index
    %c0_5 = arith.constant 0 : index
    %2 = vector.load %arg3[%c0_4, %c0_5] : memref<64x64xbf16, #tpu.memory_space<vmem>>, vector<64x64xbf16>
    %c0_6 = arith.constant 0 : index
    %c0_7 = arith.constant 0 : index
    %3 = vector.load %arg4[%c0_6, %c0_7] : memref<64x64xbf16, #tpu.memory_space<vmem>>, vector<64x64xbf16>
    %c0_8 = arith.constant 0 : index
    %c0_9 = arith.constant 0 : index
    %4 = vector.load %arg5[%c0_8, %c0_9] : memref<1x64xf32, #tpu.memory_space<vmem>>, vector<1x64xf32>
    %c0_10 = arith.constant 0 : index
    %c0_11 = arith.constant 0 : index
    %5 = vector.load %arg6[%c0_10, %c0_11] : memref<1x64xf32, #tpu.memory_space<vmem>>, vector<1x64xf32>
    %6 = vector.shape_cast %1 : vector<32x64xbf16> to vector<1x32x64xbf16>
    %7 = vector.broadcast %6 : vector<1x32x64xbf16> to vector<4x32x64xbf16>
    %8 = arith.subf %0, %7 : vector<4x32x64xbf16>
    %9 = vector.shape_cast %8 : vector<4x32x64xbf16> to vector<128x64xbf16>
    %cst = arith.constant dense<0.000000e+00> : vector<128x64xf32>
    %10 = tpu.matmul %9, %2, %cst {dimension_numbers = #tpu.dot_dimension_numbers<[1], [0], [0], [1], [0, 0, 1, 1], [], []>} : vector<128x64xbf16>, vector<64x64xbf16>, vector<128x64xf32> -> vector<128x64xf32>
    %cst_12 = arith.constant dense<0.000000e+00> : vector<32x64xf32>
    %11 = tpu.matmul %1, %3, %cst_12 {dimension_numbers = #tpu.dot_dimension_numbers<[1], [0], [0], [1], [0, 0, 1, 1], [], []>} : vector<32x64xbf16>, vector<64x64xbf16>, vector<32x64xf32> -> vector<32x64xf32>
    %12 = vector.shape_cast %10 : vector<128x64xf32> to vector<4x32x64xf32>
    %13 = vector.shape_cast %11 : vector<32x64xf32> to vector<1x32x64xf32>
    %14 = vector.broadcast %13 : vector<1x32x64xf32> to vector<4x32x64xf32>
    %15 = arith.addf %12, %14 : vector<4x32x64xf32>
    %16 = vector.shape_cast %4 : vector<1x64xf32> to vector<1x1x64xf32>
    %17 = vector.broadcast %16 : vector<1x1x64xf32> to vector<4x32x64xf32>
    %18 = arith.mulf %15, %17 : vector<4x32x64xf32>
    %19 = vector.shape_cast %5 : vector<1x64xf32> to vector<1x1x64xf32>
    %20 = vector.broadcast %19 : vector<1x1x64xf32> to vector<4x32x64xf32>
    %21 = arith.addf %18, %20 : vector<4x32x64xf32>
    %cst_13 = arith.constant 2.000000e-01 : f32
    %22 = vector.broadcast %cst_13 : f32 to vector<4x32x64xf32>
    %23 = arith.mulf %22, %21 : vector<4x32x64xf32>
    %24 = arith.maximumf %21, %23 : vector<4x32x64xf32>
    %25 = vector.shape_cast %24 : vector<4x32x64xf32> to vector<128x64xf32>
    %26 = vector.shape_cast %25 : vector<128x64xf32> to vector<4x32x64xf32>
    %27 = vector.extract_strided_slice %26 {offsets = [0, 0, 0], sizes = [1, 32, 64], strides = [1, 1, 1]} : vector<4x32x64xf32> to vector<1x32x64xf32>
    %28 = vector.shape_cast %27 : vector<1x32x64xf32> to vector<32x64xf32>
    %29 = vector.extract_strided_slice %26 {offsets = [1, 0, 0], sizes = [1, 32, 64], strides = [1, 1, 1]} : vector<4x32x64xf32> to vector<1x32x64xf32>
    %30 = vector.shape_cast %29 : vector<1x32x64xf32> to vector<32x64xf32>
    %31 = arith.maximumf %28, %30 : vector<32x64xf32>
    %32 = vector.extract_strided_slice %26 {offsets = [2, 0, 0], sizes = [1, 32, 64], strides = [1, 1, 1]} : vector<4x32x64xf32> to vector<1x32x64xf32>
    %33 = vector.shape_cast %32 : vector<1x32x64xf32> to vector<32x64xf32>
    %34 = arith.maximumf %31, %33 : vector<32x64xf32>
    %35 = vector.extract_strided_slice %26 {offsets = [3, 0, 0], sizes = [1, 32, 64], strides = [1, 1, 1]} : vector<4x32x64xf32> to vector<1x32x64xf32>
    %36 = vector.shape_cast %35 : vector<1x32x64xf32> to vector<32x64xf32>
    %37 = arith.maximumf %34, %36 : vector<32x64xf32>
    %38 = arith.truncf %37 : vector<32x64xf32> to vector<32x64xbf16>
    %c0_14 = arith.constant 0 : index
    %c0_15 = arith.constant 0 : index
    %39 = vector.load %arg7[%c0_14, %c0_15] : memref<32x64xbf16, #tpu.memory_space<vmem>>, vector<32x64xbf16>
    tpu.vector_store %arg7[%c0_14, %c0_15], %38 {strides = array<i32>} : memref<32x64xbf16, #tpu.memory_space<vmem>>, vector<32x64xbf16>,
    return
  }
  func.func @transform_0(%arg0: i32) -> (i32, i32, i32) {
    %c0_i32 = arith.constant 0 : i32
    %c0_i32_0 = arith.constant 0 : i32
    %c0_i32_1 = arith.constant 0 : i32
    return %c0_i32, %arg0, %c0_i32_0 : i32, i32, i32
  }
  func.func @transform_1(%arg0: i32) -> (i32, i32) {
    %c0_i32 = arith.constant 0 : i32
    %c0_i32_0 = arith.constant 0 : i32
    return %arg0, %c0_i32 : i32, i32
  }
  func.func @transform_2(%arg0: i32) -> (i32, i32) {
    %c0_i32 = arith.constant 0 : i32
    %c0_i32_0 = arith.constant 0 : i32
    %c0_i32_1 = arith.constant 0 : i32
    return %c0_i32, %c0_i32_0 : i32, i32
  }
  func.func @transform_3(%arg0: i32) -> (i32, i32) {
    %c0_i32 = arith.constant 0 : i32
    %c0_i32_0 = arith.constant 0 : i32
    %c0_i32_1 = arith.constant 0 : i32
    return %c0_i32, %c0_i32_0 : i32, i32
  }
  func.func @transform_4(%arg0: i32) -> (i32, i32) {
    %c0_i32 = arith.constant 0 : i32
    %c0_i32_0 = arith.constant 0 : i32
    %c0_i32_1 = arith.constant 0 : i32
    return %c0_i32, %c0_i32_0 : i32, i32
  }
  func.func @transform_5(%arg0: i32) -> (i32, i32) {
    %c0_i32 = arith.constant 0 : i32
    %c0_i32_0 = arith.constant 0 : i32
    %c0_i32_1 = arith.constant 0 : i32
    return %c0_i32, %c0_i32_0 : i32, i32
  }
  func.func @transform_6(%arg0: i32) -> (i32, i32) {
    %c0_i32 = arith.constant 0 : i32
    %c0_i32_0 = arith.constant 0 : i32
    return %arg0, %c0_i32 : i32, i32
  }
}

module attributes {stable_mosaic.version = 11 : i64} {
  func.func @_conv6_kernel(%arg0: i32, %arg1: i32, %arg2: memref<1x16x192xbf16, #tpu.memory_space<vmem>>, %arg3: memref<192x1024xbf16, #tpu.memory_space<vmem>>, %arg4: memref<1x1024xf32, #tpu.memory_space<vmem>>, %arg5: memref<1x1024xf32, #tpu.memory_space<vmem>>, %arg6: memref<1x1x1024xf32, #tpu.memory_space<vmem>>) attributes {dimension_semantics = [#tpu.dimension_semantics<parallel>, #tpu.dimension_semantics<arbitrary>], iteration_bounds = array<i64: 2, 1>, scalar_prefetch = 0 : i64, scratch_operands = 0 : i64, tpu.core_type = #tpu.core_type<tc>, window_params = [{transform_indices = @transform_0, window_bounds = array<i64: 1, 16, 192>}, {pipeline_mode = #tpu.pipeline_mode<synchronous>, transform_indices = @transform_1, window_bounds = array<i64: 192, 1024>}, {pipeline_mode = #tpu.pipeline_mode<synchronous>, transform_indices = @transform_2, window_bounds = array<i64: 1, 1024>}, {pipeline_mode = #tpu.pipeline_mode<synchronous>, transform_indices = @transform_3, window_bounds = array<i64: 1, 1024>}, {transform_indices = @transform_4, window_bounds = array<i64: 1, 1, 1024>}]} {
    %c0_i32 = arith.constant 0 : i32
    %0 = arith.cmpi eq, %arg1, %c0_i32 : i32
    %1 = arith.extui %0 : i1 to i32
    %c0_i32_0 = arith.constant 0 : i32
    %2 = arith.cmpi ne, %1, %c0_i32_0 : i32
    scf.if %2 {
      %cst_17 = arith.constant 0xFF800000 : f32
      %24 = vector.broadcast %cst_17 : f32 to vector<1x1x1024xf32>
      %c0_18 = arith.constant 0 : index
      %c0_19 = arith.constant 0 : index
      %c0_20 = arith.constant 0 : index
      %25 = vector.load %arg6[%c0_18, %c0_19, %c0_20] : memref<1x1x1024xf32, #tpu.memory_space<vmem>>, vector<1x1x1024xf32>
      tpu.vector_store %arg6[%c0_18, %c0_19, %c0_20], %24 {strides = array<i32>} : memref<1x1x1024xf32, #tpu.memory_space<vmem>>, vector<1x1x1024xf32>,
    } else {
    }
    %c0 = arith.constant 0 : index
    %c0_1 = arith.constant 0 : index
    %c0_2 = arith.constant 0 : index
    %3 = vector.load %arg2[%c0, %c0_1, %c0_2] : memref<1x16x192xbf16, #tpu.memory_space<vmem>>, vector<1x16x192xbf16>
    %4 = vector.shape_cast %3 : vector<1x16x192xbf16> to vector<16x192xbf16>
    %c0_3 = arith.constant 0 : index
    %c0_4 = arith.constant 0 : index
    %5 = vector.load %arg3[%c0_3, %c0_4] : memref<192x1024xbf16, #tpu.memory_space<vmem>>, vector<192x1024xbf16>
    %cst = arith.constant dense<0.000000e+00> : vector<16x1024xf32>
    %6 = tpu.matmul %4, %5, %cst {dimension_numbers = #tpu.dot_dimension_numbers<[1], [0], [0], [1], [0, 0, 1, 1], [], []>} : vector<16x192xbf16>, vector<192x1024xbf16>, vector<16x1024xf32> -> vector<16x1024xf32>
    %c0_5 = arith.constant 0 : index
    %c0_6 = arith.constant 0 : index
    %7 = vector.load %arg4[%c0_5, %c0_6] : memref<1x1024xf32, #tpu.memory_space<vmem>>, vector<1x1024xf32>
    %8 = vector.broadcast %7 : vector<1x1024xf32> to vector<16x1024xf32>
    %9 = arith.mulf %6, %8 : vector<16x1024xf32>
    %c0_7 = arith.constant 0 : index
    %c0_8 = arith.constant 0 : index
    %10 = vector.load %arg5[%c0_7, %c0_8] : memref<1x1024xf32, #tpu.memory_space<vmem>>, vector<1x1024xf32>
    %11 = vector.broadcast %10 : vector<1x1024xf32> to vector<16x1024xf32>
    %12 = arith.addf %9, %11 : vector<16x1024xf32>
    %cst_9 = arith.constant 2.000000e-01 : f32
    %13 = vector.broadcast %cst_9 : f32 to vector<16x1024xf32>
    %14 = arith.mulf %13, %12 : vector<16x1024xf32>
    %15 = arith.maximumf %12, %14 : vector<16x1024xf32>
    %c0_10 = arith.constant 0 : index
    %c0_11 = arith.constant 0 : index
    %c0_12 = arith.constant 0 : index
    %16 = vector.load %arg6[%c0_10, %c0_11, %c0_12] : memref<1x1x1024xf32, #tpu.memory_space<vmem>>, vector<1x1x1024xf32>
    %17 = vector.shape_cast %16 : vector<1x1x1024xf32> to vector<1x1024xf32>
    %cst_13 = arith.constant dense<0xFF800000> : vector<1024xf32>
    %18 = vector.multi_reduction <maximumf>, %15, %cst_13 [0] : vector<16x1024xf32> to vector<1024xf32>
    %19 = vector.shape_cast %18 : vector<1024xf32> to vector<1x1024xf32>
    %20 = arith.maximumf %17, %19 : vector<1x1024xf32>
    %c0_14 = arith.constant 0 : index
    %c0_15 = arith.constant 0 : index
    %c0_16 = arith.constant 0 : index
    %21 = vector.load %arg6[%c0_14, %c0_15, %c0_16] : memref<1x1x1024xf32, #tpu.memory_space<vmem>>, vector<1x1x1024xf32>
    %22 = vector.shape_cast %21 : vector<1x1x1024xf32> to vector<1x1024xf32>
    %23 = vector.shape_cast %20 : vector<1x1024xf32> to vector<1x1x1024xf32>
    tpu.vector_store %arg6[%c0_14, %c0_15, %c0_16], %23 {strides = array<i32>} : memref<1x1x1024xf32, #tpu.memory_space<vmem>>, vector<1x1x1024xf32>,
    return
  }
  func.func @transform_0(%arg0: i32, %arg1: i32) -> (i32, i32, i32) {
    %c0_i32 = arith.constant 0 : i32
    %c0_i32_0 = arith.constant 0 : i32
    return %arg0, %arg1, %c0_i32 : i32, i32, i32
  }
  func.func @transform_1(%arg0: i32, %arg1: i32) -> (i32, i32) {
    %c0_i32 = arith.constant 0 : i32
    %c0_i32_0 = arith.constant 0 : i32
    %c0_i32_1 = arith.constant 0 : i32
    return %c0_i32, %c0_i32_0 : i32, i32
  }
  func.func @transform_2(%arg0: i32, %arg1: i32) -> (i32, i32) {
    %c0_i32 = arith.constant 0 : i32
    %c0_i32_0 = arith.constant 0 : i32
    %c0_i32_1 = arith.constant 0 : i32
    return %c0_i32, %c0_i32_0 : i32, i32
  }
  func.func @transform_3(%arg0: i32, %arg1: i32) -> (i32, i32) {
    %c0_i32 = arith.constant 0 : i32
    %c0_i32_0 = arith.constant 0 : i32
    %c0_i32_1 = arith.constant 0 : i32
    return %c0_i32, %c0_i32_0 : i32, i32
  }
  func.func @transform_4(%arg0: i32, %arg1: i32) -> (i32, i32, i32) {
    %c0_i32 = arith.constant 0 : i32
    %c0_i32_0 = arith.constant 0 : i32
    %c0_i32_1 = arith.constant 0 : i32
    return %arg0, %c0_i32, %c0_i32_0 : i32, i32, i32
  }
}

module attributes {stable_mosaic.version = 11 : i64} {
  func.func @_head_kernel(%arg0: i32, %arg1: i32, %arg2: memref<1x1x512xf32, #tpu.memory_space<vmem>>, %arg3: memref<1x16x192xbf16, #tpu.memory_space<vmem>>, %arg4: memref<192x512xbf16, #tpu.memory_space<vmem>>, %arg5: memref<1x512xf32, #tpu.memory_space<vmem>>, %arg6: memref<1x512xf32, #tpu.memory_space<vmem>>, %arg7: memref<512x256xbf16, #tpu.memory_space<vmem>>, %arg8: memref<1x256xf32, #tpu.memory_space<vmem>>, %arg9: memref<1x256xf32, #tpu.memory_space<vmem>>, %arg10: memref<256x16xf32, #tpu.memory_space<vmem>>, %arg11: memref<1x16x16xf32, #tpu.memory_space<vmem>>) attributes {dimension_semantics = [#tpu.dimension_semantics<parallel>, #tpu.dimension_semantics<parallel>], iteration_bounds = array<i64: 2, 1>, scalar_prefetch = 0 : i64, scratch_operands = 0 : i64, tpu.core_type = #tpu.core_type<tc>, window_params = [{transform_indices = @transform_0, window_bounds = array<i64: 1, 1, 512>}, {transform_indices = @transform_1, window_bounds = array<i64: 1, 16, 192>}, {pipeline_mode = #tpu.pipeline_mode<synchronous>, transform_indices = @transform_2, window_bounds = array<i64: 192, 512>}, {pipeline_mode = #tpu.pipeline_mode<synchronous>, transform_indices = @transform_3, window_bounds = array<i64: 1, 512>}, {pipeline_mode = #tpu.pipeline_mode<synchronous>, transform_indices = @transform_4, window_bounds = array<i64: 1, 512>}, {pipeline_mode = #tpu.pipeline_mode<synchronous>, transform_indices = @transform_5, window_bounds = array<i64: 512, 256>}, {pipeline_mode = #tpu.pipeline_mode<synchronous>, transform_indices = @transform_6, window_bounds = array<i64: 1, 256>}, {pipeline_mode = #tpu.pipeline_mode<synchronous>, transform_indices = @transform_7, window_bounds = array<i64: 1, 256>}, {pipeline_mode = #tpu.pipeline_mode<synchronous>, transform_indices = @transform_8, window_bounds = array<i64: 256, 16>}, {transform_indices = @transform_9, window_bounds = array<i64: 1, 16, 16>}]} {
    %c0 = arith.constant 0 : index
    %c0_0 = arith.constant 0 : index
    %c0_1 = arith.constant 0 : index
    %0 = vector.load %arg3[%c0, %c0_0, %c0_1] : memref<1x16x192xbf16, #tpu.memory_space<vmem>>, vector<1x16x192xbf16>
    %1 = vector.shape_cast %0 : vector<1x16x192xbf16> to vector<16x192xbf16>
    %c0_2 = arith.constant 0 : index
    %c0_3 = arith.constant 0 : index
    %2 = vector.load %arg4[%c0_2, %c0_3] : memref<192x512xbf16, #tpu.memory_space<vmem>>, vector<192x512xbf16>
    %cst = arith.constant dense<0.000000e+00> : vector<16x512xf32>
    %3 = tpu.matmul %1, %2, %cst {dimension_numbers = #tpu.dot_dimension_numbers<[1], [0], [0], [1], [0, 0, 1, 1], [], []>} : vector<16x192xbf16>, vector<192x512xbf16>, vector<16x512xf32> -> vector<16x512xf32>
    %c0_4 = arith.constant 0 : index
    %c0_5 = arith.constant 0 : index
    %c0_6 = arith.constant 0 : index
    %4 = vector.load %arg2[%c0_4, %c0_5, %c0_6] : memref<1x1x512xf32, #tpu.memory_space<vmem>>, vector<1x1x512xf32>
    %5 = vector.shape_cast %4 : vector<1x1x512xf32> to vector<1x512xf32>
    %6 = vector.broadcast %5 : vector<1x512xf32> to vector<16x512xf32>
    %7 = arith.addf %3, %6 : vector<16x512xf32>
    %c0_7 = arith.constant 0 : index
    %c0_8 = arith.constant 0 : index
    %8 = vector.load %arg5[%c0_7, %c0_8] : memref<1x512xf32, #tpu.memory_space<vmem>>, vector<1x512xf32>
    %9 = vector.broadcast %8 : vector<1x512xf32> to vector<16x512xf32>
    %10 = arith.mulf %7, %9 : vector<16x512xf32>
    %c0_9 = arith.constant 0 : index
    %c0_10 = arith.constant 0 : index
    %11 = vector.load %arg6[%c0_9, %c0_10] : memref<1x512xf32, #tpu.memory_space<vmem>>, vector<1x512xf32>
    %12 = vector.broadcast %11 : vector<1x512xf32> to vector<16x512xf32>
    %13 = arith.addf %10, %12 : vector<16x512xf32>
    %cst_11 = arith.constant 2.000000e-01 : f32
    %14 = vector.broadcast %cst_11 : f32 to vector<16x512xf32>
    %15 = arith.mulf %14, %13 : vector<16x512xf32>
    %16 = arith.maximumf %13, %15 : vector<16x512xf32>
    %17 = arith.truncf %16 : vector<16x512xf32> to vector<16x512xbf16>
    %c0_12 = arith.constant 0 : index
    %c0_13 = arith.constant 0 : index
    %18 = vector.load %arg7[%c0_12, %c0_13] : memref<512x256xbf16, #tpu.memory_space<vmem>>, vector<512x256xbf16>
    %cst_14 = arith.constant dense<0.000000e+00> : vector<16x256xf32>
    %19 = tpu.matmul %17, %18, %cst_14 {dimension_numbers = #tpu.dot_dimension_numbers<[1], [0], [0], [1], [0, 0, 1, 1], [], []>} : vector<16x512xbf16>, vector<512x256xbf16>, vector<16x256xf32> -> vector<16x256xf32>
    %c0_15 = arith.constant 0 : index
    %c0_16 = arith.constant 0 : index
    %20 = vector.load %arg8[%c0_15, %c0_16] : memref<1x256xf32, #tpu.memory_space<vmem>>, vector<1x256xf32>
    %21 = vector.broadcast %20 : vector<1x256xf32> to vector<16x256xf32>
    %22 = arith.mulf %19, %21 : vector<16x256xf32>
    %c0_17 = arith.constant 0 : index
    %c0_18 = arith.constant 0 : index
    %23 = vector.load %arg9[%c0_17, %c0_18] : memref<1x256xf32, #tpu.memory_space<vmem>>, vector<1x256xf32>
    %24 = vector.broadcast %23 : vector<1x256xf32> to vector<16x256xf32>
    %25 = arith.addf %22, %24 : vector<16x256xf32>
    %cst_19 = arith.constant 2.000000e-01 : f32
    %26 = vector.broadcast %cst_19 : f32 to vector<16x256xf32>
    %27 = arith.mulf %26, %25 : vector<16x256xf32>
    %28 = arith.maximumf %25, %27 : vector<16x256xf32>
    %c0_20 = arith.constant 0 : index
    %c0_21 = arith.constant 0 : index
    %29 = vector.load %arg10[%c0_20, %c0_21] : memref<256x16xf32, #tpu.memory_space<vmem>>, vector<256x16xf32>
    %cst_22 = arith.constant dense<0.000000e+00> : vector<16x16xf32>
    %30 = tpu.matmul %28, %29, %cst_22 {dimension_numbers = #tpu.dot_dimension_numbers<[1], [0], [0], [1], [0, 0, 1, 1], [], []>} : vector<16x256xf32>, vector<256x16xf32>, vector<16x16xf32> -> vector<16x16xf32>
    %c0_23 = arith.constant 0 : index
    %c0_24 = arith.constant 0 : index
    %c0_25 = arith.constant 0 : index
    %31 = vector.load %arg11[%c0_23, %c0_24, %c0_25] : memref<1x16x16xf32, #tpu.memory_space<vmem>>, vector<1x16x16xf32>
    %32 = vector.shape_cast %31 : vector<1x16x16xf32> to vector<16x16xf32>
    %33 = vector.shape_cast %30 : vector<16x16xf32> to vector<1x16x16xf32>
    tpu.vector_store %arg11[%c0_23, %c0_24, %c0_25], %33 {strides = array<i32>} : memref<1x16x16xf32, #tpu.memory_space<vmem>>, vector<1x16x16xf32>,
    return
  }
  func.func @transform_0(%arg0: i32, %arg1: i32) -> (i32, i32, i32) {
    %c0_i32 = arith.constant 0 : i32
    %c0_i32_0 = arith.constant 0 : i32
    %c0_i32_1 = arith.constant 0 : i32
    return %arg0, %c0_i32, %c0_i32_0 : i32, i32, i32
  }
  func.func @transform_1(%arg0: i32, %arg1: i32) -> (i32, i32, i32) {
    %c0_i32 = arith.constant 0 : i32
    %c0_i32_0 = arith.constant 0 : i32
    return %arg0, %arg1, %c0_i32 : i32, i32, i32
  }
  func.func @transform_2(%arg0: i32, %arg1: i32) -> (i32, i32) {
    %c0_i32 = arith.constant 0 : i32
    %c0_i32_0 = arith.constant 0 : i32
    %c0_i32_1 = arith.constant 0 : i32
    return %c0_i32, %c0_i32_0 : i32, i32
  }
  func.func @transform_3(%arg0: i32, %arg1: i32) -> (i32, i32) {
    %c0_i32 = arith.constant 0 : i32
    %c0_i32_0 = arith.constant 0 : i32
    %c0_i32_1 = arith.constant 0 : i32
    return %c0_i32, %c0_i32_0 : i32, i32
  }
  func.func @transform_4(%arg0: i32, %arg1: i32) -> (i32, i32) {
    %c0_i32 = arith.constant 0 : i32
    %c0_i32_0 = arith.constant 0 : i32
    %c0_i32_1 = arith.constant 0 : i32
    return %c0_i32, %c0_i32_0 : i32, i32
  }
  func.func @transform_5(%arg0: i32, %arg1: i32) -> (i32, i32) {
    %c0_i32 = arith.constant 0 : i32
    %c0_i32_0 = arith.constant 0 : i32
    %c0_i32_1 = arith.constant 0 : i32
    return %c0_i32, %c0_i32_0 : i32, i32
  }
  func.func @transform_6(%arg0: i32, %arg1: i32) -> (i32, i32) {
    %c0_i32 = arith.constant 0 : i32
    %c0_i32_0 = arith.constant 0 : i32
    %c0_i32_1 = arith.constant 0 : i32
    return %c0_i32, %c0_i32_0 : i32, i32
  }
  func.func @transform_7(%arg0: i32, %arg1: i32) -> (i32, i32) {
    %c0_i32 = arith.constant 0 : i32
    %c0_i32_0 = arith.constant 0 : i32
    %c0_i32_1 = arith.constant 0 : i32
    return %c0_i32, %c0_i32_0 : i32, i32
  }
  func.func @transform_8(%arg0: i32, %arg1: i32) -> (i32, i32) {
    %c0_i32 = arith.constant 0 : i32
    %c0_i32_0 = arith.constant 0 : i32
    %c0_i32_1 = arith.constant 0 : i32
    return %c0_i32, %c0_i32_0 : i32, i32
  }
  func.func @transform_9(%arg0: i32, %arg1: i32) -> (i32, i32, i32) {
    %c0_i32 = arith.constant 0 : i32
    %c0_i32_0 = arith.constant 0 : i32
    return %arg0, %arg1, %c0_i32 : i32, i32, i32
  }
}

</mosaic_0001>

<bundles_post_ra>
// kernel: dgcnn_forward.9
= control target key start
LH: loop header
LB: loop body
LE: loop exit
PB: predicated region body
PF: predicated region fallthrough
CT: control target
= control target key end

     0   :  { %14 = vsyncpa [#allocation3], 0  ;;  %s1216_s0 = inlined_call_operand.vmem [shape: bf16[4,32,9], index: 0, kind: input, shape index: {}]   ;;  %s1217_s1 = inlined_call_operand.vmem [shape: bf16[32,9], index: 1, kind: input, shape index: {}]   ;;  %s1218_s2 = inlined_call_operand.vmem [shape: bf16[9,64], index: 2, kind: input, shape index: {}]   ;;  %s1219_s3 = inlined_call_operand.vmem [shape: bf16[9,64], index: 3, kind: input, shape index: {}]   ;;  %s1220_s4 = inlined_call_operand.hbm [shape: f32[1,64], index: 4, kind: input, shape index: {}]   ;;  %s1221_s5 = inlined_call_operand.hbm [shape: f32[1,64], index: 5, kind: input, shape index: {}]   ;;  %s1222_s6 = inlined_call_operand.vmem [shape: bf16[64,64], index: 6, kind: input, shape index: {}]   ;;  %s1223_s7 = inlined_call_operand.hbm [shape: f32[1,64], index: 7, kind: input, shape index: {}]   ;;  %s1224_s8 = inlined_call_operand.hbm [shape: f32[1,64], index: 8, kind: input, shape index: {}]   ;;  %s1225_s9 = inlined_call_operand.vmem [shape: f32[32,64], index: 9, kind: output, shape index: {}]  }
   0x1   :  { %15 = vsyncpa [#allocation5], 0 }
   0x2   :  { %16 = vsyncpa [#allocation8], 0  ;;  %s941_s30 = smov [#allocation4]   ;;  %s942_s11 = smov [#allocation2]  }
   0x3   :  { %s41_s10 = sshll.u32 %s941_s30, 4  ;;  %s31_s12 = sshll.u32 %s942_s11, 4  ;;  %s42_s10 = int_to_ptr.vmem [resolvable:$true] %s41_s10  ;;  %s32_s12 = int_to_ptr.vmem [resolvable:$true] %s31_s12 }
   0x4   :  { %s863_s13 = scalar_lea.vmem %s42_s10, 16  ;;  %s867_s14 = scalar_lea.vmem %s42_s10, 32 }
   0x5   :  { %p864_p0 = scmp.ne.s32.totalorder %s42_s10, %s863_s13  ;;  %p868_p1 = scmp.lt.s32.totalorder %s42_s10, %s42_s10 }
   0x6   :  { %p869_p2 = scmp.lt.s32.totalorder %s867_s14, %s863_s13 }
   0x8   :  { %p870_p3 = por %p869_p2, %p868_p1 }
   0xa   :  { %p871_p4 = pnand %p870_p3, %p864_p0 }
   0xc   :  { %874 = shalt.err (!%p871_p4)
}
   0xd   :  { %44 = dma.hbm_to_vmem [thread:$0]  %s1221_s5, 16, %s42_s10, [#allocation5]  }
   0xe   :  { %s883_s17 = scalar_lea.vmem %s32_s12, 16  ;;  %s887_s18 = scalar_lea.vmem %s32_s12, 32 }
   0xf   :  { %p884_p5 = scmp.ne.s32.totalorder %s32_s12, %s883_s17  ;;  %p888_p6 = scmp.lt.s32.totalorder %s32_s12, %s32_s12 }
  0x10   :  { %p889_p7 = scmp.lt.s32.totalorder %s887_s18, %s883_s17 }
  0x12   :  { %p890_p8 = por %p889_p7, %p888_p6 }
  0x14   :  { %p891_p9 = pnand %p890_p8, %p884_p5 }
  0x16   :  { %894 = shalt.err (!%p891_p9)
}
  0x17   :  { %34 = dma.hbm_to_vmem [thread:$0]  %s1220_s4, 16, %s32_s12, [#allocation3]  }
  0x18   :  { %s943_s21 = smov [#allocation6]   ;;  %s944_s23 = smov [#allocation7]  }
  0x19   :  { %s53_s22 = sshll.u32 %s943_s21, 4  ;;  %s63_s24 = sshll.u32 %s944_s23, 4  ;;  %s54_s22 = int_to_ptr.vmem [resolvable:$true] %s53_s22  ;;  %s64_s24 = int_to_ptr.vmem [resolvable:$true] %s63_s24 }
  0x1a   :  { %s903_s25 = scalar_lea.vmem %s54_s22, 16  ;;  %s907_s5 = scalar_lea.vmem %s54_s22, 32 }
  0x1b   :  { %p904_p10 = scmp.ne.s32.totalorder %s54_s22, %s903_s25  ;;  %p908_p11 = scmp.lt.s32.totalorder %s54_s22, %s54_s22 }
  0x1c   :  { %p909_p12 = scmp.lt.s32.totalorder %s907_s5, %s903_s25 }
  0x1e   :  { %p910_p13 = por %p909_p12, %p908_p11 }
  0x20   :  { %p911_p0 = pnand %p910_p13, %p904_p10 }
  0x22   :  { %914 = shalt.err (!%p911_p0)
}
  0x23   :  { %56 = dma.hbm_to_vmem [thread:$0]  %s1223_s7, 16, %s54_s22, [#allocation5]  }
  0x24   :  { %s923_s28 = scalar_lea.vmem %s64_s24, 16  ;;  %s927_s4 = scalar_lea.vmem %s64_s24, 32 }
  0x25   :  { %p924_p1 = scmp.ne.s32.totalorder %s64_s24, %s923_s28  ;;  %p928_p2 = scmp.lt.s32.totalorder %s64_s24, %s64_s24 }
  0x26   :  { %p929_p3 = scmp.lt.s32.totalorder %s927_s4, %s923_s28 }
  0x28   :  { %p930_p4 = por %p929_p3, %p928_p2 }
  0x2a   :  { %p931_p5 = pnand %p930_p4, %p924_p1 }
  0x2c   :  { %934 = shalt.err (!%p931_p5)
}
  0x2d   :  { %66 = dma.hbm_to_vmem [thread:$0]  %s1224_s8, 16, %s64_s24, [#allocation8]  }
  0x2e   :  { %935 = dma.done.wait [#allocation3], 16  }
  0x2f   :  { %936 = vsyncadd [#allocation3], 4294967280 }
  0x30   :  { %937 = dma.done.wait [#allocation5], 32  }
  0x31   :  { %938 = vsyncadd [#allocation5], 4294967264 }
  0x32   :  { %939 = dma.done.wait [#allocation8], 16  }
  0x33   :  { %940 = vsyncadd [#allocation8], 4294967280  ;;  %vm192_vm0 = vcmask 1043456   ;;  %vm193_vm1 = vcmask 1044480   ;;  %v945_v0 = vmov 65535   ;;  %vm167_vm2 = vcmask 72704  }
  0x34   :  { %v194_v1 = vsel %vm192_vm0, 4294967295, %v945_v0  ;;  %v847_v3 = vld [vmem:[%s1218_s2] sm:$0x1f]   ;;  %v82_v12 = vld [vmem:[%s1216_s0 + $0x8] sm:$0xf]  ;;  %v851_v53 = vld [vmem:[%s1222_s6 + $0x18] sm:$0xff]  }
  0x35   :  { %v195_v2 = vsel %vm193_vm1, %v194_v1, 0  ;;  %v848_v4 = vld [vmem:[%s1219_s3] sm:$0x1f]   ;;  %v83_v13 = vld [vmem:[%s1216_s0 + $0xc] sm:$0xf]  ;;  %v852_v54 = vld [vmem:[%s1222_s6 + $0x10] sm:$0xff]  }
  0x36   :  { %v197_v5 = vand.u32 %v847_v3, %v195_v2  ;;  %v80_v6 = vld [vmem:[%s1216_s0] sm:$0xf]  ;;  %v81_v7 = vld [vmem:[%s1216_s0 + $0x4] sm:$0xf]  ;;  %v318_v9 = vand.u32 %v848_v4, %v195_v2  ;;  %v98_v16 = vld [vmem:[%s1217_s1 + $0x8] sm:$0xf] }
  0x37   :  { %v96_v8 = vld [vmem:[%s1217_s1] sm:$0xf]  ;;  %v97_v10 = vld [vmem:[%s1217_s1 + $0x4] sm:$0xf]  ;;  %v99_v17 = vld [vmem:[%s1217_s1 + $0xc] sm:$0xf]  ;;  %v108_v19 = vsub.bf16 %v82_v12, %v98_v16 }
  0x38   :  { %v106_v11 = vsub.bf16 %v80_v6, %v96_v8  ;;  %786 = vmatprep.subr.bf16.mxu0 %v197_v5  ;;  %v107_v14 = vsub.bf16 %v81_v7, %v97_v10  ;;  %v741_v15 = vcombine.low %v96_v8, %v97_v10  ;;  %v84_v18 = vld [vmem:[%s1216_s0 + $0x10] sm:$0xf]  ;;  %804 = vmatprep.subr.bf16.mxu1 %v318_v9  ;;  %v85_v22 = vld [vmem:[%s1216_s0 + $0x14] sm:$0xf]  ;;  %v86_v26 = vld [vmem:[%s1216_s0 + $0x18] sm:$0xf] }
  0x39   :  { %787 = vmatpush3.bf16.msra.mxu0 %v197_v5  ;;  %v109_v20 = vsub.bf16 %v83_v13, %v99_v17  ;;  %v742_v21 = vcombine.low %v98_v16, %v99_v17  ;;  %805 = vmatpush3.bf16.msra.mxu1 %v318_v9  ;;  %v110_v24 = vsub.bf16 %v84_v18, %v96_v8  ;;  %v87_v27 = vld [vmem:[%s1216_s0 + $0x1c] sm:$0xf]  ;;  %v88_v29 = vld [vmem:[%s1216_s0 + $0x20] sm:$0xf]  ;;  %v89_v30 = vld [vmem:[%s1216_s0 + $0x24] sm:$0xf] }
  0x3a   :  { %v724_v23 = vcombine.low %v106_v11, %v107_v14  ;;  %806 = vmatprep.mubr.msk.bf16.mxu1 %vm167_vm2, %v741_v15  ;;  %v111_v25 = vsub.bf16 %v85_v22, %v97_v10  ;;  %v112_v32 = vsub.bf16 %v86_v26, %v98_v16  ;;  %v113_v33 = vsub.bf16 %v87_v27, %v99_v17  ;;  %v90_v38 = vld [vmem:[%s1216_s0 + $0x28] sm:$0xf]  ;;  %v91_v39 = vld [vmem:[%s1216_s0 + $0x2c] sm:$0xf]  ;;  %v92_v40 = vld [vmem:[%s1216_s0 + $0x30] sm:$0xf] }
  0x3b   :  { %v725_v28 = vcombine.low %v108_v19, %v109_v20  ;;  %v114_v34 = vsub.bf16 %v88_v29, %v96_v8  ;;  %v115_v35 = vsub.bf16 %v89_v30, %v97_v10  ;;  %v93_v41 = vld [vmem:[%s1216_s0 + $0x34] sm:$0xf]  ;;  %v116_v42 = vsub.bf16 %v90_v38, %v98_v16  ;;  %v94_v48 = vld [vmem:[%s1216_s0 + $0x38] sm:$0xf]  ;;  %v95_v49 = vld [vmem:[%s1216_s0 + $0x3c] sm:$0xf]  ;;  %810 = vmatprep.subr.bf16.mxu0 %v851_v53 }
  0x3c   :  { %788 = vmatprep.mubr.msk.bf16.mxu0 %vm167_vm2, %v724_v23  ;;  %v726_v31 = vcombine.low %v110_v24, %v111_v25  ;;  %807 = vmatmul.mubr.msk.bf16.vlgmr.msra.gmra.mxu1 %vm167_vm2, %v742_v21  ;;  %v727_v36 = vcombine.low %v112_v32, %v113_v33  ;;  %v117_v43 = vsub.bf16 %v91_v39, %v99_v17  ;;  %v853_v55 = vld [vmem:[%s1222_s6 + $0x8] sm:$0xff]   ;;  %v854_v56 = vld [vmem:[%s1222_s6] sm:$0xff]   ;;  %vm503_vm3 = vcmask 523264  }
  0x3d   :  { %789 = vmatmul.mubr.msk.bf16.vlgmr.msra.gmra.mxu0 %vm167_vm2, %v725_v28  ;;  %v728_v37 = vcombine.low %v114_v34, %v115_v35  ;;  %v118_v44 = vsub.bf16 %v92_v40, %v96_v8  ;;  %v119_v45 = vsub.bf16 %v93_v41, %v97_v10  ;;  %v120_v50 = vsub.bf16 %v94_v48, %v98_v16  ;;  %v1099_v60 = vld [vmem:[#allocation2] ss:$0 sm:$0xff]  ;;  %v1109_v5 = vld [vmem:[#allocation4] ss:$0 sm:$0xff] }
  0x3e   :  { %792 = vmatprep.mubr.msk.bf16.mxu0 %vm167_vm2, %v726_v31  ;;  %v729_v46 = vcombine.low %v116_v42, %v117_v43  ;;  %v121_v51 = vsub.bf16 %v95_v49, %v99_v17  ;;  %834 = vmatprep.subr.bf16.mxu1 %v851_v53 }
  0x3f   :  { %v730_v47 = vcombine.low %v118_v44, %v119_v45  ;;  %811 = vmatpush3.bf16.msra.mxu0 %v851_v53  ;;  %838 = vmatpush3.bf16.msra.mxu1 %v851_v53 }
  0x40   :  { %v731_v52 = vcombine.low %v120_v50, %v121_v51  ;;  %812 = vmatprep.subr.bf16.mxu0 %v852_v54  ;;  %835 = vmatprep.subr.bf16.mxu1 %v852_v54 }
  0x43   :  { %813 = vmatpush3.bf16.msra.mxu0 %v852_v54  ;;  %839 = vmatpush3.bf16.msra.mxu1 %v852_v54 }
  0x44   :  { %814 = vmatprep.subr.bf16.mxu0 %v853_v55  ;;  %836 = vmatprep.subr.bf16.mxu1 %v853_v55 }
  0x45   :  { %793 = vmatmul.mubr.msk.bf16.gmra.mxu0 %vm167_vm2, %v727_v36 }
  0x46   :  { %796 = vmatprep.mubr.msk.bf16.mxu0 %vm167_vm2, %v728_v37 }
  0x47   :  { %815 = vmatpush3.bf16.msra.mxu0 %v853_v55  ;;  %840 = vmatpush3.bf16.msra.mxu1 %v853_v55 }
  0x48   :  { %816 = vmatprep.subr.bf16.mxu0 %v854_v56  ;;  %837 = vmatprep.subr.bf16.mxu1 %v854_v56 }
  0x4b   :  { %817 = vmatpush3.bf16.msra.mxu0 %v854_v56  ;;  %841 = vmatpush3.bf16.msra.mxu1 %v854_v56 }
  0x4d   :  { %797 = vmatmul.mubr.msk.bf16.gmra.mxu0 %vm167_vm2, %v729_v46 }
  0x4e   :  { %800 = vmatprep.mubr.msk.bf16.mxu0 %vm167_vm2, %v730_v47 }
  0x55   :  { %801 = vmatmul.mubr.msk.bf16.gmra.mxu0 %vm167_vm2, %v731_v52 }
  0xfc   :  { %v1096_v58 = vpop.f32.mrf.mxu1 }
  0xfd   :  { %v790_v57 = vpop.f32.mrf.mxu0 }
  0xfe   :  { %v371_v59 = vadd.f32 %v1096_v58, %v790_v57  ;;  %v1101_v62 = vpop.f32.mrf.mxu1 }
  0xff   :  { %v233_v61 = vpop.f32.mrf.mxu0 }
 0x100   :  { %v369_v63 = vadd.f32 %v1101_v62, %v233_v61  ;;  %v1104_v1 = vpop.f32.mrf.mxu1  ;;  %v393_v2 = vmul.f32 %v1099_v60, %v371_v59 }
 0x101   :  { %v791_v0 = vpop.f32.mrf.mxu0 }
 0x102   :  { %v391_v3 = vmul.f32 %v1099_v60, %v369_v63  ;;  %v372_v4 = vadd.f32 %v1104_v1, %v791_v0  ;;  %v1111_v7 = vpop.f32.mrf.mxu1  ;;  %v415_v12 = vadd.f32 %v1109_v5, %v393_v2 }
 0x103   :  { %v236_v6 = vpop.f32.mrf.mxu0 }
 0x104   :  { %v394_v8 = vmul.f32 %v1099_v60, %v372_v4  ;;  %v370_v9 = vadd.f32 %v1111_v7, %v236_v6  ;;  %v413_v10 = vadd.f32 %v1109_v5, %v391_v3  ;;  %v431_v22 = vmul.f32 0.2, %v415_v12 }
 0x105   :  { %v794_v11 = vpop.f32.mrf.mxu0 }
 0x106   :  { %v416_v13 = vadd.f32 %v1109_v5, %v394_v8  ;;  %v392_v14 = vmul.f32 %v1099_v60, %v370_v9  ;;  %v375_v15 = vadd.f32 %v1096_v58, %v794_v11  ;;  %v429_v21 = vmul.f32 0.2, %v413_v10 }
 0x107   :  { %v249_v16 = vpop.f32.mrf.mxu0  ;;  %v447_v35 = vmax.f32 %v415_v12, %v431_v22 }
 0x108   :  { %v432_v17 = vmul.f32 0.2, %v416_v13  ;;  %v414_v18 = vadd.f32 %v1109_v5, %v392_v14  ;;  %v373_v19 = vadd.f32 %v1101_v62, %v249_v16  ;;  %v397_v23 = vmul.f32 %v1099_v60, %v375_v15 }
 0x109   :  { %v795_v20 = vpop.f32.mrf.mxu0  ;;  %v445_v33 = vmax.f32 %v413_v10, %v429_v21 }
 0x10a   :  { %v395_v24 = vmul.f32 %v1099_v60, %v373_v19  ;;  %v376_v25 = vadd.f32 %v1104_v1, %v795_v20  ;;  %v430_v27 = vmul.f32 0.2, %v414_v18  ;;  %v448_v28 = vmax.f32 %v416_v13, %v432_v17 }
 0x10b   :  { %v252_v26 = vpop.f32.mrf.mxu0  ;;  %v419_v36 = vadd.f32 %v1109_v5, %v397_v23 }
 0x10c   :  { %v398_v29 = vmul.f32 %v1099_v60, %v376_v25  ;;  %v417_v30 = vadd.f32 %v1109_v5, %v395_v24  ;;  %v374_v31 = vadd.f32 %v1111_v7, %v252_v26  ;;  %v446_v34 = vmax.f32 %v414_v18, %v430_v27 }
 0x10d   :  { %v798_v32 = vpop.f32.mrf.mxu0  ;;  %v472_v42 = vpack.c.bf16 %v448_v28, %v447_v35  ;;  %v435_v48 = vmul.f32 0.2, %v419_v36 }
 0x10e   :  { %v420_v37 = vadd.f32 %v1109_v5, %v398_v29  ;;  %v379_v38 = vadd.f32 %v1096_v58, %v798_v32  ;;  %v396_v39 = vmul.f32 %v1099_v60, %v374_v31  ;;  %v471_v41 = vpack.c.bf16 %v446_v34, %v445_v33 }
 0x10f   :  { %v265_v40 = vpop.f32.mrf.mxu0  ;;  %v433_v45 = vmul.f32 0.2, %v417_v30  ;;  %v451_v0 = vmax.f32 %v419_v36, %v435_v48 }
 0x110   :  { %v436_v43 = vmul.f32 0.2, %v420_v37  ;;  %v377_v44 = vadd.f32 %v1101_v62, %v265_v40  ;;  %v418_v46 = vadd.f32 %v1109_v5, %v396_v39  ;;  %818 = vmatprep.mubr.msk.bf16.mxu0 %vm503_vm3, %v471_v41  ;;  %v401_v49 = vmul.f32 %v1099_v60, %v379_v38 }
 0x111   :  { %v799_v47 = vpop.f32.mrf.mxu0  ;;  %819 = vmatmul.mubr.msk.bf16.vlgmr.msra.gmra.mxu0 %vm503_vm3, %v472_v42  ;;  %v449_v56 = vmax.f32 %v417_v30, %v433_v45 }
 0x112   :  { %v399_v50 = vmul.f32 %v1099_v60, %v377_v44  ;;  %v380_v51 = vadd.f32 %v1104_v1, %v799_v47  ;;  %v434_v52 = vmul.f32 0.2, %v418_v46  ;;  %v452_v54 = vmax.f32 %v420_v37, %v436_v43  ;;  %v1164_v43 = vld [vmem:[#allocation6] ss:$0 sm:$0xff] }
 0x113   :  { %v268_v53 = vpop.f32.mrf.mxu0  ;;  %v423_v2 = vadd.f32 %v1109_v5, %v401_v49  ;;  %v1168_v49 = vld [vmem:[#allocation7] ss:$0 sm:$0xff] }
 0x114   :  { %v402_v55 = vmul.f32 %v1099_v60, %v380_v51  ;;  %v450_v57 = vmax.f32 %v418_v46, %v434_v52  ;;  %v421_v59 = vadd.f32 %v1109_v5, %v399_v50  ;;  %v378_v61 = vadd.f32 %v1111_v7, %v268_v53 }
 0x115   :  { %v802_v63 = vpop.f32.mrf.mxu0  ;;  %v474_v10 = vpack.c.bf16 %v452_v54, %v451_v0  ;;  %v439_v16 = vmul.f32 0.2, %v423_v2 }
 0x116   :  { %v424_v3 = vadd.f32 %v1109_v5, %v402_v55  ;;  %v383_v4 = vadd.f32 %v1096_v58, %v802_v63  ;;  %v400_v6 = vmul.f32 %v1099_v60, %v378_v61  ;;  %v473_v9 = vpack.c.bf16 %v450_v57, %v449_v56 }
 0x117   :  { %v281_v8 = vpop.f32.mrf.mxu0  ;;  %v437_v13 = vmul.f32 0.2, %v421_v59  ;;  %v455_v26 = vmax.f32 %v423_v2, %v439_v16 }
 0x118   :  { %v440_v11 = vmul.f32 0.2, %v424_v3  ;;  %v381_v12 = vadd.f32 %v1101_v62, %v281_v8  ;;  %v422_v14 = vadd.f32 %v1109_v5, %v400_v6  ;;  %822 = vmatprep.mubr.msk.bf16.mxu1 %vm503_vm3, %v473_v9  ;;  %v405_v17 = vmul.f32 %v1099_v60, %v383_v4 }
 0x119   :  { %v803_v15 = vpop.f32.mrf.mxu0  ;;  %823 = vmatmul.mubr.msk.bf16.vlgmr.msra.gmra.mxu1 %vm503_vm3, %v474_v10  ;;  %v453_v24 = vmax.f32 %v421_v59, %v437_v13 }
 0x11a   :  { %v403_v18 = vmul.f32 %v1099_v60, %v381_v12  ;;  %v384_v58 = vadd.f32 %v1104_v1, %v803_v15  ;;  %v438_v19 = vmul.f32 0.2, %v422_v14  ;;  %v456_v21 = vmax.f32 %v424_v3, %v440_v11 }
 0x11b   :  { %v284_v20 = vpop.f32.mrf.mxu0  ;;  %v427_v27 = vadd.f32 %v1109_v5, %v405_v17 }
 0x11c   :  { %v425_v62 = vadd.f32 %v1109_v5, %v403_v18  ;;  %v406_v22 = vmul.f32 %v1099_v60, %v384_v58  ;;  %v382_v23 = vadd.f32 %v1111_v7, %v284_v20  ;;  %v454_v25 = vmax.f32 %v422_v14, %v438_v19 }
 0x11d   :  { %v476_v33 = vpack.c.bf16 %v456_v21, %v455_v26  ;;  %v443_v34 = vmul.f32 0.2, %v427_v27 }
 0x11e   :  { %v428_v28 = vadd.f32 %v1109_v5, %v406_v22  ;;  %v404_v1 = vmul.f32 %v1099_v60, %v382_v23  ;;  %v475_v29 = vpack.c.bf16 %v454_v25, %v453_v24  ;;  %v441_v30 = vmul.f32 0.2, %v425_v62 }
 0x11f   :  { %v459_v38 = vmax.f32 %v427_v27, %v443_v34 }
 0x120   :  { %v444_v31 = vmul.f32 0.2, %v428_v28  ;;  %v426_v32 = vadd.f32 %v1109_v5, %v404_v1  ;;  %826 = vmatprep.mubr.msk.bf16.mxu1 %vm503_vm3, %v475_v29  ;;  %v457_v7 = vmax.f32 %v425_v62, %v441_v30 }
 0x121   :  { %827 = vmatmul.mubr.msk.bf16.gmra.mxu1 %vm503_vm3, %v476_v33 }
 0x122   :  { %v442_v35 = vmul.f32 0.2, %v426_v32  ;;  %v460_v36 = vmax.f32 %v428_v28, %v444_v31 }
 0x124   :  { %v458_v37 = vmax.f32 %v426_v32, %v442_v35  ;;  %v478_v60 = vpack.c.bf16 %v460_v36, %v459_v38 }
 0x126   :  { %v477_v39 = vpack.c.bf16 %v458_v37, %v457_v7 }
 0x128   :  { %830 = vmatprep.mubr.msk.bf16.mxu1 %vm503_vm3, %v477_v39 }
 0x129   :  { %831 = vmatmul.mubr.msk.bf16.gmra.mxu1 %vm503_vm3, %v478_v60 }
 0x1d1   :  { %v820_v40 = vpop.f32.mrf.mxu0 }
 0x1d2   :  { %v633_v47 = vmul.f32 %v820_v40, %v1164_v43 }
 0x1d3   :  { %v562_v41 = vpop.f32.mrf.mxu0 }
 0x1d4   :  { %v631_v50 = vmul.f32 %v1164_v43, %v562_v41  ;;  %v655_v57 = vadd.f32 %v1168_v49, %v633_v47 }
 0x1d5   :  { %v821_v44 = vpop.f32.mrf.mxu0 }
 0x1d6   :  { %v634_v56 = vmul.f32 %v821_v44, %v1164_v43  ;;  %v653_v0 = vadd.f32 %v1168_v49, %v631_v50  ;;  %v671_v13 = vmul.f32 0.2, %v655_v57 }
 0x1d7   :  { %v565_v51 = vpop.f32.mrf.mxu0 }
 0x1d8   :  { %v632_v2 = vmul.f32 %v1164_v43, %v565_v51  ;;  %v656_v11 = vadd.f32 %v1168_v49, %v634_v56  ;;  %v669_v18 = vmul.f32 0.2, %v653_v0  ;;  %v687_v27 = vmax.f32 %v655_v57, %v671_v13 }
 0x1d9   :  { %v824_v5 = vpop.f32.mrf.mxu1 }
 0x1da   :  { %v637_v45 = vmul.f32 %v824_v5, %v1164_v43  ;;  %v654_v58 = vadd.f32 %v1168_v49, %v632_v2  ;;  %v672_v24 = vmul.f32 0.2, %v656_v11  ;;  %v685_v31 = vmax.f32 %v653_v0, %v669_v18 }
 0x1db   :  { %v578_v42 = vpop.f32.mrf.mxu1 }
 0x1dc   :  { %v659_v52 = vadd.f32 %v1168_v49, %v637_v45  ;;  %v635_v53 = vmul.f32 %v1164_v43, %v578_v42  ;;  %v670_v32 = vmul.f32 0.2, %v654_v58  ;;  %v688_v39 = vmax.f32 %v656_v11, %v672_v24 }
 0x1dd   :  { %v825_v46 = vpop.f32.mrf.mxu1 }
 0x1de   :  { %v638_v54 = vmul.f32 %v825_v46, %v1164_v43  ;;  %v675_v4 = vmul.f32 0.2, %v659_v52  ;;  %v657_v6 = vadd.f32 %v1168_v49, %v635_v53 }
 0x1df   :  { %v581_v48 = vpop.f32.mrf.mxu1 }
 0x1e0   :  { %v636_v59 = vmul.f32 %v1164_v43, %v581_v48  ;;  %v660_v8 = vadd.f32 %v1168_v49, %v638_v54  ;;  %v691_v21 = vmax.f32 %v659_v52, %v675_v4  ;;  %v673_v62 = vmul.f32 0.2, %v657_v6 }
 0x1e1   :  { %v828_v55 = vpop.f32.mrf.mxu1  ;;  %v686_v52 = vmax.f32 %v654_v58, %v670_v32 }
 0x1e2   :  { %v641_v61 = vmul.f32 %v828_v55, %v1164_v43  ;;  %v658_v14 = vadd.f32 %v1168_v49, %v636_v59  ;;  %v676_v22 = vmul.f32 0.2, %v660_v8  ;;  %v703_v35 = vmax.f32 %v687_v27, %v691_v21 }
 0x1e3   :  { %v594_v63 = vpop.f32.mrf.mxu1  ;;  %v689_v7 = vmax.f32 %v657_v6, %v673_v62 }
 0x1e4   :  { %v639_v3 = vmul.f32 %v1164_v43, %v594_v63  ;;  %v663_v9 = vadd.f32 %v1168_v49, %v641_v61  ;;  %v674_v28 = vmul.f32 0.2, %v658_v14  ;;  %v692_v36 = vmax.f32 %v660_v8, %v676_v22 }
 0x1e5   :  { %v829_v10 = vpop.f32.mrf.mxu1  ;;  %v701_v53 = vmax.f32 %v685_v31, %v689_v7 }
 0x1e6   :  { %v642_v12 = vmul.f32 %v829_v10, %v1164_v43  ;;  %v679_v15 = vmul.f32 0.2, %v663_v9  ;;  %v661_v16 = vadd.f32 %v1168_v49, %v639_v3  ;;  %v690_v5 = vmax.f32 %v658_v14, %v674_v28 }
 0x1e7   :  { %v597_v17 = vpop.f32.mrf.mxu1  ;;  %v704_v54 = vmax.f32 %v688_v39, %v692_v36 }
 0x1e8   :  { %v664_v19 = vadd.f32 %v1168_v49, %v642_v12  ;;  %v640_v20 = vmul.f32 %v1164_v43, %v597_v17  ;;  %v695_v1 = vmax.f32 %v663_v9, %v679_v15  ;;  %v677_v29 = vmul.f32 0.2, %v661_v16 }
 0x1e9   :  { %v832_v23 = vpop.f32.mrf.mxu1  ;;  %v702_v2 = vmax.f32 %v686_v52, %v690_v5 }
 0x1ea   :  { %v662_v25 = vadd.f32 %v1168_v49, %v640_v20  ;;  %v645_v26 = vmul.f32 %v832_v23, %v1164_v43  ;;  %v680_v33 = vmul.f32 0.2, %v664_v19  ;;  %v707_v42 = vmax.f32 %v703_v35, %v695_v1 }
 0x1eb   :  { %v610_v30 = vpop.f32.mrf.mxu1  ;;  %v693_v44 = vmax.f32 %v661_v16, %v677_v29 }
 0x1ec   :  { %v667_v34 = vadd.f32 %v1168_v49, %v645_v26  ;;  %v643_v37 = vmul.f32 %v1164_v43, %v610_v30  ;;  %v678_v60 = vmul.f32 0.2, %v662_v25  ;;  %v696_v47 = vmax.f32 %v664_v19, %v680_v33 }
 0x1ed   :  { %v833_v38 = vpop.f32.mrf.mxu1  ;;  %v705_v63 = vmax.f32 %v701_v53, %v693_v44 }
 0x1ee   :  { %v683_v40 = vmul.f32 0.2, %v667_v34  ;;  %v646_v41 = vmul.f32 %v833_v38, %v1164_v43  ;;  %v665_v45 = vadd.f32 %v1168_v49, %v643_v37  ;;  %v694_v56 = vmax.f32 %v662_v25, %v678_v60 }
 0x1ef   :  { %v613_v46 = vpop.f32.mrf.mxu1  ;;  %v708_v3 = vmax.f32 %v704_v54, %v696_v47 }
 0x1f0   :  { %v699_v48 = vmax.f32 %v667_v34, %v683_v40  ;;  %v668_v50 = vadd.f32 %v1168_v49, %v646_v41  ;;  %v644_v51 = vmul.f32 %v1164_v43, %v613_v46  ;;  %v681_v55 = vmul.f32 0.2, %v665_v45 }
 0x1f1   :  { %v706_v8 = vmax.f32 %v702_v2, %v694_v56 }
 0x1f2   :  { %v711_v57 = vmax.f32 %v707_v42, %v699_v48  ;;  %v684_v59 = vmul.f32 0.2, %v668_v50  ;;  %v666_v61 = vadd.f32 %v1168_v49, %v644_v51  ;;  %v697_v0 = vmax.f32 %v665_v45, %v681_v55 }
 0x1f4   :  { %715 = vst.msk [vmem:[%s1225_s9 + $0x10] sm:$0xff] %vm503_vm3, %v711_v57  ;;  %v700_v4 = vmax.f32 %v668_v50, %v684_v59  ;;  %v682_v43 = vmul.f32 0.2, %v666_v61  ;;  %v709_v6 = vmax.f32 %v705_v63, %v697_v0 }
 0x1f6   :  { %v712_v9 = vmax.f32 %v708_v3, %v700_v4  ;;  %v698_v10 = vmax.f32 %v666_v61, %v682_v43  ;;  %713 = vst.msk [vmem:[%s1225_s9] sm:$0xff] %vm503_vm3, %v709_v6 }
 0x1f8   :  { %716 = vst.msk [vmem:[%s1225_s9 + $0x18] sm:$0xff] %vm503_vm3, %v712_v9  ;;  %v710_v49 = vmax.f32 %v706_v8, %v698_v10 }
 0x1fa   :  { %714 = vst.msk [vmem:[%s1225_s9 + $0x8] sm:$0xff] %vm503_vm3, %v710_v49 }
 0x1fb   :  { %721 = vsyncpa [#allocation3], 1 }
 0x1fc   :  { %722 = vsyncpa [#allocation5], 1 }
 0x1fd   :  { %723 = vsyncpa [#allocation8], 1 }

// kernel: dgcnn_forward.10
= control target key start
LH: loop header
LB: loop body
LE: loop exit
PB: predicated region body
PF: predicated region fallthrough
CT: control target
= control target key end

     0   :  { %s751_s9 = smov 0   ;;  %s753_s10 = smov 0   ;;  %s910_s0 = inlined_call_operand.vmem [shape: f32[2,16,65], index: 0, kind: input, shape index: {}]   ;;  %s911_s1 = inlined_call_operand.vmem [shape: f32[2,65,128], index: 1, kind: input, shape index: {}]   ;;  %s912_s2 = inlined_call_operand.vmem [shape: s32[2,16,4], index: 2, kind: output, shape index: {}]  }
   0x1   :  { %s755_s11 = smov 0  }
   0x2 LB: > { %s31_s12 = sadd.s32 1, %s728_s10  ;;  %p634_p0 = scmp.ge.s32.totalorder %s732_s11, 1  ;;  %s732_s11 = sphi %s755_s11, %s12_s11   ;;  %s728_s10 = sphi %s753_s10, %s914_s10   ;;  %s724_s9 = sphi %s751_s9, %s913_s9  }
   0x3   : > { %p33_p1 = scmp.ge.s32.totalorder %s31_s12, 2  ;;  %p155_p2 = scmp.lt.s32.totalorder %s732_s11, 3 }
   0x5   : > { %s916_s12 = smov (%p33_p1, %s31_s12), 0  ;;  %p156_p3 = pnand %p634_p0, %p155_p2 }
   0x6   : > { %p194_p4 = scmp.lt.s32.totalorder (!%p156_p3), %s724_s9, 1 }
   0x7   : > { %159 = sbr.rel (%p156_p3) target bundleno = 1409 (0x581), region = 28 }
   0xc   : > { %s918_s9 = smov (!%p194_p4, %s724_s9), 1  ;;  %vm241_vm0 = vcmask 531456   ;;  %vm248_vm1 = vcmask 1040384   ;;  %vm225_vm2 = vcmask 31744   ;;  %v734_v11 = vmov -inf  }
   0xd   : > { %s679_s13 = smul.u32 72, %s918_s9  ;;  %s645_s14 = sshll.u32 %s918_s9, 4  ;;  %226 = vst.msk [vmem:[#allocation2] sm:$0xff] %vm225_vm2, %v734_v11  ;;  %227 = vst.msk [vmem:[#allocation2 + $0x8] sm:$0xff] %vm225_vm2, %v734_v11  ;;  %v735_v18 = vmov 0.0   ;;  %v329_v20 = vlaneseq }
   0xe   : > { %s201_s17 = scalar_lea.vmem %s910_s0, %s645_s14  ;;  %228 = vst.msk [vmem:[#allocation3] sm:$0xff] %vm225_vm2, %v735_v18  ;;  %229 = vst.msk [vmem:[#allocation3 + $0x8] sm:$0xff] %vm225_vm2, %v735_v18  ;;  %s219_s23 = scalar_lea.vmem %s912_s2, %s645_s14 }
   0xf   : > { %s210_s20 = scalar_lea.vmem %s911_s1, %s679_s13  ;;  %v230_v0 = vld [vmem:[%s201_s17] sm:$0xff]  ;;  %v231_v10 = vld [vmem:[%s201_s17 + $0x8] sm:$0xff]  ;;  %v795_v22 = vand.u32 127, %v329_v20 }
  0x10   : > { %v240_v1 = vld [vmem:[%s210_s20 + $0x40] sm:$0x1]  ;;  %v239_v2 = vld [vmem:[%s210_s20 + $0x38] sm:$0xff]  ;;  %676 = vmatprep.mubr.msk.f32.mxu0 %vm241_vm0, %v230_v0  ;;  %v238_v3 = vld [vmem:[%s210_s20 + $0x30] sm:$0xff] }
  0x11   : > { %658 = vmatprep.subr.msk.mxu0 %vm248_vm1, %v240_v1  ;;  %v237_v4 = vld [vmem:[%s210_s20 + $0x28] sm:$0xff]  ;;  %v236_v5 = vld [vmem:[%s210_s20 + $0x20] sm:$0xff]  ;;  %v235_v6 = vld [vmem:[%s210_s20 + $0x18] sm:$0xff]  ;;  %v803_v30 = vcvt.s32.f32 %v795_v22  ;;  %vm371_vm11 = vcmp.eq.s32.totalorder %v795_v22, 0  ;;  %vm416_vm12 = vcmp.eq.s32.totalorder %v795_v22, 1 }
  0x12   : > { %659 = vmatpush3.msk.msra.mxu0 %vm248_vm1, %v240_v1  ;;  %v234_v7 = vld [vmem:[%s210_s20 + $0x10] sm:$0xff]  ;;  %v233_v8 = vld [vmem:[%s210_s20 + $0x8] sm:$0xff]  ;;  %v232_v9 = vld [vmem:[%s210_s20] sm:$0xff] }
  0x13   : > { %660 = vmatprep.subr.mxu0 %v239_v2 }
  0x14   : > { %661 = vmatpush3.msra.mxu0 %v239_v2  ;;  %v785_v12 = vld [vmem:[#allocation2] sm:$0xff]  ;;  %v789_v14 = vld [vmem:[#allocation2 + $0x8] sm:$0xff] }
  0x15   : > { %662 = vmatprep.subr.mxu0 %v238_v3  ;;  %v339_v13 = vsel %vm225_vm2, %v785_v12, -inf  ;;  %v342_v15 = vsel %vm225_vm2, %v789_v14, -inf  ;;  %v797_v24 = vld [vmem:[#allocation3] sm:$0xff]  ;;  %v805_v31 = vld [vmem:[#allocation3 + $0x8] sm:$0xff] }
  0x16   : > { %663 = vmatpush3.msra.mxu0 %v238_v3  ;;  %340 = vmax.xlane.f32.xlu0 %v339_v13 }
  0x17   : > { %664 = vmatprep.subr.mxu0 %v237_v4 }
  0x18   : > { %665 = vmatpush3.msra.mxu0 %v237_v4 }
  0x19   : > { %666 = vmatprep.subr.mxu0 %v236_v5 }
  0x1a   : > { %667 = vmatpush3.msra.mxu0 %v236_v5  ;;  %343 = vmax.xlane.f32.xlu0 %v342_v15 }
  0x1b   : > { %668 = vmatprep.subr.mxu0 %v235_v6 }
  0x1c   : > { %669 = vmatpush3.msra.mxu0 %v235_v6 }
  0x1d   : > { %670 = vmatprep.subr.mxu0 %v234_v7 }
  0x1e   : > { %671 = vmatpush3.msra.mxu0 %v234_v7 }
  0x1f   : > { %672 = vmatprep.subr.mxu0 %v233_v8 }
  0x20   : > { %673 = vmatpush3.msra.mxu0 %v233_v8 }
  0x21   : > { %674 = vmatprep.subr.mxu0 %v232_v9 }
  0x22   : > { %675 = vmatpush3.msra.mxu0 %v232_v9 }
  0x23   : > { %677 = vmatmul.mubr.msk.f32.vlgmr.msra.gmra.mxu0 %vm241_vm0, %v231_v10 }
  0x9f   : > { %v341_v19 = vpop.xlane.xlu0 %340 }
  0xa3   : > { %v344_v25 = vpop.xlane.xlu0 %343 }
  0xe3   : > { %v678_v16 = vpop.f32.mrf.mxu0 }
  0xe5   : > { %v318_v17 = vpop.f32.mrf.mxu0 }
  0xe6   : > { %345 = vmax.xlane.f32.xlu1 %v318_v17 }
  0xea   : > { %347 = vmax.xlane.f32.xlu1 %v678_v16 }
 0x16f   : > { %v346_v21 = vpop.xlane.xlu1 %345 }
 0x170   : > { %v349_v23 = vmax.f32 %v341_v19, %v346_v21 }
 0x172   : > { %vm351_vm3 = vcmp.ge.f32.partialorder %v785_v12, %v349_v23  ;;  %vm361_vm4 = vcmp.ge.f32.partialorder %v318_v17, %v349_v23  ;;  %v372_v52 = vsel %vm371_vm11, %v349_v23, %v785_v12 }
 0x173   : > { %v348_v26 = vpop.xlane.xlu1 %347  ;;  %v353_v27 = vsel %vm351_vm3, %v797_v24, 1e+09  ;;  %v363_v33 = vsel %vm361_vm4, %v803_v30, 1e+09 }
 0x174   : > { %v350_v28 = vmax.f32 %v344_v25, %v348_v26  ;;  %v355_v29 = vsel %vm225_vm2, %v353_v27, inf }
 0x175   : > { %356 = vmin.xlane.f32.xlu0 %v355_v29 }
 0x176   : > { %vm352_vm5 = vcmp.ge.f32.partialorder %v789_v14, %v350_v28  ;;  %vm362_vm6 = vcmp.ge.f32.partialorder %v678_v16, %v350_v28  ;;  %v373_v58 = vsel %vm371_vm11, %v350_v28, %v789_v14 }
 0x177   : > { %v354_v32 = vsel %vm352_vm5, %v805_v31, 1e+09  ;;  %v364_v35 = vsel %vm362_vm6, %v803_v30, 1e+09  ;;  %vm461_vm6 = vcmp.eq.s32.totalorder %v795_v22, 2 }
 0x178   : > { %v358_v34 = vsel %vm225_vm2, %v354_v32, inf }
 0x179   : > { %365 = vmin.xlane.f32.xlu0 %v363_v33  ;;  %359 = vmin.xlane.f32.xlu1 %v358_v34 }
 0x17d   : > { %367 = vmin.xlane.f32.xlu1 %v364_v35 }
 0x1fe   : > { %v357_v36 = vpop.xlane.xlu0 %356 }
 0x202   : > { %v366_v37 = vpop.xlane.xlu0 %365  ;;  %v360_v38 = vpop.xlane.xlu1 %359 }
 0x203   : > { %v369_v39 = vmin.f32 %v357_v36, %v366_v37 }
 0x205   : > { %vm376_vm7 = vcmp.eq.f32.partialorder %v797_v24, %v369_v39  ;;  %vm380_vm8 = vcmp.eq.f32.partialorder %v803_v30, %v369_v39  ;;  %v374_v4 = vsel %vm371_vm11, %v369_v39, %v797_v24 }
 0x206   : > { %v368_v40 = vpop.xlane.xlu1 %367  ;;  %v378_v41 = vsel %vm376_vm7, -inf, %v785_v12  ;;  %v382_v45 = vsel %vm380_vm8, -inf, %v318_v17 }
 0x207   : > { %v370_v42 = vmin.f32 %v360_v38, %v368_v40  ;;  %v384_v43 = vsel %vm225_vm2, %v378_v41, -inf }
 0x208   : > { %385 = vmax.xlane.f32.xlu0 %v384_v43 }
 0x209   : > { %vm377_vm9 = vcmp.eq.f32.partialorder %v805_v31, %v370_v42  ;;  %vm381_vm10 = vcmp.eq.f32.partialorder %v803_v30, %v370_v42  ;;  %v375_v10 = vsel %vm371_vm11, %v370_v42, %v805_v31 }
 0x20a   : > { %v379_v44 = vsel %vm377_vm9, -inf, %v789_v14  ;;  %v383_v47 = vsel %vm381_vm10, -inf, %v678_v16 }
 0x20b   : > { %v387_v46 = vsel %vm225_vm2, %v379_v44, -inf }
 0x20c   : > { %390 = vmax.xlane.f32.xlu0 %v382_v45  ;;  %388 = vmax.xlane.f32.xlu1 %v387_v46 }
 0x210   : > { %392 = vmax.xlane.f32.xlu1 %v383_v47 }
 0x291   : > { %v386_v48 = vpop.xlane.xlu0 %385 }
 0x295   : > { %v391_v49 = vpop.xlane.xlu0 %390  ;;  %v389_v50 = vpop.xlane.xlu1 %388 }
 0x296   : > { %v394_v51 = vmax.f32 %v386_v48, %v391_v49 }
 0x298   : > { %v417_v53 = vsel %vm416_vm12, %v394_v51, %v372_v52  ;;  %vm396_vm13 = vcmp.ge.f32.partialorder %v378_v41, %v394_v51  ;;  %vm406_vm14 = vcmp.ge.f32.partialorder %v382_v45, %v394_v51 }
 0x299   : > { %v393_v54 = vpop.xlane.xlu1 %392  ;;  %v398_v55 = vsel %vm396_vm13, %v797_v24, 1e+09  ;;  %v408_v61 = vsel %vm406_vm14, %v803_v30, 1e+09 }
 0x29a   : > { %v395_v56 = vmax.f32 %v389_v50, %v393_v54  ;;  %v400_v57 = vsel %vm225_vm2, %v398_v55, inf }
 0x29b   : > { %401 = vmin.xlane.f32.xlu0 %v400_v57 }
 0x29c   : > { %v418_v59 = vsel %vm416_vm12, %v395_v56, %v373_v58  ;;  %vm397_vm15 = vcmp.ge.f32.partialorder %v379_v44, %v395_v56  ;;  %vm407_vm0 = vcmp.ge.f32.partialorder %v383_v47, %v395_v56 }
 0x29d   : > { %v399_v60 = vsel %vm397_vm15, %v805_v31, 1e+09  ;;  %v409_v63 = vsel %vm407_vm0, %v803_v30, 1e+09  ;;  %vm506_vm15 = vcmp.eq.s32.totalorder %v795_v22, 3 }
 0x29e   : > { %v403_v62 = vsel %vm225_vm2, %v399_v60, inf }
 0x29f   : > { %410 = vmin.xlane.f32.xlu0 %v408_v61  ;;  %404 = vmin.xlane.f32.xlu1 %v403_v62 }
 0x2a3   : > { %412 = vmin.xlane.f32.xlu1 %v409_v63 }
 0x324   : > { %v402_v0 = vpop.xlane.xlu0 %401 }
 0x328   : > { %v411_v1 = vpop.xlane.xlu0 %410  ;;  %v405_v2 = vpop.xlane.xlu1 %404 }
 0x329   : > { %v414_v3 = vmin.f32 %v402_v0, %v411_v1 }
 0x32b   : > { %v419_v5 = vsel %vm416_vm12, %v414_v3, %v374_v4  ;;  %vm421_vm1 = vcmp.eq.f32.partialorder %v797_v24, %v414_v3  ;;  %vm425_vm3 = vcmp.eq.f32.partialorder %v803_v30, %v414_v3 }
 0x32c   : > { %v413_v6 = vpop.xlane.xlu1 %412  ;;  %v423_v7 = vsel %vm421_vm1, -inf, %v378_v41  ;;  %v427_v13 = vsel %vm425_vm3, -inf, %v382_v45 }
 0x32d   : > { %v415_v8 = vmin.f32 %v405_v2, %v413_v6  ;;  %v429_v9 = vsel %vm225_vm2, %v423_v7, -inf }
 0x32e   : > { %430 = vmax.xlane.f32.xlu0 %v429_v9 }
 0x32f   : > { %v420_v11 = vsel %vm416_vm12, %v415_v8, %v375_v10  ;;  %vm422_vm4 = vcmp.eq.f32.partialorder %v805_v31, %v415_v8  ;;  %vm426_vm5 = vcmp.eq.f32.partialorder %v803_v30, %v415_v8 }
 0x330   : > { %v424_v12 = vsel %vm422_vm4, -inf, %v379_v44  ;;  %v428_v15 = vsel %vm426_vm5, -inf, %v383_v47 }
 0x331   : > { %v432_v14 = vsel %vm225_vm2, %v424_v12, -inf }
 0x332   : > { %435 = vmax.xlane.f32.xlu0 %v427_v13  ;;  %433 = vmax.xlane.f32.xlu1 %v432_v14 }
 0x336   : > { %437 = vmax.xlane.f32.xlu1 %v428_v15 }
 0x3b7   : > { %v431_v16 = vpop.xlane.xlu0 %430 }
 0x3bb   : > { %v436_v17 = vpop.xlane.xlu0 %435  ;;  %v434_v18 = vpop.xlane.xlu1 %433 }
 0x3bc   : > { %v439_v19 = vmax.f32 %v431_v16, %v436_v17 }
 0x3be   : > { %v462_v20 = vsel %vm461_vm6, %v439_v19, %v417_v53  ;;  %vm441_vm7 = vcmp.ge.f32.partialorder %v423_v7, %v439_v19  ;;  %vm451_vm8 = vcmp.ge.f32.partialorder %v427_v13, %v439_v19 }
 0x3bf   : > { %v438_v21 = vpop.xlane.xlu1 %437  ;;  %v443_v23 = vsel %vm441_vm7, %v797_v24, 1e+09  ;;  %v453_v29 = vsel %vm451_vm8, %v803_v30, 1e+09 }
 0x3c0   : > { %v440_v25 = vmax.f32 %v434_v18, %v438_v21  ;;  %v445_v26 = vsel %vm225_vm2, %v443_v23, inf }
 0x3c1   : > { %446 = vmin.xlane.f32.xlu0 %v445_v26 }
 0x3c2   : > { %v463_v27 = vsel %vm461_vm6, %v440_v25, %v418_v59  ;;  %vm442_vm9 = vcmp.ge.f32.partialorder %v424_v12, %v440_v25  ;;  %vm452_vm10 = vcmp.ge.f32.partialorder %v428_v15, %v440_v25 }
 0x3c3   : > { %v444_v28 = vsel %vm442_vm9, %v805_v31, 1e+09  ;;  %v454_v33 = vsel %vm452_vm10, %v803_v30, 1e+09 }
 0x3c4   : > { %v448_v32 = vsel %vm225_vm2, %v444_v28, inf }
 0x3c5   : > { %455 = vmin.xlane.f32.xlu0 %v453_v29  ;;  %449 = vmin.xlane.f32.xlu1 %v448_v32 }
 0x3c9   : > { %457 = vmin.xlane.f32.xlu1 %v454_v33 }
 0x44a   : > { %v447_v34 = vpop.xlane.xlu0 %446 }
 0x44e   : > { %v456_v35 = vpop.xlane.xlu0 %455  ;;  %v450_v36 = vpop.xlane.xlu1 %449 }
 0x44f   : > { %v459_v37 = vmin.f32 %v447_v34, %v456_v35 }
 0x451   : > { %v464_v38 = vsel %vm461_vm6, %v459_v37, %v419_v5  ;;  %vm466_vm11 = vcmp.eq.f32.partialorder %v797_v24, %v459_v37  ;;  %vm470_vm12 = vcmp.eq.f32.partialorder %v803_v30, %v459_v37 }
 0x452   : > { %v458_v39 = vpop.xlane.xlu1 %457  ;;  %v468_v40 = vsel %vm466_vm11, -inf, %v423_v7  ;;  %v472_v45 = vsel %vm470_vm12, -inf, %v427_v13 }
 0x453   : > { %v460_v41 = vmin.f32 %v450_v36, %v458_v39  ;;  %v474_v42 = vsel %vm225_vm2, %v468_v40, -inf }
 0x454   : > { %475 = vmax.xlane.f32.xlu0 %v474_v42 }
 0x455   : > { %v465_v43 = vsel %vm461_vm6, %v460_v41, %v420_v11  ;;  %vm467_vm13 = vcmp.eq.f32.partialorder %v805_v31, %v460_v41  ;;  %vm471_vm14 = vcmp.eq.f32.partialorder %v803_v30, %v460_v41 }
 0x456   : > { %v469_v44 = vsel %vm467_vm13, -inf, %v424_v12  ;;  %v473_v47 = vsel %vm471_vm14, -inf, %v428_v15 }
 0x457   : > { %v477_v46 = vsel %vm225_vm2, %v469_v44, -inf }
 0x458   : > { %480 = vmax.xlane.f32.xlu0 %v472_v45  ;;  %478 = vmax.xlane.f32.xlu1 %v477_v46 }
 0x45c   : > { %482 = vmax.xlane.f32.xlu1 %v473_v47 }
 0x4dd   : > { %v476_v48 = vpop.xlane.xlu0 %475 }
 0x4e1   : > { %v481_v49 = vpop.xlane.xlu0 %480  ;;  %v479_v50 = vpop.xlane.xlu1 %478 }
 0x4e2   : > { %v484_v51 = vmax.f32 %v476_v48, %v481_v49 }
 0x4e4   : > { %v507_v52 = vsel %vm506_vm15, %v484_v51, %v462_v20  ;;  %vm486_vm0 = vcmp.ge.f32.partialorder %v468_v40, %v484_v51  ;;  %vm496_vm1 = vcmp.ge.f32.partialorder %v472_v45, %v484_v51 }
 0x4e5   : > { %511 = vst.msk [vmem:[#allocation2] sm:$0xff] %vm225_vm2, %v507_v52  ;;  %v483_v53 = vpop.xlane.xlu1 %482  ;;  %v488_v54 = vsel %vm486_vm0, %v797_v24, 1e+09  ;;  %v498_v59 = vsel %vm496_vm1, %v803_v30, 1e+09 }
 0x4e6   : > { %v485_v55 = vmax.f32 %v479_v50, %v483_v53  ;;  %v490_v56 = vsel %vm225_vm2, %v488_v54, inf }
 0x4e7   : > { %491 = vmin.xlane.f32.xlu0 %v490_v56 }
 0x4e8   : > { %v508_v57 = vsel %vm506_vm15, %v485_v55, %v463_v27  ;;  %vm487_vm3 = vcmp.ge.f32.partialorder %v469_v44, %v485_v55  ;;  %vm497_vm4 = vcmp.ge.f32.partialorder %v473_v47, %v485_v55 }
 0x4e9   : > { %512 = vst.msk [vmem:[#allocation2 + $0x8] sm:$0xff] %vm225_vm2, %v508_v57  ;;  %v489_v58 = vsel %vm487_vm3, %v805_v31, 1e+09  ;;  %v499_v24 = vsel %vm497_vm4, %v803_v30, 1e+09 }
 0x4ea   : > { %v493_v60 = vsel %vm225_vm2, %v489_v58, inf }
 0x4eb   : > { %500 = vmin.xlane.f32.xlu0 %v498_v59  ;;  %494 = vmin.xlane.f32.xlu1 %v493_v60 }
 0x4ef   : > { %502 = vmin.xlane.f32.xlu1 %v499_v24 }
 0x570   : > { %v492_v61 = vpop.xlane.xlu0 %491 }
 0x574   : > { %v501_v62 = vpop.xlane.xlu0 %500  ;;  %v495_v63 = vpop.xlane.xlu1 %494 }
 0x575   : > { %v504_v0 = vmin.f32 %v492_v61, %v501_v62 }
 0x577   : > { %v509_v1 = vsel %vm506_vm15, %v504_v0, %v464_v38 }
 0x578   : > { %513 = vst.msk [vmem:[#allocation3] sm:$0xff] %vm225_vm2, %v509_v1  ;;  %v680_v31 = vtrunc.f32 %v509_v1  ;;  %v503_v2 = vpop.xlane.xlu1 %502 }
 0x579   : > { %v505_v3 = vmin.f32 %v495_v63, %v503_v2 }
 0x57a   : > { %v681_v4 = vcvt.f32.s32 %v680_v31 }
 0x57b   : > { %v510_v30 = vsel %vm506_vm15, %v505_v3, %v465_v43 }
 0x57c   : > { %520 = vst.msk [vmem:[%s219_s23] sm:$0xff] %vm225_vm2, %v681_v4  ;;  %514 = vst.msk [vmem:[#allocation3 + $0x8] sm:$0xff] %vm225_vm2, %v510_v30  ;;  %v682_v5 = vtrunc.f32 %v510_v30 }
 0x57e   : > { %v683_v6 = vcvt.f32.s32 %v682_v5 }
 0x580   : > { %521 = vst.msk [vmem:[%s219_s23 + $0x8] sm:$0xff] %vm225_vm2, %v683_v6 }
 0x581 PF: > { %s12_s11 = sadd.s32 1, %s732_s11   ;;  %s913_s9 = smov %s728_s10 }
 0x582   : > { %p9_p5 = scmp.ge.s32.totalorder %s12_s11, 4   ;;  %s914_s10 = smov %s916_s12 }
 0x584   :  { %11 = sbr.rel (!%p9_p5) target bundleno = 2 (0x2), region = 69 }

// kernel: dgcnn_forward.8
= control target key start
LH: loop header
LB: loop body
LE: loop exit
PB: predicated region body
PF: predicated region fallthrough
CT: control target
= control target key end

     0   :  { %s711_s9 = smov 0   ;;  %s713_s10 = smov 0   ;;  %s870_s0 = inlined_call_operand.vmem [shape: f32[2,16,4], index: 0, kind: input, shape index: {}]   ;;  %s871_s1 = inlined_call_operand.vmem [shape: f32[2,4,128], index: 1, kind: input, shape index: {}]   ;;  %s872_s2 = inlined_call_operand.vmem [shape: s32[2,16,4], index: 2, kind: output, shape index: {}]  }
   0x1   :  { %s715_s11 = smov 0  }
   0x2 LB: > { %s31_s12 = sadd.s32 1, %s688_s10  ;;  %p619_p0 = scmp.ge.s32.totalorder %s692_s11, 1  ;;  %s692_s11 = sphi %s715_s11, %s12_s11   ;;  %s688_s10 = sphi %s713_s10, %s874_s10   ;;  %s684_s9 = sphi %s711_s9, %s873_s9  }
   0x3   : > { %p33_p1 = scmp.ge.s32.totalorder %s31_s12, 2  ;;  %p154_p2 = scmp.lt.s32.totalorder %s692_s11, 3 }
   0x5   : > { %s876_s12 = smov (%p33_p1, %s31_s12), 0  ;;  %p155_p3 = pnand %p619_p0, %p154_p2 }
   0x6   : > { %p192_p4 = scmp.lt.s32.totalorder (!%p155_p3), %s684_s9, 1 }
   0x7   : > { %158 = sbr.rel (%p155_p3) target bundleno = 1392 (0x570), region = 28 }
   0xc   : > { %s878_s9 = smov (!%p192_p4, %s684_s9), 1  ;;  %vm237_vm0 = vcmask 1043456   ;;  %vm222_vm1 = vcmask 31744   ;;  %v694_v3 = vmov -inf   ;;  %v695_v10 = vmov 0.0  }
   0xd   : > { %s622_s13 = sshll.u32 %s878_s9, 2  ;;  %s630_s14 = sshll.u32 %s878_s9, 4  ;;  %223 = vst.msk [vmem:[#allocation2] sm:$0xff] %vm222_vm1, %v694_v3  ;;  %224 = vst.msk [vmem:[#allocation2 + $0x8] sm:$0xff] %vm222_vm1, %v694_v3  ;;  %v318_v12 = vlaneseq }
   0xe   : > { %s207_s17 = scalar_lea.vmem %s871_s1, %s622_s13  ;;  %s199_s20 = scalar_lea.vmem %s870_s0, %s630_s14  ;;  %225 = vst.msk [vmem:[#allocation3] sm:$0xff] %vm222_vm1, %v695_v10  ;;  %226 = vst.msk [vmem:[#allocation3 + $0x8] sm:$0xff] %vm222_vm1, %v695_v10 }
   0xf   : > { %v229_v0 = vld [vmem:[%s207_s17] sm:$0xf]  ;;  %v228_v2 = vld [vmem:[%s199_s20 + $0x8] sm:$0xff]  ;;  %v755_v14 = vand.u32 127, %v318_v12  ;;  %s216_s23 = scalar_lea.vmem %s872_s2, %s630_s14 }
  0x10   : > { %v227_v1 = vld [vmem:[%s199_s20] sm:$0xff]  ;;  %635 = vmatprep.subr.msk.mxu0 %vm237_vm0, %v229_v0 }
  0x11   : > { %637 = vmatprep.mubr.msk.f32.mxu0 %vm222_vm1, %v227_v1  ;;  %636 = vmatpush3.msk.msra.mxu0 %vm237_vm0, %v229_v0  ;;  %v763_v22 = vcvt.s32.f32 %v755_v14  ;;  %vm359_vm10 = vcmp.eq.s32.totalorder %v755_v14, 0  ;;  %vm404_vm11 = vcmp.eq.s32.totalorder %v755_v14, 1 }
  0x12   : > { %638 = vmatmul.mubr.msk.f32.vlgmr.msra.gmra.mxu0 %vm222_vm1, %v228_v2 }
  0x14   : > { %v745_v4 = vld [vmem:[#allocation2] sm:$0xff]  ;;  %v749_v6 = vld [vmem:[#allocation2 + $0x8] sm:$0xff] }
  0x15   : > { %v327_v5 = vsel %vm222_vm1, %v745_v4, -inf  ;;  %v330_v7 = vsel %vm222_vm1, %v749_v6, -inf  ;;  %v757_v16 = vld [vmem:[#allocation3] sm:$0xff]  ;;  %v765_v23 = vld [vmem:[#allocation3 + $0x8] sm:$0xff] }
  0x16   : > { %328 = vmax.xlane.f32.xlu0 %v327_v5 }
  0x1a   : > { %331 = vmax.xlane.f32.xlu0 %v330_v7 }
  0x9f   : > { %v329_v11 = vpop.xlane.xlu0 %328 }
  0xa3   : > { %v332_v17 = vpop.xlane.xlu0 %331 }
  0xd2   : > { %v639_v8 = vpop.f32.mrf.mxu0 }
  0xd4   : > { %v307_v9 = vpop.f32.mrf.mxu0 }
  0xd5   : > { %333 = vmax.xlane.f32.xlu1 %v307_v9 }
  0xd9   : > { %335 = vmax.xlane.f32.xlu1 %v639_v8 }
 0x15e   : > { %v334_v13 = vpop.xlane.xlu1 %333 }
 0x15f   : > { %v337_v15 = vmax.f32 %v329_v11, %v334_v13 }
 0x161   : > { %vm339_vm2 = vcmp.ge.f32.partialorder %v745_v4, %v337_v15  ;;  %vm349_vm3 = vcmp.ge.f32.partialorder %v307_v9, %v337_v15  ;;  %v360_v44 = vsel %vm359_vm10, %v337_v15, %v745_v4 }
 0x162   : > { %v336_v18 = vpop.xlane.xlu1 %335  ;;  %v341_v19 = vsel %vm339_vm2, %v757_v16, 1e+09  ;;  %v351_v25 = vsel %vm349_vm3, %v763_v22, 1e+09 }
 0x163   : > { %v338_v20 = vmax.f32 %v332_v17, %v336_v18  ;;  %v343_v21 = vsel %vm222_vm1, %v341_v19, inf }
 0x164   : > { %344 = vmin.xlane.f32.xlu0 %v343_v21 }
 0x165   : > { %vm340_vm4 = vcmp.ge.f32.partialorder %v749_v6, %v338_v20  ;;  %vm350_vm5 = vcmp.ge.f32.partialorder %v639_v8, %v338_v20  ;;  %v361_v50 = vsel %vm359_vm10, %v338_v20, %v749_v6 }
 0x166   : > { %v342_v24 = vsel %vm340_vm4, %v765_v23, 1e+09  ;;  %v352_v27 = vsel %vm350_vm5, %v763_v22, 1e+09  ;;  %vm449_vm5 = vcmp.eq.s32.totalorder %v755_v14, 2 }
 0x167   : > { %v346_v26 = vsel %vm222_vm1, %v342_v24, inf }
 0x168   : > { %353 = vmin.xlane.f32.xlu0 %v351_v25  ;;  %347 = vmin.xlane.f32.xlu1 %v346_v26 }
 0x16c   : > { %355 = vmin.xlane.f32.xlu1 %v352_v27 }
 0x1ed   : > { %v345_v28 = vpop.xlane.xlu0 %344 }
 0x1f1   : > { %v354_v29 = vpop.xlane.xlu0 %353  ;;  %v348_v30 = vpop.xlane.xlu1 %347 }
 0x1f2   : > { %v357_v31 = vmin.f32 %v345_v28, %v354_v29 }
 0x1f4   : > { %vm364_vm6 = vcmp.eq.f32.partialorder %v757_v16, %v357_v31  ;;  %vm368_vm7 = vcmp.eq.f32.partialorder %v763_v22, %v357_v31  ;;  %v362_v60 = vsel %vm359_vm10, %v357_v31, %v757_v16 }
 0x1f5   : > { %v356_v32 = vpop.xlane.xlu1 %355  ;;  %v366_v33 = vsel %vm364_vm6, -inf, %v745_v4  ;;  %v370_v37 = vsel %vm368_vm7, -inf, %v307_v9 }
 0x1f6   : > { %v358_v34 = vmin.f32 %v348_v30, %v356_v32  ;;  %v372_v35 = vsel %vm222_vm1, %v366_v33, -inf }
 0x1f7   : > { %373 = vmax.xlane.f32.xlu0 %v372_v35 }
 0x1f8   : > { %vm365_vm8 = vcmp.eq.f32.partialorder %v765_v23, %v358_v34  ;;  %vm369_vm9 = vcmp.eq.f32.partialorder %v763_v22, %v358_v34  ;;  %v363_v2 = vsel %vm359_vm10, %v358_v34, %v765_v23 }
 0x1f9   : > { %v367_v36 = vsel %vm365_vm8, -inf, %v749_v6  ;;  %v371_v39 = vsel %vm369_vm9, -inf, %v639_v8 }
 0x1fa   : > { %v375_v38 = vsel %vm222_vm1, %v367_v36, -inf }
 0x1fb   : > { %378 = vmax.xlane.f32.xlu0 %v370_v37  ;;  %376 = vmax.xlane.f32.xlu1 %v375_v38 }
 0x1ff   : > { %380 = vmax.xlane.f32.xlu1 %v371_v39 }
 0x280   : > { %v374_v40 = vpop.xlane.xlu0 %373 }
 0x284   : > { %v379_v41 = vpop.xlane.xlu0 %378  ;;  %v377_v42 = vpop.xlane.xlu1 %376 }
 0x285   : > { %v382_v43 = vmax.f32 %v374_v40, %v379_v41 }
 0x287   : > { %v405_v45 = vsel %vm404_vm11, %v382_v43, %v360_v44  ;;  %vm384_vm12 = vcmp.ge.f32.partialorder %v366_v33, %v382_v43  ;;  %vm394_vm13 = vcmp.ge.f32.partialorder %v370_v37, %v382_v43 }
 0x288   : > { %v381_v46 = vpop.xlane.xlu1 %380  ;;  %v386_v47 = vsel %vm384_vm12, %v757_v16, 1e+09  ;;  %v396_v53 = vsel %vm394_vm13, %v763_v22, 1e+09 }
 0x289   : > { %v383_v48 = vmax.f32 %v377_v42, %v381_v46  ;;  %v388_v49 = vsel %vm222_vm1, %v386_v47, inf }
 0x28a   : > { %389 = vmin.xlane.f32.xlu0 %v388_v49 }
 0x28b   : > { %v406_v51 = vsel %vm404_vm11, %v383_v48, %v361_v50  ;;  %vm385_vm14 = vcmp.ge.f32.partialorder %v367_v36, %v383_v48  ;;  %vm395_vm15 = vcmp.ge.f32.partialorder %v371_v39, %v383_v48 }
 0x28c   : > { %v387_v52 = vsel %vm385_vm14, %v765_v23, 1e+09  ;;  %v397_v55 = vsel %vm395_vm15, %v763_v22, 1e+09  ;;  %vm494_vm14 = vcmp.eq.s32.totalorder %v755_v14, 3 }
 0x28d   : > { %v391_v54 = vsel %vm222_vm1, %v387_v52, inf }
 0x28e   : > { %398 = vmin.xlane.f32.xlu0 %v396_v53  ;;  %392 = vmin.xlane.f32.xlu1 %v391_v54 }
 0x292   : > { %400 = vmin.xlane.f32.xlu1 %v397_v55 }
 0x313   : > { %v390_v56 = vpop.xlane.xlu0 %389 }
 0x317   : > { %v399_v57 = vpop.xlane.xlu0 %398  ;;  %v393_v58 = vpop.xlane.xlu1 %392 }
 0x318   : > { %v402_v59 = vmin.f32 %v390_v56, %v399_v57 }
 0x31a   : > { %v407_v61 = vsel %vm404_vm11, %v402_v59, %v362_v60  ;;  %vm409_vm0 = vcmp.eq.f32.partialorder %v757_v16, %v402_v59  ;;  %vm413_vm2 = vcmp.eq.f32.partialorder %v763_v22, %v402_v59 }
 0x31b   : > { %v401_v62 = vpop.xlane.xlu1 %400  ;;  %v411_v63 = vsel %vm409_vm0, -inf, %v366_v33  ;;  %v415_v5 = vsel %vm413_vm2, -inf, %v370_v37 }
 0x31c   : > { %v403_v0 = vmin.f32 %v393_v58, %v401_v62  ;;  %v417_v1 = vsel %vm222_vm1, %v411_v63, -inf }
 0x31d   : > { %418 = vmax.xlane.f32.xlu0 %v417_v1 }
 0x31e   : > { %v408_v3 = vsel %vm404_vm11, %v403_v0, %v363_v2  ;;  %vm410_vm3 = vcmp.eq.f32.partialorder %v765_v23, %v403_v0  ;;  %vm414_vm4 = vcmp.eq.f32.partialorder %v763_v22, %v403_v0 }
 0x31f   : > { %v412_v4 = vsel %vm410_vm3, -inf, %v367_v36  ;;  %v416_v7 = vsel %vm414_vm4, -inf, %v371_v39 }
 0x320   : > { %v420_v6 = vsel %vm222_vm1, %v412_v4, -inf }
 0x321   : > { %423 = vmax.xlane.f32.xlu0 %v415_v5  ;;  %421 = vmax.xlane.f32.xlu1 %v420_v6 }
 0x325   : > { %425 = vmax.xlane.f32.xlu1 %v416_v7 }
 0x3a6   : > { %v419_v8 = vpop.xlane.xlu0 %418 }
 0x3aa   : > { %v424_v9 = vpop.xlane.xlu0 %423  ;;  %v422_v10 = vpop.xlane.xlu1 %421 }
 0x3ab   : > { %v427_v11 = vmax.f32 %v419_v8, %v424_v9 }
 0x3ad   : > { %v450_v12 = vsel %vm449_vm5, %v427_v11, %v405_v45  ;;  %vm429_vm6 = vcmp.ge.f32.partialorder %v411_v63, %v427_v11  ;;  %vm439_vm7 = vcmp.ge.f32.partialorder %v415_v5, %v427_v11 }
 0x3ae   : > { %v426_v13 = vpop.xlane.xlu1 %425  ;;  %v431_v15 = vsel %vm429_vm6, %v757_v16, 1e+09  ;;  %v441_v21 = vsel %vm439_vm7, %v763_v22, 1e+09 }
 0x3af   : > { %v428_v17 = vmax.f32 %v422_v10, %v426_v13  ;;  %v433_v18 = vsel %vm222_vm1, %v431_v15, inf }
 0x3b0   : > { %434 = vmin.xlane.f32.xlu0 %v433_v18 }
 0x3b1   : > { %v451_v19 = vsel %vm449_vm5, %v428_v17, %v406_v51  ;;  %vm430_vm8 = vcmp.ge.f32.partialorder %v412_v4, %v428_v17  ;;  %vm440_vm9 = vcmp.ge.f32.partialorder %v416_v7, %v428_v17 }
 0x3b2   : > { %v432_v20 = vsel %vm430_vm8, %v765_v23, 1e+09  ;;  %v442_v25 = vsel %vm440_vm9, %v763_v22, 1e+09 }
 0x3b3   : > { %v436_v24 = vsel %vm222_vm1, %v432_v20, inf }
 0x3b4   : > { %443 = vmin.xlane.f32.xlu0 %v441_v21  ;;  %437 = vmin.xlane.f32.xlu1 %v436_v24 }
 0x3b8   : > { %445 = vmin.xlane.f32.xlu1 %v442_v25 }
 0x439   : > { %v435_v26 = vpop.xlane.xlu0 %434 }
 0x43d   : > { %v444_v27 = vpop.xlane.xlu0 %443  ;;  %v438_v28 = vpop.xlane.xlu1 %437 }
 0x43e   : > { %v447_v29 = vmin.f32 %v435_v26, %v444_v27 }
 0x440   : > { %v452_v30 = vsel %vm449_vm5, %v447_v29, %v407_v61  ;;  %vm454_vm10 = vcmp.eq.f32.partialorder %v757_v16, %v447_v29  ;;  %vm458_vm11 = vcmp.eq.f32.partialorder %v763_v22, %v447_v29 }
 0x441   : > { %v446_v31 = vpop.xlane.xlu1 %445  ;;  %v456_v32 = vsel %vm454_vm10, -inf, %v411_v63  ;;  %v460_v37 = vsel %vm458_vm11, -inf, %v415_v5 }
 0x442   : > { %v448_v33 = vmin.f32 %v438_v28, %v446_v31  ;;  %v462_v34 = vsel %vm222_vm1, %v456_v32, -inf }
 0x443   : > { %463 = vmax.xlane.f32.xlu0 %v462_v34 }
 0x444   : > { %v453_v35 = vsel %vm449_vm5, %v448_v33, %v408_v3  ;;  %vm455_vm12 = vcmp.eq.f32.partialorder %v765_v23, %v448_v33  ;;  %vm459_vm13 = vcmp.eq.f32.partialorder %v763_v22, %v448_v33 }
 0x445   : > { %v457_v36 = vsel %vm455_vm12, -inf, %v412_v4  ;;  %v461_v39 = vsel %vm459_vm13, -inf, %v416_v7 }
 0x446   : > { %v465_v38 = vsel %vm222_vm1, %v457_v36, -inf }
 0x447   : > { %468 = vmax.xlane.f32.xlu0 %v460_v37  ;;  %466 = vmax.xlane.f32.xlu1 %v465_v38 }
 0x44b   : > { %470 = vmax.xlane.f32.xlu1 %v461_v39 }
 0x4cc   : > { %v464_v40 = vpop.xlane.xlu0 %463 }
 0x4d0   : > { %v469_v41 = vpop.xlane.xlu0 %468  ;;  %v467_v42 = vpop.xlane.xlu1 %466 }
 0x4d1   : > { %v472_v43 = vmax.f32 %v464_v40, %v469_v41 }
 0x4d3   : > { %v495_v44 = vsel %vm494_vm14, %v472_v43, %v450_v12  ;;  %vm474_vm15 = vcmp.ge.f32.partialorder %v456_v32, %v472_v43  ;;  %vm484_vm0 = vcmp.ge.f32.partialorder %v460_v37, %v472_v43 }
 0x4d4   : > { %499 = vst.msk [vmem:[#allocation2] sm:$0xff] %vm222_vm1, %v495_v44  ;;  %v471_v45 = vpop.xlane.xlu1 %470  ;;  %v476_v46 = vsel %vm474_vm15, %v757_v16, 1e+09  ;;  %v486_v51 = vsel %vm484_vm0, %v763_v22, 1e+09 }
 0x4d5   : > { %v473_v47 = vmax.f32 %v467_v42, %v471_v45  ;;  %v478_v48 = vsel %vm222_vm1, %v476_v46, inf }
 0x4d6   : > { %479 = vmin.xlane.f32.xlu0 %v478_v48 }
 0x4d7   : > { %v496_v49 = vsel %vm494_vm14, %v473_v47, %v451_v19  ;;  %vm475_vm2 = vcmp.ge.f32.partialorder %v457_v36, %v473_v47  ;;  %vm485_vm3 = vcmp.ge.f32.partialorder %v461_v39, %v473_v47 }
 0x4d8   : > { %500 = vst.msk [vmem:[#allocation2 + $0x8] sm:$0xff] %vm222_vm1, %v496_v49  ;;  %v477_v50 = vsel %vm475_vm2, %v765_v23, 1e+09  ;;  %v487_v16 = vsel %vm485_vm3, %v763_v22, 1e+09 }
 0x4d9   : > { %v481_v52 = vsel %vm222_vm1, %v477_v50, inf }
 0x4da   : > { %488 = vmin.xlane.f32.xlu0 %v486_v51  ;;  %482 = vmin.xlane.f32.xlu1 %v481_v52 }
 0x4de   : > { %490 = vmin.xlane.f32.xlu1 %v487_v16 }
 0x55f   : > { %v480_v53 = vpop.xlane.xlu0 %479 }
 0x563   : > { %v489_v54 = vpop.xlane.xlu0 %488  ;;  %v483_v55 = vpop.xlane.xlu1 %482 }
 0x564   : > { %v492_v56 = vmin.f32 %v480_v53, %v489_v54 }
 0x566   : > { %v497_v57 = vsel %vm494_vm14, %v492_v56, %v452_v30 }
 0x567   : > { %501 = vst.msk [vmem:[#allocation3] sm:$0xff] %vm222_vm1, %v497_v57  ;;  %v640_v23 = vtrunc.f32 %v497_v57  ;;  %v491_v58 = vpop.xlane.xlu1 %490 }
 0x568   : > { %v493_v59 = vmin.f32 %v483_v55, %v491_v58 }
 0x569   : > { %v641_v60 = vcvt.f32.s32 %v640_v23 }
 0x56a   : > { %v498_v22 = vsel %vm494_vm14, %v493_v59, %v453_v35 }
 0x56b   : > { %508 = vst.msk [vmem:[%s216_s23] sm:$0xff] %vm222_vm1, %v641_v60  ;;  %502 = vst.msk [vmem:[#allocation3 + $0x8] sm:$0xff] %vm222_vm1, %v498_v22  ;;  %v642_v61 = vtrunc.f32 %v498_v22 }
 0x56d   : > { %v643_v62 = vcvt.f32.s32 %v642_v61 }
 0x56f   : > { %509 = vst.msk [vmem:[%s216_s23 + $0x8] sm:$0xff] %vm222_vm1, %v643_v62 }
 0x570 PF: > { %s12_s11 = sadd.s32 1, %s692_s11   ;;  %s873_s9 = smov %s688_s10 }
 0x571   : > { %p9_p5 = scmp.ge.s32.totalorder %s12_s11, 4   ;;  %s874_s10 = smov %s876_s12 }
 0x573   :  { %11 = sbr.rel (!%p9_p5) target bundleno = 2 (0x2), region = 69 }

// kernel: dgcnn_forward.11
= control target key start
LH: loop header
LB: loop body
LE: loop exit
PB: predicated region body
PF: predicated region fallthrough
CT: control target
= control target key end

     0   :  { %14 = vsyncpa [#allocation3], 0  ;;  %s1309_s0 = inlined_call_operand.vmem [shape: bf16[4,32,64], index: 0, kind: input, shape index: {}]   ;;  %s1310_s1 = inlined_call_operand.vmem [shape: bf16[32,64], index: 1, kind: input, shape index: {}]   ;;  %s1311_s2 = inlined_call_operand.vmem [shape: bf16[64,64], index: 2, kind: input, shape index: {}]   ;;  %s1312_s3 = inlined_call_operand.vmem [shape: bf16[64,64], index: 3, kind: input, shape index: {}]   ;;  %s1313_s4 = inlined_call_operand.hbm [shape: f32[1,64], index: 4, kind: input, shape index: {}]   ;;  %s1314_s5 = inlined_call_operand.hbm [shape: f32[1,64], index: 5, kind: input, shape index: {}]   ;;  %s1315_s6 = inlined_call_operand.vmem [shape: bf16[64,64], index: 6, kind: input, shape index: {}]   ;;  %s1316_s7 = inlined_call_operand.hbm [shape: f32[1,64], index: 7, kind: input, shape index: {}]   ;;  %s1317_s8 = inlined_call_operand.hbm [shape: f32[1,64], index: 8, kind: input, shape index: {}]   ;;  %s1318_s9 = inlined_call_operand.vmem [shape: f32[32,64], index: 9, kind: output, shape index: {}]  }
   0x1   :  { %15 = vsyncpa [#allocation5], 0 }
   0x2   :  { %16 = vsyncpa [#allocation8], 0  ;;  %s1001_s30 = smov [#allocation4]   ;;  %s1002_s11 = smov [#allocation2]  }
   0x3   :  { %s41_s10 = sshll.u32 %s1001_s30, 4  ;;  %s31_s12 = sshll.u32 %s1002_s11, 4  ;;  %s42_s10 = int_to_ptr.vmem [resolvable:$true] %s41_s10  ;;  %s32_s12 = int_to_ptr.vmem [resolvable:$true] %s31_s12 }
   0x4   :  { %s923_s13 = scalar_lea.vmem %s42_s10, 16  ;;  %s927_s14 = scalar_lea.vmem %s42_s10, 32 }
   0x5   :  { %p924_p0 = scmp.ne.s32.totalorder %s42_s10, %s923_s13  ;;  %p928_p1 = scmp.lt.s32.totalorder %s42_s10, %s42_s10 }
   0x6   :  { %p929_p2 = scmp.lt.s32.totalorder %s927_s14, %s923_s13 }
   0x8   :  { %p930_p3 = por %p929_p2, %p928_p1 }
   0xa   :  { %p931_p4 = pnand %p930_p3, %p924_p0 }
   0xc   :  { %934 = shalt.err (!%p931_p4)
}
   0xd   :  { %44 = dma.hbm_to_vmem [thread:$0]  %s1314_s5, 16, %s42_s10, [#allocation5]  }
   0xe   :  { %s943_s17 = scalar_lea.vmem %s32_s12, 16  ;;  %s947_s18 = scalar_lea.vmem %s32_s12, 32 }
   0xf   :  { %p944_p5 = scmp.ne.s32.totalorder %s32_s12, %s943_s17  ;;  %p948_p6 = scmp.lt.s32.totalorder %s32_s12, %s32_s12 }
  0x10   :  { %p949_p7 = scmp.lt.s32.totalorder %s947_s18, %s943_s17 }
  0x12   :  { %p950_p8 = por %p949_p7, %p948_p6 }
  0x14   :  { %p951_p9 = pnand %p950_p8, %p944_p5 }
  0x16   :  { %954 = shalt.err (!%p951_p9)
}
  0x17   :  { %34 = dma.hbm_to_vmem [thread:$0]  %s1313_s4, 16, %s32_s12, [#allocation3]  }
  0x18   :  { %s1003_s21 = smov [#allocation6]   ;;  %s1004_s23 = smov [#allocation7]  }
  0x19   :  { %s53_s22 = sshll.u32 %s1003_s21, 4  ;;  %s63_s24 = sshll.u32 %s1004_s23, 4  ;;  %s54_s22 = int_to_ptr.vmem [resolvable:$true] %s53_s22  ;;  %s64_s24 = int_to_ptr.vmem [resolvable:$true] %s63_s24 }
  0x1a   :  { %s963_s25 = scalar_lea.vmem %s54_s22, 16  ;;  %s967_s5 = scalar_lea.vmem %s54_s22, 32 }
  0x1b   :  { %p964_p10 = scmp.ne.s32.totalorder %s54_s22, %s963_s25  ;;  %p968_p11 = scmp.lt.s32.totalorder %s54_s22, %s54_s22 }
  0x1c   :  { %p969_p12 = scmp.lt.s32.totalorder %s967_s5, %s963_s25 }
  0x1e   :  { %p970_p13 = por %p969_p12, %p968_p11 }
  0x20   :  { %p971_p0 = pnand %p970_p13, %p964_p10 }
  0x22   :  { %974 = shalt.err (!%p971_p0)
}
  0x23   :  { %56 = dma.hbm_to_vmem [thread:$0]  %s1316_s7, 16, %s54_s22, [#allocation5]  }
  0x24   :  { %s983_s28 = scalar_lea.vmem %s64_s24, 16  ;;  %s987_s4 = scalar_lea.vmem %s64_s24, 32 }
  0x25   :  { %p984_p1 = scmp.ne.s32.totalorder %s64_s24, %s983_s28  ;;  %p988_p2 = scmp.lt.s32.totalorder %s64_s24, %s64_s24 }
  0x26   :  { %p989_p3 = scmp.lt.s32.totalorder %s987_s4, %s983_s28 }
  0x28   :  { %p990_p4 = por %p989_p3, %p988_p2 }
  0x2a   :  { %p991_p5 = pnand %p990_p4, %p984_p1 }
  0x2c   :  { %994 = shalt.err (!%p991_p5)
}
  0x2d   :  { %66 = dma.hbm_to_vmem [thread:$0]  %s1317_s8, 16, %s64_s24, [#allocation8]  }
  0x2e   :  { %995 = dma.done.wait [#allocation3], 16  }
  0x2f   :  { %996 = vsyncadd [#allocation3], 4294967280 }
  0x30   :  { %997 = dma.done.wait [#allocation5], 32  }
  0x31   :  { %998 = vsyncadd [#allocation5], 4294967264 }
  0x32   :  { %999 = dma.done.wait [#allocation8], 16  }
  0x33   :  { %1000 = vsyncadd [#allocation8], 4294967280  ;;  %v901_v0 = vld [vmem:[%s1311_s2 + $0x18] sm:$0xff]   ;;  %v902_v1 = vld [vmem:[%s1311_s2 + $0x10] sm:$0xff]   ;;  %vm198_vm0 = vcmask 523264  }
  0x34   :  { %837 = vmatprep.subr.bf16.mxu0 %v901_v0  ;;  %v903_v2 = vld [vmem:[%s1311_s2 + $0x8] sm:$0xff]   ;;  %v80_v3 = vld [vmem:[%s1309_s0] sm:$0xf]  ;;  %v81_v4 = vld [vmem:[%s1309_s0 + $0x4] sm:$0xf] }
  0x35   :  { %838 = vmatpush3.bf16.msra.mxu0 %v901_v0  ;;  %v1085_v5 = vld [vmem:[%s1310_s1] sm:$0xf]  ;;  %v1090_v6 = vld [vmem:[%s1310_s1 + $0x4] sm:$0xf]  ;;  %v82_v9 = vld [vmem:[%s1309_s0 + $0x8] sm:$0xf] }
  0x36   :  { %839 = vmatprep.subr.bf16.mxu0 %v902_v1  ;;  %v118_v7 = vsub.bf16 %v80_v3, %v1085_v5  ;;  %v119_v8 = vsub.bf16 %v81_v4, %v1090_v6  ;;  %v83_v10 = vld [vmem:[%s1309_s0 + $0xc] sm:$0xf]  ;;  %v1103_v11 = vld [vmem:[%s1310_s1 + $0x8] sm:$0xf]  ;;  %v904_v13 = vld [vmem:[%s1311_s2] sm:$0xff]   ;;  %v783_v52 = vcombine.low %v1085_v5, %v1090_v6 }
  0x37   :  { %v1108_v12 = vld [vmem:[%s1310_s1 + $0xc] sm:$0xf]  ;;  %v84_v15 = vld [vmem:[%s1309_s0 + $0x10] sm:$0xf]  ;;  %v85_v16 = vld [vmem:[%s1309_s0 + $0x14] sm:$0xf]  ;;  %v120_v17 = vsub.bf16 %v82_v9, %v1103_v11 }
  0x38   :  { %v763_v14 = vcombine.low %v118_v7, %v119_v8  ;;  %v121_v18 = vsub.bf16 %v83_v10, %v1108_v12  ;;  %v122_v19 = vsub.bf16 %v84_v15, %v1085_v5  ;;  %v123_v20 = vsub.bf16 %v85_v16, %v1090_v6  ;;  %v905_v21 = vld [vmem:[%s1312_s3 + $0x18] sm:$0xff]   ;;  %v906_v25 = vld [vmem:[%s1312_s3 + $0x10] sm:$0xff]   ;;  %v88_v26 = vld [vmem:[%s1309_s0 + $0x20] sm:$0xf] }
  0x39   :  { %840 = vmatpush3.bf16.msra.mxu0 %v902_v1  ;;  %v86_v22 = vld [vmem:[%s1309_s0 + $0x18] sm:$0xf]  ;;  %v87_v23 = vld [vmem:[%s1309_s0 + $0x1c] sm:$0xf]  ;;  %v89_v27 = vld [vmem:[%s1309_s0 + $0x24] sm:$0xf]  ;;  %v126_v31 = vsub.bf16 %v88_v26, %v1085_v5  ;;  %v784_v53 = vcombine.low %v1103_v11, %v1108_v12 }
  0x3a   :  { %841 = vmatprep.subr.bf16.mxu0 %v903_v2  ;;  %845 = vmatprep.mubr.msk.bf16.mxu0 %vm198_vm0, %v763_v14  ;;  %v764_v24 = vcombine.low %v120_v17, %v121_v18  ;;  %v765_v28 = vcombine.low %v122_v19, %v123_v20  ;;  %v124_v29 = vsub.bf16 %v86_v22, %v1103_v11  ;;  %v907_v33 = vld [vmem:[%s1312_s3 + $0x8] sm:$0xff]   ;;  %v92_v38 = vld [vmem:[%s1309_s0 + $0x30] sm:$0xf]  ;;  %v93_v39 = vld [vmem:[%s1309_s0 + $0x34] sm:$0xf] }
  0x3b   :  { %v125_v30 = vsub.bf16 %v87_v23, %v1108_v12  ;;  %v127_v32 = vsub.bf16 %v89_v27, %v1090_v6  ;;  %v90_v36 = vld [vmem:[%s1309_s0 + $0x28] sm:$0xf]  ;;  %v91_v37 = vld [vmem:[%s1309_s0 + $0x2c] sm:$0xf]  ;;  %v908_v40 = vld [vmem:[%s1312_s3] sm:$0xff]   ;;  %v130_v43 = vsub.bf16 %v92_v38, %v1085_v5  ;;  %v131_v44 = vsub.bf16 %v93_v39, %v1090_v6 }
  0x3c   :  { %v128_v41 = vsub.bf16 %v90_v36, %v1103_v11  ;;  %v129_v42 = vsub.bf16 %v91_v37, %v1108_v12  ;;  %v94_v47 = vld [vmem:[%s1309_s0 + $0x38] sm:$0xf]  ;;  %v95_v48 = vld [vmem:[%s1309_s0 + $0x3c] sm:$0xf]  ;;  %v912_v55 = vld [vmem:[%s1315_s6 + $0x10] sm:$0xff]  }
  0x3d   :  { %842 = vmatpush3.bf16.msra.mxu0 %v903_v2  ;;  %v766_v34 = vcombine.low %v124_v29, %v125_v30  ;;  %v767_v35 = vcombine.low %v126_v31, %v127_v32  ;;  %v769_v46 = vcombine.low %v130_v43, %v131_v44  ;;  %v132_v49 = vsub.bf16 %v94_v47, %v1103_v11  ;;  %v911_v54 = vld [vmem:[%s1315_s6 + $0x18] sm:$0xff]   ;;  %v913_v56 = vld [vmem:[%s1315_s6 + $0x8] sm:$0xff]   ;;  %v914_v57 = vld [vmem:[%s1315_s6] sm:$0xff]  }
  0x3e   :  { %843 = vmatprep.subr.bf16.mxu0 %v904_v13  ;;  %v768_v45 = vcombine.low %v128_v41, %v129_v42  ;;  %v133_v50 = vsub.bf16 %v95_v48, %v1108_v12  ;;  %873 = vmatprep.subr.bf16.mxu1 %v911_v54  ;;  %v1211_v20 = vld [vmem:[#allocation4] ss:$0 sm:$0xff] }
  0x3f   :  { %874 = vmatpush3.bf16.msra.mxu1 %v911_v54 }
  0x40   :  { %v770_v51 = vcombine.low %v132_v49, %v133_v50  ;;  %875 = vmatprep.subr.bf16.mxu1 %v912_v55 }
  0x41   :  { %844 = vmatpush3.bf16.msra.mxu0 %v904_v13  ;;  %v1208_v13 = vld [vmem:[#allocation2] ss:$0 sm:$0xff] }
  0x42   :  { %861 = vmatprep.subr.bf16.mxu0 %v905_v21 }
  0x43   :  { %876 = vmatpush3.bf16.msra.mxu1 %v912_v55 }
  0x44   :  { %846 = vmatmul.mubr.msk.bf16.vlgmr.msra.gmra.mxu0 %vm198_vm0, %v764_v24  ;;  %877 = vmatprep.subr.bf16.mxu1 %v913_v56 }
  0x45   :  { %862 = vmatpush3.bf16.msra.mxu0 %v905_v21  ;;  %849 = vmatprep.mubr.msk.bf16.mxu0 %vm198_vm0, %v765_v28 }
  0x46   :  { %863 = vmatprep.subr.bf16.mxu0 %v906_v25 }
  0x47   :  { %878 = vmatpush3.bf16.msra.mxu1 %v913_v56 }
  0x48   :  { %879 = vmatprep.subr.bf16.mxu1 %v914_v57 }
  0x49   :  { %864 = vmatpush3.bf16.msra.mxu0 %v906_v25 }
  0x4a   :  { %865 = vmatprep.subr.bf16.mxu0 %v907_v33 }
  0x4b   :  { %880 = vmatpush3.bf16.msra.mxu1 %v914_v57 }
  0x4c   :  { %850 = vmatmul.mubr.msk.bf16.gmra.mxu0 %vm198_vm0, %v766_v34 }
  0x4d   :  { %853 = vmatprep.mubr.msk.bf16.mxu0 %vm198_vm0, %v767_v35  ;;  %866 = vmatpush3.bf16.msra.mxu0 %v907_v33 }
  0x4e   :  { %867 = vmatprep.subr.bf16.mxu0 %v908_v40 }
  0x51   :  { %868 = vmatpush3.bf16.msra.mxu0 %v908_v40 }
  0x54   :  { %854 = vmatmul.mubr.msk.bf16.gmra.mxu0 %vm198_vm0, %v768_v45 }
  0x55   :  { %857 = vmatprep.mubr.msk.bf16.mxu0 %vm198_vm0, %v769_v46 }
  0x5c   :  { %858 = vmatmul.mubr.msk.bf16.gmra.mxu0 %vm198_vm0, %v770_v51 }
  0x5d   :  { %869 = vmatprep.mubr.msk.bf16.mxu0 %vm198_vm0, %v783_v52 }
  0x64   :  { %870 = vmatmul.mubr.msk.bf16.vlgmr.msra.gmra.mxu0 %vm198_vm0, %v784_v53 }
 0x104   :  { %v847_v58 = vpop.f32.mrf.mxu0 }
 0x106   :  { %v257_v59 = vpop.f32.mrf.mxu0 }
 0x108   :  { %v848_v60 = vpop.f32.mrf.mxu0 }
 0x10a   :  { %v260_v61 = vpop.f32.mrf.mxu0 }
 0x10c   :  { %v851_v62 = vpop.f32.mrf.mxu0 }
 0x10e   :  { %v273_v63 = vpop.f32.mrf.mxu0 }
 0x110   :  { %v852_v0 = vpop.f32.mrf.mxu0 }
 0x112   :  { %v276_v1 = vpop.f32.mrf.mxu0 }
 0x114   :  { %v855_v2 = vpop.f32.mrf.mxu0 }
 0x116   :  { %v289_v3 = vpop.f32.mrf.mxu0 }
 0x118   :  { %v856_v4 = vpop.f32.mrf.mxu0 }
 0x11a   :  { %v292_v5 = vpop.f32.mrf.mxu0 }
 0x11c   :  { %v1201_v6 = vpop.f32.mrf.mxu0 }
 0x11e   :  { %v305_v7 = vpop.f32.mrf.mxu0 }
 0x120   :  { %v1203_v8 = vpop.f32.mrf.mxu0 }
 0x122   :  { %v308_v9 = vpop.f32.mrf.mxu0 }
 0x124   :  { %v1205_v10 = vpop.f32.mrf.mxu0 }
 0x125   :  { %v411_v12 = vadd.f32 %v1205_v10, %v847_v58  ;;  %v415_v29 = vadd.f32 %v1205_v10, %v851_v62  ;;  %v419_v56 = vadd.f32 %v1205_v10, %v855_v2 }
 0x126   :  { %v394_v11 = vpop.f32.mrf.mxu0 }
 0x127   :  { %v413_v14 = vadd.f32 %v394_v11, %v273_v63  ;;  %v433_v18 = vmul.f32 %v1208_v13, %v411_v12  ;;  %v409_v21 = vadd.f32 %v394_v11, %v257_v59  ;;  %v417_v32 = vadd.f32 %v394_v11, %v289_v3 }
 0x128   :  { %v872_v15 = vpop.f32.mrf.mxu0  ;;  %v437_v42 = vmul.f32 %v1208_v13, %v415_v29  ;;  %v421_v59 = vadd.f32 %v394_v11, %v305_v7  ;;  %v441_v2 = vmul.f32 %v1208_v13, %v419_v56 }
 0x129   :  { %v412_v16 = vadd.f32 %v872_v15, %v848_v60  ;;  %v435_v22 = vmul.f32 %v1208_v13, %v413_v14  ;;  %v416_v24 = vadd.f32 %v872_v15, %v852_v0  ;;  %v455_v30 = vadd.f32 %v1211_v20, %v433_v18 }
 0x12a   :  { %v397_v17 = vpop.f32.mrf.mxu0  ;;  %v431_v34 = vmul.f32 %v1208_v13, %v409_v21  ;;  %v439_v45 = vmul.f32 %v1208_v13, %v417_v32  ;;  %v420_v49 = vadd.f32 %v872_v15, %v856_v4  ;;  %v459_v57 = vadd.f32 %v1211_v20, %v437_v42 }
 0x12b   :  { %v410_v19 = vadd.f32 %v397_v17, %v260_v61  ;;  %v434_v23 = vmul.f32 %v1208_v13, %v412_v16  ;;  %v414_v25 = vadd.f32 %v397_v17, %v276_v1  ;;  %v418_v27 = vadd.f32 %v397_v17, %v292_v5 }
 0x12c   :  { %v457_v33 = vadd.f32 %v1211_v20, %v435_v22  ;;  %v438_v36 = vmul.f32 %v1208_v13, %v416_v24  ;;  %v453_v40 = vadd.f32 %v1211_v20, %v431_v34  ;;  %v471_v44 = vmul.f32 0.2, %v455_v30 }
 0x12d   :  { %v456_v26 = vadd.f32 %v1211_v20, %v434_v23  ;;  %v432_v28 = vmul.f32 %v1208_v13, %v410_v19  ;;  %v436_v31 = vmul.f32 %v1208_v13, %v414_v25  ;;  %v440_v39 = vmul.f32 %v1208_v13, %v418_v27 }
 0x12e   :  { %v469_v46 = vmul.f32 0.2, %v453_v40  ;;  %v473_v48 = vmul.f32 0.2, %v457_v33  ;;  %v460_v50 = vadd.f32 %v1211_v20, %v438_v36  ;;  %v422_v52 = vadd.f32 %v397_v17, %v308_v9 }
 0x12f   :  { %v454_v35 = vadd.f32 %v1211_v20, %v432_v28  ;;  %v458_v37 = vadd.f32 %v1211_v20, %v436_v31  ;;  %v472_v38 = vmul.f32 0.2, %v456_v26  ;;  %v462_v53 = vadd.f32 %v1211_v20, %v440_v39 }
 0x130   :  { %v485_v54 = vmax.f32 %v453_v40, %v469_v46  ;;  %v487_v58 = vmax.f32 %v455_v30, %v471_v44  ;;  %v461_v60 = vadd.f32 %v1211_v20, %v439_v45  ;;  %v489_v62 = vmax.f32 %v457_v33, %v473_v48  ;;  %v1257_v46 = vld [vmem:[#allocation6] ss:$0 sm:$0xff] }
 0x131   :  { %v470_v41 = vmul.f32 0.2, %v454_v35  ;;  %v474_v43 = vmul.f32 0.2, %v458_v37  ;;  %v488_v51 = vmax.f32 %v456_v26, %v472_v38  ;;  %v442_v63 = vmul.f32 %v1208_v13, %v420_v49 }
 0x132   :  { %v476_v1 = vmul.f32 0.2, %v460_v50  ;;  %v444_v3 = vmul.f32 %v1208_v13, %v422_v52  ;;  %v478_v4 = vmul.f32 0.2, %v462_v53  ;;  %v475_v9 = vmul.f32 0.2, %v459_v57 }
 0x133   :  { %v486_v47 = vmax.f32 %v454_v35, %v470_v41  ;;  %v490_v55 = vmax.f32 %v458_v37, %v474_v43  ;;  %v512_v0 = vpack.c.bf16 %v488_v51, %v487_v58  ;;  %v443_v7 = vmul.f32 %v1208_v13, %v421_v59  ;;  %v1261_v51 = vld [vmem:[#allocation7] ss:$0 sm:$0xff] }
 0x134   :  { %v477_v11 = vmul.f32 0.2, %v461_v60  ;;  %v424_v12 = vadd.f32 %v872_v15, %v1203_v8  ;;  %v464_v14 = vadd.f32 %v1211_v20, %v442_v63  ;;  %v492_v16 = vmax.f32 %v460_v50, %v476_v1 }
 0x135   :  { %v511_v61 = vpack.c.bf16 %v486_v47, %v485_v54  ;;  %v513_v5 = vpack.c.bf16 %v490_v55, %v489_v62  ;;  %v466_v17 = vadd.f32 %v1211_v20, %v444_v3  ;;  %v494_v18 = vmax.f32 %v462_v53, %v478_v4 }
 0x136   :  { %v423_v19 = vadd.f32 %v1205_v10, %v1201_v6  ;;  %v463_v21 = vadd.f32 %v1211_v20, %v441_v2  ;;  %v491_v22 = vmax.f32 %v459_v57, %v475_v9  ;;  %v465_v23 = vadd.f32 %v1211_v20, %v443_v7 }
 0x137   :  { %881 = vmatprep.mubr.msk.bf16.mxu1 %vm198_vm0, %v511_v61  ;;  %v493_v24 = vmax.f32 %v461_v60, %v477_v11  ;;  %v446_v25 = vmul.f32 %v1208_v13, %v424_v12  ;;  %v480_v27 = vmul.f32 0.2, %v464_v14  ;;  %v482_v8 = vmul.f32 0.2, %v466_v17 }
 0x138   :  { %882 = vmatmul.mubr.msk.bf16.vlgmr.msra.gmra.mxu1 %vm198_vm0, %v512_v0  ;;  %v514_v26 = vpack.c.bf16 %v492_v16, %v491_v22  ;;  %v445_v28 = vmul.f32 %v1208_v13, %v423_v19  ;;  %v479_v29 = vmul.f32 0.2, %v463_v21  ;;  %v481_v6 = vmul.f32 0.2, %v465_v23 }
 0x139   :  { %885 = vmatprep.mubr.msk.bf16.mxu1 %vm198_vm0, %v513_v5  ;;  %v515_v15 = vpack.c.bf16 %v494_v18, %v493_v24  ;;  %v468_v10 = vadd.f32 %v1211_v20, %v446_v25  ;;  %v496_v30 = vmax.f32 %v464_v14, %v480_v27  ;;  %v498_v31 = vmax.f32 %v466_v17, %v482_v8 }
 0x13a   :  { %v467_v32 = vadd.f32 %v1211_v20, %v445_v28  ;;  %v495_v33 = vmax.f32 %v463_v21, %v479_v29  ;;  %v497_v34 = vmax.f32 %v465_v23, %v481_v6 }
 0x13b   :  { %v484_v36 = vmul.f32 0.2, %v468_v10 }
 0x13c   :  { %v516_v35 = vpack.c.bf16 %v496_v30, %v495_v33  ;;  %v517_v37 = vpack.c.bf16 %v498_v31, %v497_v34  ;;  %v483_v13 = vmul.f32 0.2, %v467_v32 }
 0x13d   :  { %v500_v38 = vmax.f32 %v468_v10, %v484_v36 }
 0x13e   :  { %v499_v39 = vmax.f32 %v467_v32, %v483_v13 }
 0x140   :  { %886 = vmatmul.mubr.msk.bf16.gmra.mxu1 %vm198_vm0, %v514_v26  ;;  %v518_v40 = vpack.c.bf16 %v500_v38, %v499_v39 }
 0x141   :  { %889 = vmatprep.mubr.msk.bf16.mxu1 %vm198_vm0, %v515_v15 }
 0x148   :  { %890 = vmatmul.mubr.msk.bf16.gmra.mxu1 %vm198_vm0, %v516_v35 }
 0x149   :  { %893 = vmatprep.mubr.msk.bf16.mxu1 %vm198_vm0, %v517_v37 }
 0x150   :  { %894 = vmatmul.mubr.msk.bf16.gmra.mxu1 %vm198_vm0, %v518_v40 }
 0x1f8   :  { %v883_v41 = vpop.f32.mrf.mxu1 }
 0x1f9   :  { %v672_v49 = vmul.f32 %v883_v41, %v1257_v46 }
 0x1fa   :  { %v601_v42 = vpop.f32.mrf.mxu1 }
 0x1fb   :  { %v670_v52 = vmul.f32 %v1257_v46, %v601_v42  ;;  %v694_v58 = vadd.f32 %v1261_v51, %v672_v49 }
 0x1fc   :  { %v884_v43 = vpop.f32.mrf.mxu1 }
 0x1fd   :  { %v673_v57 = vmul.f32 %v884_v43, %v1257_v46  ;;  %v692_v62 = vadd.f32 %v1261_v51, %v670_v52  ;;  %v710_v11 = vmul.f32 0.2, %v694_v58 }
 0x1fe   :  { %v604_v44 = vpop.f32.mrf.mxu1 }
 0x1ff   :  { %v671_v63 = vmul.f32 %v1257_v46, %v604_v44  ;;  %v695_v9 = vadd.f32 %v1261_v51, %v673_v57  ;;  %v708_v18 = vmul.f32 0.2, %v692_v62  ;;  %v726_v28 = vmax.f32 %v694_v58, %v710_v11 }
 0x200   :  { %v887_v20 = vpop.f32.mrf.mxu1 }
 0x201   :  { %v676_v47 = vmul.f32 %v887_v20, %v1257_v46  ;;  %v693_v19 = vadd.f32 %v1261_v51, %v671_v63  ;;  %v711_v27 = vmul.f32 0.2, %v695_v9  ;;  %v724_v31 = vmax.f32 %v692_v62, %v708_v18 }
 0x202   :  { %v617_v45 = vpop.f32.mrf.mxu1 }
 0x203   :  { %v698_v53 = vadd.f32 %v1261_v51, %v676_v47  ;;  %v674_v54 = vmul.f32 %v1257_v46, %v617_v45  ;;  %v709_v32 = vmul.f32 0.2, %v693_v19  ;;  %v727_v39 = vmax.f32 %v695_v9, %v711_v27 }
 0x204   :  { %v888_v48 = vpop.f32.mrf.mxu1 }
 0x205   :  { %v677_v55 = vmul.f32 %v888_v48, %v1257_v46  ;;  %v714_v1 = vmul.f32 0.2, %v698_v53  ;;  %v696_v3 = vadd.f32 %v1261_v51, %v674_v54 }
 0x206   :  { %v620_v50 = vpop.f32.mrf.mxu1 }
 0x207   :  { %v675_v59 = vmul.f32 %v1257_v46, %v620_v50  ;;  %v699_v4 = vadd.f32 %v1261_v51, %v677_v55  ;;  %v730_v23 = vmax.f32 %v698_v53, %v714_v1  ;;  %v712_v24 = vmul.f32 0.2, %v696_v3 }
 0x208   :  { %v891_v56 = vpop.f32.mrf.mxu1  ;;  %v725_v53 = vmax.f32 %v693_v19, %v709_v32 }
 0x209   :  { %v680_v60 = vmul.f32 %v891_v56, %v1257_v46  ;;  %v697_v12 = vadd.f32 %v1261_v51, %v675_v59  ;;  %v715_v25 = vmul.f32 0.2, %v699_v4  ;;  %v742_v35 = vmax.f32 %v726_v28, %v730_v23 }
 0x20a   :  { %v633_v61 = vpop.f32.mrf.mxu1  ;;  %v728_v36 = vmax.f32 %v696_v3, %v712_v24 }
 0x20b   :  { %v678_v0 = vmul.f32 %v1257_v46, %v633_v61  ;;  %v702_v5 = vadd.f32 %v1261_v51, %v680_v60  ;;  %v713_v29 = vmul.f32 0.2, %v697_v12  ;;  %v731_v37 = vmax.f32 %v699_v4, %v715_v25 }
 0x20c   :  { %v892_v2 = vpop.f32.mrf.mxu1  ;;  %v740_v54 = vmax.f32 %v724_v31, %v728_v36 }
 0x20d   :  { %v681_v7 = vmul.f32 %v892_v2, %v1257_v46  ;;  %v718_v14 = vmul.f32 0.2, %v702_v5  ;;  %v700_v16 = vadd.f32 %v1261_v51, %v678_v0  ;;  %v729_v43 = vmax.f32 %v697_v12, %v713_v29 }
 0x20e   :  { %v636_v17 = vpop.f32.mrf.mxu1  ;;  %v743_v55 = vmax.f32 %v727_v39, %v731_v37 }
 0x20f   :  { %v703_v21 = vadd.f32 %v1261_v51, %v681_v7  ;;  %v679_v22 = vmul.f32 %v1257_v46, %v636_v17  ;;  %v734_v6 = vmax.f32 %v702_v5, %v718_v14  ;;  %v716_v10 = vmul.f32 0.2, %v700_v16 }
 0x210   :  { %v895_v26 = vpop.f32.mrf.mxu1  ;;  %v741_v63 = vmax.f32 %v725_v53, %v729_v43 }
 0x211   :  { %v701_v8 = vadd.f32 %v1261_v51, %v679_v22  ;;  %v684_v15 = vmul.f32 %v895_v26, %v1257_v46  ;;  %v719_v33 = vmul.f32 0.2, %v703_v21  ;;  %v746_v44 = vmax.f32 %v742_v35, %v734_v6 }
 0x212   :  { %v649_v30 = vpop.f32.mrf.mxu1  ;;  %v732_v20 = vmax.f32 %v700_v16, %v716_v10 }
 0x213   :  { %v706_v34 = vadd.f32 %v1261_v51, %v684_v15  ;;  %v682_v13 = vmul.f32 %v1257_v46, %v649_v30  ;;  %v717_v40 = vmul.f32 0.2, %v701_v8  ;;  %v735_v48 = vmax.f32 %v703_v21, %v719_v33 }
 0x214   :  { %v896_v38 = vpop.f32.mrf.mxu1  ;;  %v744_v61 = vmax.f32 %v740_v54, %v732_v20 }
 0x215   :  { %v722_v41 = vmul.f32 0.2, %v706_v34  ;;  %v685_v42 = vmul.f32 %v896_v38, %v1257_v46  ;;  %v704_v45 = vadd.f32 %v1261_v51, %v682_v13  ;;  %v733_v57 = vmax.f32 %v701_v8, %v717_v40 }
 0x216   :  { %v652_v47 = vpop.f32.mrf.mxu1  ;;  %v747_v0 = vmax.f32 %v743_v55, %v735_v48 }
 0x217   :  { %v738_v49 = vmax.f32 %v706_v34, %v722_v41  ;;  %v707_v50 = vadd.f32 %v1261_v51, %v685_v42  ;;  %v683_v52 = vmul.f32 %v1257_v46, %v652_v47  ;;  %v720_v56 = vmul.f32 0.2, %v704_v45 }
 0x218   :  { %v745_v4 = vmax.f32 %v741_v63, %v733_v57 }
 0x219   :  { %v750_v58 = vmax.f32 %v746_v44, %v738_v49  ;;  %v723_v59 = vmul.f32 0.2, %v707_v50  ;;  %v705_v60 = vadd.f32 %v1261_v51, %v683_v52  ;;  %v736_v62 = vmax.f32 %v704_v45, %v720_v56 }
 0x21b   :  { %754 = vst.msk [vmem:[%s1318_s9 + $0x10] sm:$0xff] %vm198_vm0, %v750_v58  ;;  %v739_v1 = vmax.f32 %v707_v50, %v723_v59  ;;  %v721_v46 = vmul.f32 0.2, %v705_v60  ;;  %v748_v3 = vmax.f32 %v744_v61, %v736_v62 }
 0x21d   :  { %v751_v5 = vmax.f32 %v747_v0, %v739_v1  ;;  %v737_v2 = vmax.f32 %v705_v60, %v721_v46  ;;  %752 = vst.msk [vmem:[%s1318_s9] sm:$0xff] %vm198_vm0, %v748_v3 }
 0x21f   :  { %755 = vst.msk [vmem:[%s1318_s9 + $0x18] sm:$0xff] %vm198_vm0, %v751_v5  ;;  %v749_v51 = vmax.f32 %v745_v4, %v737_v2 }
 0x221   :  { %753 = vst.msk [vmem:[%s1318_s9 + $0x8] sm:$0xff] %vm198_vm0, %v749_v51 }
 0x222   :  { %760 = vsyncpa [#allocation3], 1 }
 0x223   :  { %761 = vsyncpa [#allocation5], 1 }
 0x224   :  { %762 = vsyncpa [#allocation8], 1 }

// kernel: dgcnn_forward.13
= control target key start
LH: loop header
LB: loop body
LE: loop exit
PB: predicated region body
PF: predicated region fallthrough
CT: control target
= control target key end

     0   :  { %vm142_vm0 = vcmask 523264   ;;  %vm473_vm1 = vcmask 519168   ;;  %s789_s2 = inlined_call_operand.vmem [shape: bf16[64,64], index: 2, kind: input, shape index: {}]   ;;  %s790_s3 = inlined_call_operand.vmem [shape: bf16[64,64], index: 3, kind: input, shape index: {}]   ;;  %s791_s0 = inlined_call_operand.vmem [shape: bf16[4,32,64], index: 0, kind: input, shape index: {}]   ;;  %s792_s1 = inlined_call_operand.vmem [shape: bf16[32,64], index: 1, kind: input, shape index: {}]   ;;  %s793_s4 = inlined_call_operand.vmem [shape: f32[1,64], index: 4, kind: input, shape index: {}]   ;;  %s794_s5 = inlined_call_operand.vmem [shape: f32[1,64], index: 5, kind: input, shape index: {}]   ;;  %s795_s6 = inlined_call_operand.vmem [shape: bf16[32,64], index: 6, kind: output, shape index: {}]  }
   0x1   :  { %v574_v0 = vld [vmem:[%s789_s2 + $0x18] sm:$0xff]   ;;  %v576_v2 = vld [vmem:[%s789_s2 + $0x10] sm:$0xff]   ;;  %v578_v4 = vld [vmem:[%s789_s2 + $0x8] sm:$0xff]  }
   0x2   :  { %v575_v1 = vld [vmem:[%s790_s3 + $0x18] sm:$0xff]   ;;  %538 = vmatprep.subr.bf16.mxu0 %v574_v0  ;;  %v577_v3 = vld [vmem:[%s790_s3 + $0x10] sm:$0xff]   ;;  %v579_v5 = vld [vmem:[%s790_s3 + $0x8] sm:$0xff]  }
   0x3   :  { %562 = vmatprep.subr.bf16.mxu1 %v575_v1  ;;  %539 = vmatpush3.bf16.msra.mxu0 %v574_v0  ;;  %v580_v6 = vld [vmem:[%s789_s2] sm:$0xff]   ;;  %v26_v13 = vld [vmem:[%s791_s0 + $0x8] sm:$0xf]  ;;  %v27_v14 = vld [vmem:[%s791_s0 + $0xc] sm:$0xf] }
   0x4   :  { %563 = vmatpush3.bf16.msra.mxu1 %v575_v1  ;;  %540 = vmatprep.subr.bf16.mxu0 %v576_v2  ;;  %v581_v7 = vld [vmem:[%s790_s3] sm:$0xff]   ;;  %v42_v17 = vld [vmem:[%s792_s1 + $0x8] sm:$0xf]  ;;  %v43_v18 = vld [vmem:[%s792_s1 + $0xc] sm:$0xf] }
   0x5   :  { %564 = vmatprep.subr.bf16.mxu1 %v577_v3  ;;  %v24_v8 = vld [vmem:[%s791_s0] sm:$0xf]  ;;  %v25_v9 = vld [vmem:[%s791_s0 + $0x4] sm:$0xf]  ;;  %v28_v19 = vld [vmem:[%s791_s0 + $0x10] sm:$0xf]  ;;  %v64_v20 = vsub.bf16 %v26_v13, %v42_v17  ;;  %v65_v21 = vsub.bf16 %v27_v14, %v43_v18  ;;  %v503_v27 = vcombine.low %v42_v17, %v43_v18 }
   0x6   :  { %v40_v10 = vld [vmem:[%s792_s1] sm:$0xf]  ;;  %v41_v11 = vld [vmem:[%s792_s1 + $0x4] sm:$0xf]  ;;  %v29_v22 = vld [vmem:[%s791_s0 + $0x14] sm:$0xf] }
   0x7   :  { %541 = vmatpush3.bf16.msra.mxu0 %v576_v2  ;;  %v62_v12 = vsub.bf16 %v24_v8, %v40_v10  ;;  %v63_v15 = vsub.bf16 %v25_v9, %v41_v11  ;;  %v502_v16 = vcombine.low %v40_v10, %v41_v11  ;;  %v66_v23 = vsub.bf16 %v28_v19, %v40_v10  ;;  %v30_v29 = vld [vmem:[%s791_s0 + $0x18] sm:$0xf]  ;;  %v31_v30 = vld [vmem:[%s791_s0 + $0x1c] sm:$0xf]  ;;  %v32_v31 = vld [vmem:[%s791_s0 + $0x20] sm:$0xf] }
   0x8   :  { %565 = vmatpush3.bf16.msra.mxu1 %v577_v3  ;;  %542 = vmatprep.subr.bf16.mxu0 %v578_v4  ;;  %v67_v25 = vsub.bf16 %v29_v22, %v41_v11  ;;  %v483_v26 = vcombine.low %v64_v20, %v65_v21  ;;  %v33_v32 = vld [vmem:[%s791_s0 + $0x24] sm:$0xf]  ;;  %v68_v33 = vsub.bf16 %v30_v29, %v42_v17  ;;  %v34_v39 = vld [vmem:[%s791_s0 + $0x28] sm:$0xf]  ;;  %v35_v40 = vld [vmem:[%s791_s0 + $0x2c] sm:$0xf] }
   0x9   :  { %566 = vmatprep.subr.bf16.mxu1 %v579_v5  ;;  %v482_v24 = vcombine.low %v62_v12, %v63_v15  ;;  %570 = vmatprep.mubr.msk.bf16.mxu1 %vm142_vm0, %v502_v16  ;;  %v69_v34 = vsub.bf16 %v31_v30, %v43_v18  ;;  %v70_v35 = vsub.bf16 %v32_v31, %v40_v10  ;;  %v36_v41 = vld [vmem:[%s791_s0 + $0x30] sm:$0xf]  ;;  %v37_v42 = vld [vmem:[%s791_s0 + $0x34] sm:$0xf]  ;;  %v38_v49 = vld [vmem:[%s791_s0 + $0x38] sm:$0xf] }
   0xa   :  { %v484_v28 = vcombine.low %v66_v23, %v67_v25  ;;  %v71_v36 = vsub.bf16 %v33_v32, %v41_v11  ;;  %v72_v43 = vsub.bf16 %v34_v39, %v42_v17  ;;  %v73_v44 = vsub.bf16 %v35_v40, %v43_v18  ;;  %v39_v50 = vld [vmem:[%s791_s0 + $0x3c] sm:$0xf]  ;;  %v720_v63 = vld [vmem:[%s793_s4] ss:$0 sm:$0xff] }
   0xb   :  { %543 = vmatpush3.bf16.msra.mxu0 %v578_v4  ;;  %546 = vmatprep.mubr.msk.bf16.mxu0 %vm142_vm0, %v482_v24  ;;  %v485_v37 = vcombine.low %v68_v33, %v69_v34  ;;  %v74_v45 = vsub.bf16 %v36_v41, %v40_v10  ;;  %v75_v46 = vsub.bf16 %v37_v42, %v41_v11 }
   0xc   :  { %567 = vmatpush3.bf16.msra.mxu1 %v579_v5  ;;  %544 = vmatprep.subr.bf16.mxu0 %v580_v6  ;;  %v486_v38 = vcombine.low %v70_v35, %v71_v36  ;;  %v487_v47 = vcombine.low %v72_v43, %v73_v44  ;;  %v76_v51 = vsub.bf16 %v38_v49, %v42_v17 }
   0xd   :  { %568 = vmatprep.subr.bf16.mxu1 %v581_v7  ;;  %v488_v48 = vcombine.low %v74_v45, %v75_v46  ;;  %v77_v52 = vsub.bf16 %v39_v50, %v43_v18 }
   0xf   :  { %545 = vmatpush3.bf16.msra.mxu0 %v580_v6  ;;  %v489_v53 = vcombine.low %v76_v51, %v77_v52 }
  0x10   :  { %569 = vmatpush3.bf16.msra.mxu1 %v581_v7  ;;  %v730_v7 = vld [vmem:[%s794_s5] ss:$0 sm:$0xff] }
  0x12   :  { %547 = vmatmul.mubr.msk.bf16.vlgmr.msra.gmra.mxu0 %vm142_vm0, %v483_v26 }
  0x13   :  { %571 = vmatmul.mubr.msk.bf16.vlgmr.msra.gmra.mxu1 %vm142_vm0, %v503_v27  ;;  %550 = vmatprep.mubr.msk.bf16.mxu0 %vm142_vm0, %v484_v28 }
  0x1a   :  { %551 = vmatmul.mubr.msk.bf16.gmra.mxu0 %vm142_vm0, %v485_v37 }
  0x1b   :  { %554 = vmatprep.mubr.msk.bf16.mxu0 %vm142_vm0, %v486_v38 }
  0x22   :  { %555 = vmatmul.mubr.msk.bf16.gmra.mxu0 %vm142_vm0, %v487_v47 }
  0x23   :  { %558 = vmatprep.mubr.msk.bf16.mxu0 %vm142_vm0, %v488_v48 }
  0x2a   :  { %559 = vmatmul.mubr.msk.bf16.gmra.mxu0 %vm142_vm0, %v489_v53 }
  0xd2   :  { %v548_v54 = vpop.f32.mrf.mxu0 }
  0xd3   :  { %v572_v55 = vpop.f32.mrf.mxu1 }
  0xd4   :  { %v201_v56 = vpop.f32.mrf.mxu0  ;;  %v355_v61 = vadd.f32 %v572_v55, %v548_v54 }
  0xd5   :  { %v713_v58 = vpop.f32.mrf.mxu1 }
  0xd6   :  { %v549_v57 = vpop.f32.mrf.mxu0  ;;  %v353_v1 = vadd.f32 %v713_v58, %v201_v56  ;;  %v377_v4 = vmul.f32 %v720_v63, %v355_v61 }
  0xd7   :  { %v715_v62 = vpop.f32.mrf.mxu1 }
  0xd8   :  { %v204_v59 = vpop.f32.mrf.mxu0  ;;  %v356_v8 = vadd.f32 %v715_v62, %v549_v57  ;;  %v375_v10 = vmul.f32 %v720_v63, %v353_v1  ;;  %v399_v15 = vadd.f32 %v730_v7, %v377_v4 }
  0xd9   :  { %v724_v5 = vpop.f32.mrf.mxu1 }
  0xda   :  { %v552_v60 = vpop.f32.mrf.mxu0  ;;  %v354_v12 = vadd.f32 %v724_v5, %v204_v59  ;;  %v378_v17 = vmul.f32 %v720_v63, %v356_v8  ;;  %v397_v21 = vadd.f32 %v730_v7, %v375_v10  ;;  %v415_v28 = vmul.f32 0.2, %v399_v15 }
  0xdb   :  { %v359_v2 = vadd.f32 %v572_v55, %v552_v60 }
  0xdc   :  { %v217_v0 = vpop.f32.mrf.mxu0  ;;  %v376_v23 = vmul.f32 %v720_v63, %v354_v12  ;;  %v400_v31 = vadd.f32 %v730_v7, %v378_v17  ;;  %v413_v39 = vmul.f32 0.2, %v397_v21  ;;  %v431_v49 = vmax.f32 %v399_v15, %v415_v28 }
  0xdd   :  { %v357_v6 = vadd.f32 %v713_v58, %v217_v0  ;;  %v381_v11 = vmul.f32 %v720_v63, %v359_v2 }
  0xde   :  { %v553_v3 = vpop.f32.mrf.mxu0  ;;  %v398_v40 = vadd.f32 %v730_v7, %v376_v23  ;;  %v416_v48 = vmul.f32 0.2, %v400_v31  ;;  %v429_v60 = vmax.f32 %v397_v21, %v413_v39 }
  0xdf   :  { %v360_v13 = vadd.f32 %v715_v62, %v553_v3  ;;  %v379_v16 = vmul.f32 %v720_v63, %v357_v6  ;;  %v403_v22 = vadd.f32 %v730_v7, %v381_v11 }
  0xe0   :  { %v220_v9 = vpop.f32.mrf.mxu0  ;;  %v414_v59 = vmul.f32 0.2, %v398_v40  ;;  %v432_v6 = vmax.f32 %v400_v31, %v416_v48 }
  0xe1   :  { %v358_v18 = vadd.f32 %v724_v5, %v220_v9  ;;  %v382_v24 = vmul.f32 %v720_v63, %v360_v13  ;;  %v401_v29 = vadd.f32 %v730_v7, %v379_v16  ;;  %v419_v36 = vmul.f32 0.2, %v403_v22 }
  0xe2   :  { %v556_v14 = vpop.f32.mrf.mxu0 }
  0xe3   :  { %v363_v19 = vadd.f32 %v572_v55, %v556_v14  ;;  %v380_v32 = vmul.f32 %v720_v63, %v358_v18  ;;  %v404_v41 = vadd.f32 %v730_v7, %v382_v24  ;;  %v417_v44 = vmul.f32 0.2, %v401_v29 }
  0xe4   :  { %v233_v20 = vpop.f32.mrf.mxu0  ;;  %v435_v53 = vmax.f32 %v403_v22, %v419_v36 }
  0xe5   :  { %v385_v25 = vmul.f32 %v720_v63, %v363_v19  ;;  %v361_v26 = vadd.f32 %v713_v58, %v233_v20  ;;  %v402_v50 = vadd.f32 %v730_v7, %v380_v32  ;;  %v420_v61 = vmul.f32 0.2, %v404_v41 }
  0xe6   :  { %v557_v27 = vpop.f32.mrf.mxu0  ;;  %v433_v1 = vmax.f32 %v401_v29, %v417_v44 }
  0xe7   :  { %v364_v30 = vadd.f32 %v715_v62, %v557_v27  ;;  %v407_v33 = vadd.f32 %v730_v7, %v385_v25  ;;  %v383_v34 = vmul.f32 %v720_v63, %v361_v26  ;;  %v418_v8 = vmul.f32 0.2, %v402_v50 }
  0xe8   :  { %v236_v35 = vpop.f32.mrf.mxu0  ;;  %v436_v15 = vmax.f32 %v404_v41, %v420_v61  ;;  %v445_v19 = vmax.f32 %v429_v60, %v433_v1  ;;  %v430_v26 = vmax.f32 %v398_v40, %v414_v59 }
  0xe9   :  { %v386_v37 = vmul.f32 %v720_v63, %v364_v30  ;;  %v362_v38 = vadd.f32 %v724_v5, %v236_v35  ;;  %v405_v42 = vadd.f32 %v730_v7, %v383_v34  ;;  %v423_v45 = vmul.f32 0.2, %v407_v33 }
  0xea   :  { %v560_v43 = vpop.f32.mrf.mxu0  ;;  %v434_v23 = vmax.f32 %v402_v50, %v418_v8  ;;  %v448_v30 = vmax.f32 %v432_v6, %v436_v15 }
  0xeb   :  { %v384_v46 = vmul.f32 %v720_v63, %v362_v38  ;;  %v367_v47 = vadd.f32 %v572_v55, %v560_v43  ;;  %v408_v51 = vadd.f32 %v730_v7, %v386_v37  ;;  %v421_v54 = vmul.f32 0.2, %v405_v42 }
  0xec   :  { %v249_v52 = vpop.f32.mrf.mxu0  ;;  %v439_v2 = vmax.f32 %v407_v33, %v423_v45  ;;  %v446_v35 = vmax.f32 %v430_v26, %v434_v23 }
  0xed   :  { %v389_v56 = vmul.f32 %v720_v63, %v367_v47  ;;  %v365_v57 = vadd.f32 %v713_v58, %v249_v52  ;;  %v406_v0 = vadd.f32 %v730_v7, %v384_v46  ;;  %v424_v9 = vmul.f32 0.2, %v408_v51 }
  0xee   :  { %v561_v55 = vpop.f32.mrf.mxu0  ;;  %v447_v58 = vmax.f32 %v431_v49, %v435_v53  ;;  %v437_v12 = vmax.f32 %v405_v42, %v421_v54 }
  0xef   :  { %v411_v3 = vadd.f32 %v730_v7, %v389_v56  ;;  %v387_v4 = vmul.f32 %v720_v63, %v365_v57  ;;  %v368_v10 = vadd.f32 %v715_v62, %v561_v55  ;;  %v422_v16 = vmul.f32 0.2, %v406_v0 }
  0xf0   :  { %v252_v11 = vpop.f32.mrf.mxu0  ;;  %v451_v20 = vmax.f32 %v447_v58, %v439_v2  ;;  %v440_v24 = vmax.f32 %v408_v51, %v424_v9  ;;  %v449_v27 = vmax.f32 %v445_v19, %v437_v12 }
  0xf1   :  { %v427_v13 = vmul.f32 0.2, %v411_v3  ;;  %v409_v14 = vadd.f32 %v730_v7, %v387_v4  ;;  %v390_v17 = vmul.f32 %v720_v63, %v368_v10  ;;  %v366_v18 = vadd.f32 %v724_v5, %v252_v11 }
  0xf2   :  { %v438_v31 = vmax.f32 %v406_v0, %v422_v16  ;;  %v452_v36 = vmax.f32 %v448_v30, %v440_v24 }
  0xf3   :  { %v443_v21 = vmax.f32 %v411_v3, %v427_v13  ;;  %v425_v22 = vmul.f32 0.2, %v409_v14  ;;  %v412_v62 = vadd.f32 %v730_v7, %v390_v17  ;;  %v388_v25 = vmul.f32 %v720_v63, %v366_v18 }
  0xf4   :  { %v450_v39 = vmax.f32 %v446_v35, %v438_v31 }
  0xf5   :  { %v455_v28 = vmax.f32 %v451_v20, %v443_v21  ;;  %v441_v29 = vmax.f32 %v409_v14, %v425_v22  ;;  %v428_v32 = vmul.f32 0.2, %v412_v62  ;;  %v410_v33 = vadd.f32 %v730_v7, %v388_v25 }
  0xf7   :  { %v518_v5 = vpack.c.bf16 %v455_v28, %v455_v28  ;;  %v453_v34 = vmax.f32 %v449_v27, %v441_v29  ;;  %v444_v37 = vmax.f32 %v412_v62, %v428_v32  ;;  %v426_v38 = vmul.f32 0.2, %v410_v33 }
  0xf9   :  { %476 = vst.msk [vmem:[%s795_s6 + $0x8] sm:$0xf] %vm473_vm1, %v518_v5  ;;  %v516_v63 = vpack.c.bf16 %v453_v34, %v453_v34  ;;  %v456_v40 = vmax.f32 %v452_v36, %v444_v37  ;;  %v442_v41 = vmax.f32 %v410_v33, %v426_v38 }
  0xfb   :  { %474 = vst.msk [vmem:[%s795_s6] sm:$0xf] %vm473_vm1, %v516_v63  ;;  %v519_v7 = vpack.c.bf16 %v456_v40, %v456_v40  ;;  %v454_v42 = vmax.f32 %v450_v39, %v442_v41 }
  0xfd   :  { %477 = vst.msk [vmem:[%s795_s6 + $0xc] sm:$0xf] %vm473_vm1, %v519_v7  ;;  %v517_v43 = vpack.c.bf16 %v454_v42, %v454_v42 }
  0xff   :  { %475 = vst.msk [vmem:[%s795_s6 + $0x4] sm:$0xf] %vm473_vm1, %v517_v43 }

// kernel: dgcnn_forward.14
= control target key start
LH: loop header
LB: loop body
LE: loop exit
PB: predicated region body
PF: predicated region fallthrough
CT: control target
= control target key end

     0   :  { %s1523_s15 = smov 0   ;;  %s1525_s16 = smov 0   ;;  %s1891_s0 = inlined_call_operand.vmem [shape: bf16[2,16,192], index: 0, kind: input, shape index: {}]   ;;  %s1892_s1 = inlined_call_operand.vmem [shape: bf16[192,1024], index: 1, kind: input, shape index: {}]   ;;  %s1893_s2 = inlined_call_operand.vmem [shape: f32[1,1024], index: 2, kind: input, shape index: {}]   ;;  %s1894_s3 = inlined_call_operand.vmem [shape: f32[1,1024], index: 3, kind: input, shape index: {}]   ;;  %s1895_s4 = inlined_call_operand.vmem [shape: f32[2,1,1024], index: 4, kind: output, shape index: {}]  }
   0x1   :  { %s1527_s17 = smov 0  }
   0x2 LB: > { %s26_s18 = sadd.s32 1, %s1491_s16  ;;  %p1335_p0 = scmp.ge.s32.totalorder %s1495_s17, 1  ;;  %s1495_s17 = sphi %s1527_s17, %s14_s17   ;;  %s1491_s16 = sphi %s1525_s16, %s1897_s16   ;;  %s1487_s15 = sphi %s1523_s15, %s1896_s15  }
   0x3   : > { %p28_p1 = scmp.ge.s32.totalorder %s26_s18, 2  ;;  %p182_p2 = scmp.lt.s32.totalorder %s1495_s17, 3 }
   0x5   : > { %s1899_s18 = smov (%p28_p1, %s26_s18), 0  ;;  %p183_p3 = pnand %p1335_p0, %p182_p2 }
   0x6   : > { %p213_p4 = scmp.lt.s32.totalorder (!%p183_p3), %s1487_s15, 1 }
   0x7   : > { %186 = sbr.rel (%p183_p3) target bundleno = 344 (0x158), region = 36 }
   0xc   : > { %v291_v0 = vld [vmem:[%s1892_s1 + $0x1c0] sm:$0xff]  ;;  %v292_v2 = vld [vmem:[%s1892_s1 + $0x1c8] sm:$0xff]  ;;  %s1901_s15 = smov (!%p213_p4, %s1487_s15), 1  ;;  %vm820_vm0 = vcmask 523264  }
   0xd   : > { %v295_v1 = vld [vmem:[%s1892_s1 + $0x1e0] sm:$0xff]  ;;  %v296_v4 = vld [vmem:[%s1892_s1 + $0x1e8] sm:$0xff]  ;;  %s1443_s7 = sshll.u32 %s1901_s15, 4  ;;  %s1338_s24 = sshll.u32 %s1901_s15, 3 }
   0xe   : > { %v1398_v3 = vcombine.high %v291_v0, %v295_v1  ;;  %v1397_v5 = vcombine.low %v291_v0, %v295_v1  ;;  %v283_v6 = vld [vmem:[%s1892_s1 + $0x180] sm:$0xff]  ;;  %v1400_v8 = vcombine.high %v292_v2, %v296_v4  ;;  %v1399_v9 = vcombine.low %v292_v2, %v296_v4  ;;  %v284_v11 = vld [vmem:[%s1892_s1 + $0x188] sm:$0xff]  ;;  %s1613_s14 = scalar_lea.vmem %s1891_s0, %s1443_s7  ;;  %s226_s27 = scalar_lea.vmem %s1895_s4, %s1338_s24 }
   0xf   : > { %v287_v7 = vld [vmem:[%s1892_s1 + $0x1a0] sm:$0xff]  ;;  %v288_v12 = vld [vmem:[%s1892_s1 + $0x1a8] sm:$0xff] }
  0x10   : > { %v1390_v10 = vcombine.high %v283_v6, %v287_v7  ;;  %v275_v13 = vld [vmem:[%s1892_s1 + $0x140] sm:$0xff]  ;;  %824 = vmatprep.subr.bf16.mxu0 %v1398_v3  ;;  %v1392_v14 = vcombine.high %v284_v11, %v288_v12  ;;  %v276_v16 = vld [vmem:[%s1892_s1 + $0x148] sm:$0xff]  ;;  %867 = vmatprep.subr.bf16.mxu1 %v1400_v8  ;;  %v1389_v18 = vcombine.low %v283_v6, %v287_v7 }
  0x11   : > { %v279_v15 = vld [vmem:[%s1892_s1 + $0x160] sm:$0xff]  ;;  %v280_v17 = vld [vmem:[%s1892_s1 + $0x168] sm:$0xff]  ;;  %825 = vmatpush1.bf16.msra.mxu0 %v1397_v5  ;;  %868 = vmatpush1.bf16.msra.mxu1 %v1399_v9  ;;  %v1391_v19 = vcombine.low %v284_v11, %v288_v12 }
  0x12   : > { %826 = vmatprep.subr.bf16.mxu0 %v1390_v10  ;;  %v1382_v20 = vcombine.high %v275_v13, %v279_v15  ;;  %869 = vmatprep.subr.bf16.mxu1 %v1392_v14  ;;  %v1384_v21 = vcombine.high %v276_v16, %v280_v17  ;;  %v267_v22 = vld [vmem:[%s1892_s1 + $0x100] sm:$0xff]  ;;  %v268_v24 = vld [vmem:[%s1892_s1 + $0x108] sm:$0xff]  ;;  %v1381_v26 = vcombine.low %v275_v13, %v279_v15 }
  0x13   : > { %v271_v23 = vld [vmem:[%s1892_s1 + $0x120] sm:$0xff]  ;;  %v272_v25 = vld [vmem:[%s1892_s1 + $0x128] sm:$0xff]  ;;  %v1383_v27 = vcombine.low %v276_v16, %v280_v17 }
  0x14   : > { %v1374_v28 = vcombine.high %v267_v22, %v271_v23  ;;  %v1376_v29 = vcombine.high %v268_v24, %v272_v25  ;;  %v259_v30 = vld [vmem:[%s1892_s1 + $0xc0] sm:$0xff]  ;;  %v260_v32 = vld [vmem:[%s1892_s1 + $0xc8] sm:$0xff]  ;;  %v1373_v34 = vcombine.low %v267_v22, %v271_v23  ;;  %v1375_v35 = vcombine.low %v268_v24, %v272_v25 }
  0x15   : > { %827 = vmatpush1.bf16.msra.mxu0 %v1389_v18  ;;  %870 = vmatpush1.bf16.msra.mxu1 %v1391_v19  ;;  %v263_v31 = vld [vmem:[%s1892_s1 + $0xe0] sm:$0xff]  ;;  %v264_v33 = vld [vmem:[%s1892_s1 + $0xe8] sm:$0xff] }
  0x16   : > { %828 = vmatprep.subr.bf16.mxu0 %v1382_v20  ;;  %871 = vmatprep.subr.bf16.mxu1 %v1384_v21  ;;  %v1366_v36 = vcombine.high %v259_v30, %v263_v31  ;;  %v1368_v37 = vcombine.high %v260_v32, %v264_v33  ;;  %v251_v38 = vld [vmem:[%s1892_s1 + $0x80] sm:$0xff]  ;;  %v252_v40 = vld [vmem:[%s1892_s1 + $0x88] sm:$0xff]  ;;  %v1365_v42 = vcombine.low %v259_v30, %v263_v31  ;;  %v293_v31 = vld [vmem:[%s1892_s1 + $0x1d0] sm:$0xff] }
  0x17   : > { %v255_v39 = vld [vmem:[%s1892_s1 + $0xa0] sm:$0xff]  ;;  %v256_v41 = vld [vmem:[%s1892_s1 + $0xa8] sm:$0xff]  ;;  %v1367_v44 = vcombine.low %v260_v32, %v264_v33  ;;  %v297_v32 = vld [vmem:[%s1892_s1 + $0x1f0] sm:$0xff] }
  0x18   : > { %v1628_v43 = vld [vmem:[%s1613_s14 + $0x4] ss:$8 sps:$4 sm:$0xff]   ;;  %v1358_v45 = vcombine.high %v251_v38, %v255_v39  ;;  %v1360_v46 = vcombine.high %v252_v40, %v256_v41  ;;  %v1357_v51 = vcombine.low %v251_v38, %v255_v39  ;;  %v1359_v52 = vcombine.low %v252_v40, %v256_v41  ;;  %v294_v33 = vld [vmem:[%s1892_s1 + $0x1d8] sm:$0xff]  ;;  %v285_v39 = vld [vmem:[%s1892_s1 + $0x190] sm:$0xff] }
  0x19   : > { %829 = vmatpush1.bf16.msra.mxu0 %v1381_v26  ;;  %872 = vmatpush1.bf16.msra.mxu1 %v1383_v27  ;;  %v243_v47 = vld [vmem:[%s1892_s1 + $0x40] sm:$0xff]  ;;  %v244_v49 = vld [vmem:[%s1892_s1 + $0x48] sm:$0xff]  ;;  %v289_v40 = vld [vmem:[%s1892_s1 + $0x1b0] sm:$0xff] }
  0x1a   : > { %830 = vmatprep.subr.bf16.mxu0 %v1374_v28  ;;  %873 = vmatprep.subr.bf16.mxu1 %v1376_v29  ;;  %v247_v48 = vld [vmem:[%s1892_s1 + $0x60] sm:$0xff]  ;;  %v248_v50 = vld [vmem:[%s1892_s1 + $0x68] sm:$0xff] }
  0x1b   : > { %1437 = vmatprep.mubr.msk.bf16.mxu0 %vm820_vm0, %v1628_v43  ;;  %1438 = vmatprep.mubr.msk.bf16.mxu1 %vm820_vm0, %v1628_v43  ;;  %v1350_v53 = vcombine.high %v243_v47, %v247_v48  ;;  %v1352_v54 = vcombine.high %v244_v49, %v248_v50  ;;  %v235_v55 = vld [vmem:[%s1892_s1] sm:$0xff]  ;;  %v236_v57 = vld [vmem:[%s1892_s1 + $0x8] sm:$0xff]  ;;  %v1349_v59 = vcombine.low %v243_v47, %v247_v48 }
  0x1c   : > { %v239_v56 = vld [vmem:[%s1892_s1 + $0x20] sm:$0xff]  ;;  %v240_v58 = vld [vmem:[%s1892_s1 + $0x28] sm:$0xff]  ;;  %v1351_v60 = vcombine.low %v244_v49, %v248_v50  ;;  %v1394_v47 = vcombine.high %v285_v39, %v289_v40  ;;  %v277_v49 = vld [vmem:[%s1892_s1 + $0x150] sm:$0xff] }
  0x1d   : > { %831 = vmatpush1.bf16.msra.mxu0 %v1373_v34  ;;  %874 = vmatpush1.bf16.msra.mxu1 %v1375_v35  ;;  %v1342_v61 = vcombine.high %v235_v55, %v239_v56  ;;  %v1344_v62 = vcombine.high %v236_v57, %v240_v58  ;;  %v323_v63 = vld [vmem:[%s1892_s1 + $0x2c0] sm:$0xff]  ;;  %v324_v1 = vld [vmem:[%s1892_s1 + $0x2c8] sm:$0xff]  ;;  %v1341_v3 = vcombine.low %v235_v55, %v239_v56  ;;  %v298_v34 = vld [vmem:[%s1892_s1 + $0x1f8] sm:$0xff] }
  0x1e   : > { %832 = vmatprep.subr.bf16.mxu0 %v1366_v36  ;;  %875 = vmatprep.subr.bf16.mxu1 %v1368_v37  ;;  %v327_v0 = vld [vmem:[%s1892_s1 + $0x2e0] sm:$0xff]  ;;  %v328_v2 = vld [vmem:[%s1892_s1 + $0x2e8] sm:$0xff]  ;;  %v1343_v4 = vcombine.low %v236_v57, %v240_v58  ;;  %v1402_v37 = vcombine.high %v293_v31, %v297_v32  ;;  %v1404_v38 = vcombine.high %v294_v33, %v298_v34  ;;  %v281_v50 = vld [vmem:[%s1892_s1 + $0x170] sm:$0xff] }
  0x1f   : > { %v1430_v5 = vcombine.high %v323_v63, %v327_v0  ;;  %v1432_v6 = vcombine.high %v324_v1, %v328_v2  ;;  %v315_v7 = vld [vmem:[%s1892_s1 + $0x280] sm:$0xff]  ;;  %v316_v9 = vld [vmem:[%s1892_s1 + $0x288] sm:$0xff]  ;;  %v1429_v11 = vcombine.low %v323_v63, %v327_v0  ;;  %v1431_v12 = vcombine.low %v324_v1, %v328_v2  ;;  %v269_v57 = vld [vmem:[%s1892_s1 + $0x110] sm:$0xff] }
  0x20   : > { %v319_v8 = vld [vmem:[%s1892_s1 + $0x2a0] sm:$0xff]  ;;  %v320_v10 = vld [vmem:[%s1892_s1 + $0x2a8] sm:$0xff]  ;;  %v1386_v55 = vcombine.high %v277_v49, %v281_v50  ;;  %v273_v58 = vld [vmem:[%s1892_s1 + $0x130] sm:$0xff] }
  0x21   : > { %833 = vmatpush1.bf16.msra.mxu0 %v1365_v42  ;;  %876 = vmatpush1.bf16.msra.mxu1 %v1367_v44  ;;  %v1422_v13 = vcombine.high %v315_v7, %v319_v8  ;;  %v1424_v14 = vcombine.high %v316_v9, %v320_v10  ;;  %v307_v15 = vld [vmem:[%s1892_s1 + $0x240] sm:$0xff]  ;;  %v308_v17 = vld [vmem:[%s1892_s1 + $0x248] sm:$0xff]  ;;  %v1421_v19 = vcombine.low %v315_v7, %v319_v8  ;;  %v286_v42 = vld [vmem:[%s1892_s1 + $0x198] sm:$0xff] }
  0x22   : > { %834 = vmatprep.subr.bf16.mxu0 %v1358_v45  ;;  %877 = vmatprep.subr.bf16.mxu1 %v1360_v46  ;;  %v311_v16 = vld [vmem:[%s1892_s1 + $0x260] sm:$0xff]  ;;  %v312_v18 = vld [vmem:[%s1892_s1 + $0x268] sm:$0xff]  ;;  %v1423_v20 = vcombine.low %v316_v9, %v320_v10  ;;  %v290_v44 = vld [vmem:[%s1892_s1 + $0x1b8] sm:$0xff]  ;;  %v1401_v45 = vcombine.low %v293_v31, %v297_v32  ;;  %v1403_v46 = vcombine.low %v294_v33, %v298_v34 }
  0x23   : > { %v1414_v21 = vcombine.high %v307_v15, %v311_v16  ;;  %v1416_v22 = vcombine.high %v308_v17, %v312_v18  ;;  %v299_v23 = vld [vmem:[%s1892_s1 + $0x200] sm:$0xff]  ;;  %v300_v25 = vld [vmem:[%s1892_s1 + $0x208] sm:$0xff]  ;;  %v1413_v27 = vcombine.low %v307_v15, %v311_v16  ;;  %v1415_v28 = vcombine.low %v308_v17, %v312_v18  ;;  %v261_v1 = vld [vmem:[%s1892_s1 + $0xd0] sm:$0xff] }
  0x24   : > { %v303_v24 = vld [vmem:[%s1892_s1 + $0x220] sm:$0xff]  ;;  %v304_v26 = vld [vmem:[%s1892_s1 + $0x228] sm:$0xff]  ;;  %v1396_v48 = vcombine.high %v286_v42, %v290_v44  ;;  %v1378_v63 = vcombine.high %v269_v57, %v273_v58  ;;  %v265_v2 = vld [vmem:[%s1892_s1 + $0xf0] sm:$0xff] }
  0x25   : > { %835 = vmatpush1.bf16.msra.mxu0 %v1357_v51  ;;  %878 = vmatpush1.bf16.msra.mxu1 %v1359_v52  ;;  %v1406_v29 = vcombine.high %v299_v23, %v303_v24  ;;  %v1408_v30 = vcombine.high %v300_v25, %v304_v26  ;;  %v1405_v35 = vcombine.low %v299_v23, %v303_v24  ;;  %v1725_v41 = vld [vmem:[%s1613_s14] ss:$8 sps:$4 sm:$0xff]   ;;  %v278_v51 = vld [vmem:[%s1892_s1 + $0x158] sm:$0xff]  ;;  %v253_v8 = vld [vmem:[%s1892_s1 + $0x90] sm:$0xff] }
  0x26   : > { %836 = vmatprep.subr.bf16.mxu0 %v1350_v53  ;;  %879 = vmatprep.subr.bf16.mxu1 %v1352_v54  ;;  %v1407_v36 = vcombine.low %v300_v25, %v304_v26  ;;  %v282_v52 = vld [vmem:[%s1892_s1 + $0x178] sm:$0xff]  ;;  %v1393_v53 = vcombine.low %v285_v39, %v289_v40  ;;  %v1395_v54 = vcombine.low %v286_v42, %v290_v44  ;;  %v257_v9 = vld [vmem:[%s1892_s1 + $0xb0] sm:$0xff] }
  0x27   : > { %v1388_v56 = vcombine.high %v278_v51, %v282_v52  ;;  %v254_v10 = vld [vmem:[%s1892_s1 + $0x98] sm:$0xff]  ;;  %v245_v16 = vld [vmem:[%s1892_s1 + $0x50] sm:$0xff] }
  0x28   : > { %v249_v17 = vld [vmem:[%s1892_s1 + $0x70] sm:$0xff]  ;;  %v246_v18 = vld [vmem:[%s1892_s1 + $0x58] sm:$0xff] }
  0x29   : > { %837 = vmatpush1.bf16.msra.mxu0 %v1349_v59  ;;  %880 = vmatpush1.bf16.msra.mxu1 %v1351_v60  ;;  %v270_v59 = vld [vmem:[%s1892_s1 + $0x118] sm:$0xff]  ;;  %v237_v24 = vld [vmem:[%s1892_s1 + $0x10] sm:$0xff] }
  0x2a   : > { %838 = vmatprep.subr.bf16.mxu0 %v1342_v61  ;;  %881 = vmatprep.subr.bf16.mxu1 %v1344_v62  ;;  %v274_v60 = vld [vmem:[%s1892_s1 + $0x138] sm:$0xff]  ;;  %v1385_v61 = vcombine.low %v277_v49, %v281_v50  ;;  %v1387_v62 = vcombine.low %v278_v51, %v282_v52  ;;  %v241_v25 = vld [vmem:[%s1892_s1 + $0x30] sm:$0xff] }
  0x2b   : > { %v1380_v0 = vcombine.high %v270_v59, %v274_v60  ;;  %v238_v26 = vld [vmem:[%s1892_s1 + $0x18] sm:$0xff]  ;;  %v325_v32 = vld [vmem:[%s1892_s1 + $0x2d0] sm:$0xff] }
  0x2c   : > { %v329_v33 = vld [vmem:[%s1892_s1 + $0x2f0] sm:$0xff]  ;;  %v326_v34 = vld [vmem:[%s1892_s1 + $0x2d8] sm:$0xff] }
  0x2d   : > { %839 = vmatpush1.bf16.msra.mxu0 %v1341_v3  ;;  %882 = vmatpush1.bf16.msra.mxu1 %v1343_v4  ;;  %v266_v3 = vld [vmem:[%s1892_s1 + $0xf8] sm:$0xff]  ;;  %v1377_v4 = vcombine.low %v269_v57, %v273_v58  ;;  %v317_v40 = vld [vmem:[%s1892_s1 + $0x290] sm:$0xff] }
  0x2e   : > { %848 = vmatprep.subr.bf16.mxu0 %v1430_v5  ;;  %891 = vmatprep.subr.bf16.mxu1 %v1432_v6  ;;  %v1379_v5 = vcombine.low %v270_v59, %v274_v60  ;;  %v1370_v6 = vcombine.high %v261_v1, %v265_v2  ;;  %v321_v42 = vld [vmem:[%s1892_s1 + $0x2b0] sm:$0xff]  ;;  %v318_v44 = vld [vmem:[%s1892_s1 + $0x298] sm:$0xff] }
  0x2f   : > { %v309_v50 = vld [vmem:[%s1892_s1 + $0x250] sm:$0xff]  ;;  %v310_v52 = vld [vmem:[%s1892_s1 + $0x258] sm:$0xff] }
  0x30   : > { %v313_v51 = vld [vmem:[%s1892_s1 + $0x270] sm:$0xff]  ;;  %v302_v60 = vld [vmem:[%s1892_s1 + $0x218] sm:$0xff] }
  0x31   : > { %849 = vmatpush2.bf16.msra.mxu0 %v1429_v11  ;;  %892 = vmatpush2.bf16.msra.mxu1 %v1431_v12  ;;  %v258_v11 = vld [vmem:[%s1892_s1 + $0xb8] sm:$0xff]  ;;  %v1369_v12 = vcombine.low %v261_v1, %v265_v2  ;;  %v301_v58 = vld [vmem:[%s1892_s1 + $0x210] sm:$0xff] }
  0x32   : > { %850 = vmatprep.subr.bf16.mxu0 %v1422_v13  ;;  %893 = vmatprep.subr.bf16.mxu1 %v1424_v14  ;;  %v1362_v14 = vcombine.high %v253_v8, %v257_v9  ;;  %v1364_v15 = vcombine.high %v254_v10, %v258_v11  ;;  %v305_v59 = vld [vmem:[%s1892_s1 + $0x230] sm:$0xff] }
  0x33   : > { %v1409_v2 = vcombine.low %v301_v58, %v305_v59 }
  0x35   : > { %851 = vmatpush2.bf16.msra.mxu0 %v1421_v19  ;;  %894 = vmatpush2.bf16.msra.mxu1 %v1423_v20  ;;  %v250_v19 = vld [vmem:[%s1892_s1 + $0x78] sm:$0xff]  ;;  %v1361_v20 = vcombine.low %v253_v8, %v257_v9 }
  0x36   : > { %852 = vmatprep.subr.bf16.mxu0 %v1414_v21  ;;  %895 = vmatprep.subr.bf16.mxu1 %v1416_v22  ;;  %v1363_v21 = vcombine.low %v254_v10, %v258_v11  ;;  %v1354_v22 = vcombine.high %v245_v16, %v249_v17  ;;  %v1356_v23 = vcombine.high %v246_v18, %v250_v19 }
  0x39   : > { %853 = vmatpush2.bf16.msra.mxu0 %v1413_v27  ;;  %896 = vmatpush2.bf16.msra.mxu1 %v1415_v28  ;;  %v242_v27 = vld [vmem:[%s1892_s1 + $0x38] sm:$0xff]  ;;  %v1353_v28 = vcombine.low %v245_v16, %v249_v17 }
  0x3a   : > { %854 = vmatprep.subr.bf16.mxu0 %v1406_v29  ;;  %897 = vmatprep.subr.bf16.mxu1 %v1408_v30  ;;  %v1355_v29 = vcombine.low %v246_v18, %v250_v19  ;;  %v1346_v30 = vcombine.high %v237_v24, %v241_v25  ;;  %v1348_v31 = vcombine.high %v238_v26, %v242_v27 }
  0x3d   : > { %855 = vmatpush2.bf16.msra.mxu0 %v1405_v35  ;;  %898 = vmatpush2.bf16.msra.mxu1 %v1407_v36  ;;  %v330_v35 = vld [vmem:[%s1892_s1 + $0x2f8] sm:$0xff]  ;;  %v1345_v36 = vcombine.low %v237_v24, %v241_v25 }
  0x3e   : > { %910 = vmatprep.subr.bf16.mxu0 %v1402_v37  ;;  %953 = vmatprep.subr.bf16.mxu1 %v1404_v38  ;;  %v1347_v37 = vcombine.low %v238_v26, %v242_v27  ;;  %v1434_v38 = vcombine.high %v325_v32, %v329_v33  ;;  %v1436_v39 = vcombine.high %v326_v34, %v330_v35 }
  0x40   : > { %857 = vmatmul.mubr.bf16.vlgmr.msra.gmra.mxu0 %v1725_v41  ;;  %900 = vmatmul.mubr.bf16.vlgmr.msra.gmra.mxu1 %v1725_v41 }
  0x41   : > { %911 = vmatpush1.bf16.msra.mxu0 %v1401_v45  ;;  %954 = vmatpush1.bf16.msra.mxu1 %v1403_v46  ;;  %v322_v45 = vld [vmem:[%s1892_s1 + $0x2b8] sm:$0xff]  ;;  %v1433_v46 = vcombine.low %v325_v32, %v329_v33 }
  0x42   : > { %912 = vmatprep.subr.bf16.mxu0 %v1394_v47  ;;  %955 = vmatprep.subr.bf16.mxu1 %v1396_v48  ;;  %v1435_v47 = vcombine.low %v326_v34, %v330_v35  ;;  %v1426_v48 = vcombine.high %v317_v40, %v321_v42  ;;  %v1428_v49 = vcombine.high %v318_v44, %v322_v45 }
  0x43   : > { %1439 = vmatprep.mubr.msk.bf16.mxu0 %vm820_vm0, %v1628_v43  ;;  %1440 = vmatprep.mubr.msk.bf16.mxu1 %vm820_vm0, %v1628_v43  ;;  %v262_v43 = vld [vmem:[%s1892_s1 + $0xd8] sm:$0xff] }
  0x44   : > { %v1372_v7 = vcombine.high %v262_v43, %v266_v3  ;;  %v1371_v13 = vcombine.low %v262_v43, %v266_v3 }
  0x45   : > { %913 = vmatpush1.bf16.msra.mxu0 %v1393_v53  ;;  %956 = vmatpush1.bf16.msra.mxu1 %v1395_v54  ;;  %v314_v53 = vld [vmem:[%s1892_s1 + $0x278] sm:$0xff]  ;;  %v1425_v54 = vcombine.low %v317_v40, %v321_v42 }
  0x46   : > { %914 = vmatprep.subr.bf16.mxu0 %v1386_v55  ;;  %957 = vmatprep.subr.bf16.mxu1 %v1388_v56  ;;  %v1427_v55 = vcombine.low %v318_v44, %v322_v45  ;;  %v1418_v56 = vcombine.high %v309_v50, %v313_v51  ;;  %v1420_v57 = vcombine.high %v310_v52, %v314_v53 }
  0x49   : > { %915 = vmatpush1.bf16.msra.mxu0 %v1385_v61  ;;  %958 = vmatpush1.bf16.msra.mxu1 %v1387_v62  ;;  %v306_v61 = vld [vmem:[%s1892_s1 + $0x238] sm:$0xff]  ;;  %v1417_v62 = vcombine.low %v309_v50, %v313_v51 }
  0x4a   : > { %916 = vmatprep.subr.bf16.mxu0 %v1378_v63  ;;  %959 = vmatprep.subr.bf16.mxu1 %v1380_v0  ;;  %v1419_v63 = vcombine.low %v310_v52, %v314_v53  ;;  %v1410_v0 = vcombine.high %v301_v58, %v305_v59  ;;  %v1412_v1 = vcombine.high %v302_v60, %v306_v61 }
  0x4b   : > { %v1411_v43 = vcombine.low %v302_v60, %v306_v61 }
  0x4d   : > { %917 = vmatpush1.bf16.msra.mxu0 %v1377_v4  ;;  %960 = vmatpush1.bf16.msra.mxu1 %v1379_v5  ;;  %v998_v5 = vlaneseq }
  0x4e   : > { %918 = vmatprep.subr.bf16.mxu0 %v1370_v6  ;;  %961 = vmatprep.subr.bf16.mxu1 %v1372_v7 }
  0x4f   : > { %v1861_v8 = vshrl.u32 %v998_v5, 7 }
  0x51   : > { %919 = vmatpush1.bf16.msra.mxu0 %v1369_v12  ;;  %962 = vmatpush1.bf16.msra.mxu1 %v1371_v13  ;;  %v1004_v10 = vsub.s32 1, %v1861_v8  ;;  %v1012_v12 = vsub.s32 3, %v1861_v8  ;;  %v1000_v13 = vsub.s32 0, %v1861_v8  ;;  %v1024_v59 = vsub.s32 6, %v1861_v8 }
  0x52   : > { %920 = vmatprep.subr.bf16.mxu0 %v1362_v14  ;;  %963 = vmatprep.subr.bf16.mxu1 %v1364_v15  ;;  %v996_v14 = vld [vmem:[%s1893_s2] sm:$0xff] }
  0x53   : > { %v1005_v16 = vrot.slane %v996_v14, %v1004_v10  ;;  %v1013_v18 = vrot.slane %v996_v14, %v1012_v12  ;;  %v1001_v19 = vrot.slane %v996_v14, %v1000_v13 }
  0x55   : > { %921 = vmatpush1.bf16.msra.mxu0 %v1361_v20  ;;  %964 = vmatpush1.bf16.msra.mxu1 %v1363_v21  ;;  %v1054_v21 = vld [vmem:[%s1894_s3] sm:$0xff] }
  0x56   : > { %922 = vmatprep.subr.bf16.mxu0 %v1354_v22  ;;  %965 = vmatprep.subr.bf16.mxu1 %v1356_v23  ;;  %v1063_v25 = vrot.slane %v1054_v21, %v1004_v10 }
  0x59   : > { %923 = vmatpush1.bf16.msra.mxu0 %v1353_v28  ;;  %966 = vmatpush1.bf16.msra.mxu1 %v1355_v29  ;;  %v1071_v28 = vrot.slane %v1054_v21, %v1012_v12 }
  0x5a   : > { %924 = vmatprep.subr.bf16.mxu0 %v1346_v30  ;;  %967 = vmatprep.subr.bf16.mxu1 %v1348_v31  ;;  %v1059_v31 = vrot.slane %v1054_v21, %v1000_v13 }
  0x5d   : > { %925 = vmatpush1.bf16.msra.mxu0 %v1345_v36  ;;  %968 = vmatpush1.bf16.msra.mxu1 %v1347_v37 }
  0x5e   : > { %934 = vmatprep.subr.bf16.mxu0 %v1434_v38  ;;  %977 = vmatprep.subr.bf16.mxu1 %v1436_v39 }
  0x61   : > { %935 = vmatpush2.bf16.msra.mxu0 %v1433_v46  ;;  %978 = vmatpush2.bf16.msra.mxu1 %v1435_v47 }
  0x62   : > { %936 = vmatprep.subr.bf16.mxu0 %v1426_v48  ;;  %979 = vmatprep.subr.bf16.mxu1 %v1428_v49 }
  0x65   : > { %937 = vmatpush2.bf16.msra.mxu0 %v1425_v54  ;;  %980 = vmatpush2.bf16.msra.mxu1 %v1427_v55 }
  0x66   : > { %938 = vmatprep.subr.bf16.mxu0 %v1418_v56  ;;  %981 = vmatprep.subr.bf16.mxu1 %v1420_v57  ;;  %v1016_v56 = vsub.s32 4, %v1861_v8 }
  0x69   : > { %939 = vmatpush2.bf16.msra.mxu0 %v1417_v62  ;;  %982 = vmatpush2.bf16.msra.mxu1 %v1419_v63  ;;  %v1020_v62 = vsub.s32 5, %v1861_v8 }
  0x6a   : > { %940 = vmatprep.subr.bf16.mxu0 %v1410_v0  ;;  %983 = vmatprep.subr.bf16.mxu1 %v1412_v1  ;;  %v1028_v1 = vsub.s32 7, %v1861_v8 }
  0x6c   : > { %v1029_v12 = vrot.slane %v996_v14, %v1028_v1 }
  0x6d   : > { %941 = vmatpush2.bf16.msra.mxu0 %v1409_v2  ;;  %984 = vmatpush2.bf16.msra.mxu1 %v1411_v43  ;;  %v1017_v43 = vrot.slane %v996_v14, %v1016_v56 }
  0x70   : > { %943 = vmatmul.mubr.bf16.vlgmr.msra.gmra.mxu0 %v1725_v41  ;;  %986 = vmatmul.mubr.bf16.vlgmr.msra.gmra.mxu1 %v1725_v41  ;;  %v1008_v41 = vsub.s32 2, %v1861_v8 }
  0x72   : > { %v1009_v22 = vrot.slane %v996_v14, %v1008_v41  ;;  %v1067_v34 = vrot.slane %v1054_v21, %v1008_v41 }
 0x100   : > { %v858_v3 = vpop.f32.mrf.mxu0  ;;  %v901_v4 = vpop.f32.mrf.mxu1 }
 0x101   : > { %v1038_v30 = vmul.f32 %v1001_v19, %v858_v3  ;;  %v1040_v33 = vmul.f32 %v1009_v22, %v901_v4  ;;  %v1025_v4 = vrot.slane %v996_v14, %v1024_v59 }
 0x102   : > { %v860_v6 = vpop.f32.mrf.mxu0  ;;  %v903_v7 = vpop.f32.mrf.mxu1 }
 0x103   : > { %v1039_v24 = vmul.f32 %v1005_v16, %v860_v6  ;;  %v1041_v27 = vmul.f32 %v1013_v18, %v903_v7  ;;  %v1096_v40 = vadd.f32 %v1059_v31, %v1038_v30  ;;  %v1098_v44 = vadd.f32 %v1067_v34, %v1040_v33 }
 0x104   : > { %v862_v9 = vpop.f32.mrf.mxu0  ;;  %v905_v11 = vpop.f32.mrf.mxu1  ;;  %v1075_v6 = vrot.slane %v1054_v21, %v1016_v56  ;;  %v1021_v7 = vrot.slane %v996_v14, %v1020_v62 }
 0x105   : > { %v1046_v26 = vmul.f32 %v1001_v19, %v862_v9  ;;  %v1048_v29 = vmul.f32 %v1009_v22, %v905_v11  ;;  %v1097_v36 = vadd.f32 %v1063_v25, %v1039_v24  ;;  %v1099_v38 = vadd.f32 %v1071_v28, %v1041_v27 }
 0x106   : > { %v864_v15 = vpop.f32.mrf.mxu0  ;;  %v907_v17 = vpop.f32.mrf.mxu1  ;;  %v1112_v50 = vmul.f32 0.2, %v1096_v40  ;;  %v1114_v52 = vmul.f32 0.2, %v1098_v44  ;;  %v1083_v11 = vrot.slane %v1054_v21, %v1024_v59 }
 0x107   : > { %v1047_v20 = vmul.f32 %v1005_v16, %v864_v15  ;;  %v1049_v23 = vmul.f32 %v1013_v18, %v907_v17  ;;  %v1104_v37 = vadd.f32 %v1059_v31, %v1046_v26  ;;  %v1106_v39 = vadd.f32 %v1067_v34, %v1048_v29 }
 0x108   : > { %v1113_v46 = vmul.f32 0.2, %v1097_v36  ;;  %v1115_v48 = vmul.f32 0.2, %v1099_v38  ;;  %v1128_v60 = vmax.f32 %v1096_v40, %v1112_v50  ;;  %v1130_v63 = vmax.f32 %v1098_v44, %v1114_v52 }
 0x109   : > { %v1105_v32 = vadd.f32 %v1063_v25, %v1047_v20  ;;  %v1107_v35 = vadd.f32 %v1071_v28, %v1049_v23  ;;  %v1120_v47 = vmul.f32 0.2, %v1104_v37  ;;  %v1122_v49 = vmul.f32 0.2, %v1106_v39 }
 0x10a   : > { %v1129_v54 = vmax.f32 %v1097_v36, %v1113_v46  ;;  %v1131_v57 = vmax.f32 %v1099_v38, %v1115_v48  ;;  %v1079_v16 = vrot.slane %v1054_v21, %v1020_v62  ;;  %v1087_v20 = vrot.slane %v1054_v21, %v1028_v1 }
 0x10b   : > { %v1121_v42 = vmul.f32 0.2, %v1105_v32  ;;  %v1123_v45 = vmul.f32 0.2, %v1107_v35  ;;  %v1136_v55 = vmax.f32 %v1104_v37, %v1120_v47  ;;  %v1138_v58 = vmax.f32 %v1106_v39, %v1122_v49 }
 0x10d   : > { %v1137_v51 = vmax.f32 %v1105_v32, %v1121_v42  ;;  %v1139_v53 = vmax.f32 %v1107_v35, %v1123_v45  ;;  %v1145_v2 = vmax.f32 %v1128_v60, %v1136_v55  ;;  %v1159_v3 = vmax.f32 %v1130_v63, %v1138_v58 }
 0x10f   : > { %v1152_v61 = vmax.f32 %v1129_v54, %v1137_v51  ;;  %v1166_v0 = vmax.f32 %v1131_v57, %v1139_v53  ;;  %v1146_v13 = vrot.slane %v1145_v2, 4  ;;  %v1160_v17 = vrot.slane %v1159_v3, 4 }
 0x111   : > { %v1153_v5 = vrot.slane %v1152_v61, 4  ;;  %v1167_v9 = vrot.slane %v1166_v0, 4  ;;  %v1147_v30 = vmax.f32 %v1145_v2, %v1146_v13  ;;  %v1161_v33 = vmax.f32 %v1159_v3, %v1160_v17 }
 0x113   : > { %v1154_v22 = vmax.f32 %v1152_v61, %v1153_v5  ;;  %v1168_v26 = vmax.f32 %v1166_v0, %v1167_v9  ;;  %v1148_v47 = vrot.slane %v1147_v30, 2  ;;  %v1162_v51 = vrot.slane %v1161_v33, 2 }
 0x115   : > { %v1155_v37 = vrot.slane %v1154_v22, 2  ;;  %v1169_v42 = vrot.slane %v1168_v26, 2  ;;  %v1149_v63 = vmax.f32 %v1147_v30, %v1148_v47 }
 0x117   : > { %v1156_v55 = vmax.f32 %v1154_v22, %v1155_v37  ;;  %v1170_v59 = vmax.f32 %v1168_v26, %v1169_v42  ;;  %v1150_v17 = vrot.slane %v1149_v63, 1 }
 0x130   : > { %v944_v10 = vpop.f32.mrf.mxu0  ;;  %v987_v15 = vpop.f32.mrf.mxu1 }
 0x131   : > { %v1042_v41 = vmul.f32 %v1017_v43, %v944_v10  ;;  %v1044_v18 = vmul.f32 %v1025_v4, %v987_v15 }
 0x132   : > { %v946_v19 = vpop.f32.mrf.mxu0  ;;  %v989_v25 = vpop.f32.mrf.mxu1 }
 0x133   : > { %v1100_v23 = vadd.f32 %v1075_v6, %v1042_v41  ;;  %v1043_v24 = vmul.f32 %v1021_v7, %v946_v19  ;;  %v1102_v27 = vadd.f32 %v1083_v11, %v1044_v18  ;;  %v1045_v28 = vmul.f32 %v1029_v12, %v989_v25 }
 0x134   : > { %v948_v29 = vpop.f32.mrf.mxu0  ;;  %v991_v14 = vpop.f32.mrf.mxu1 }
 0x135   : > { %v1101_v31 = vadd.f32 %v1079_v16, %v1043_v24  ;;  %v1050_v32 = vmul.f32 %v1017_v43, %v948_v29  ;;  %v1103_v34 = vadd.f32 %v1087_v20, %v1045_v28  ;;  %v1052_v35 = vmul.f32 %v1025_v4, %v991_v14 }
 0x136   : > { %v950_v36 = vpop.f32.mrf.mxu0  ;;  %v1116_v38 = vmul.f32 0.2, %v1100_v23  ;;  %v993_v40 = vpop.f32.mrf.mxu1  ;;  %v1118_v44 = vmul.f32 0.2, %v1102_v27  ;;  %v1163_v43 = vmax.f32 %v1161_v33, %v1162_v51 }
 0x137   : > { %v1108_v39 = vadd.f32 %v1075_v6, %v1050_v32  ;;  %v1051_v21 = vmul.f32 %v1021_v7, %v950_v36  ;;  %v1110_v45 = vadd.f32 %v1083_v11, %v1052_v35  ;;  %v1053_v46 = vmul.f32 %v1029_v12, %v993_v40 }
 0x138   : > { %v1117_v48 = vmul.f32 0.2, %v1101_v31  ;;  %v1119_v52 = vmul.f32 0.2, %v1103_v34  ;;  %v1132_v56 = vmax.f32 %v1100_v23, %v1116_v38  ;;  %v1134_v60 = vmax.f32 %v1102_v27, %v1118_v44 }
 0x139   : > { %v1124_v49 = vmul.f32 0.2, %v1108_v39  ;;  %v1109_v50 = vadd.f32 %v1079_v16, %v1051_v21  ;;  %v1126_v53 = vmul.f32 0.2, %v1110_v45  ;;  %v1111_v54 = vadd.f32 %v1087_v20, %v1053_v46 }
 0x13a   : > { %v1133_v0 = vmax.f32 %v1101_v31, %v1117_v48  ;;  %v1135_v3 = vmax.f32 %v1103_v34, %v1119_v52  ;;  %v1497_v6 = vmov 1966171168   ;;  %v1157_v11 = vrot.slane %v1156_v55, 1 }
 0x13b   : > { %v1140_v57 = vmax.f32 %v1108_v39, %v1124_v49  ;;  %v1125_v58 = vmul.f32 0.2, %v1109_v50  ;;  %v1142_v61 = vmax.f32 %v1110_v45, %v1126_v53  ;;  %v1127_v62 = vmul.f32 0.2, %v1111_v54 }
 0x13c   : > { %v1214_v7 = vunpack.c.l.s4 %v1497_v6  ;;  %v1171_v12 = vrot.slane %v1170_v59, 1  ;;  %v1164_v18 = vrot.slane %v1163_v43, 1  ;;  %v1158_v25 = vmax.f32 %v1156_v55, %v1157_v11 }
 0x13d   : > { %v1173_v1 = vmax.f32 %v1132_v56, %v1140_v57  ;;  %v1141_v2 = vmax.f32 %v1109_v50, %v1125_v58  ;;  %v1187_v4 = vmax.f32 %v1134_v60, %v1142_v61  ;;  %v1143_v5 = vmax.f32 %v1111_v54, %v1127_v62 }
 0x13e   : > { %v1215_v22 = vunpack.c.0.s8 %v1214_v7  ;;  %v1172_v26 = vmax.f32 %v1170_v59, %v1171_v12  ;;  %v1151_v31 = vmax.f32 %v1149_v63, %v1150_v17  ;;  %v1165_v32 = vmax.f32 %v1163_v43, %v1164_v18 }
 0x13f   : > { %v1174_v9 = vrot.slane %v1173_v1, 4  ;;  %v1180_v10 = vmax.f32 %v1133_v0, %v1141_v2  ;;  %v1188_v13 = vrot.slane %v1187_v4, 4  ;;  %v1194_v41 = vmax.f32 %v1135_v3, %v1143_v5 }
 0x140   : > { %v1218_v34 = vsub.s32 %v1215_v22, %v1861_v8  ;;  %v1209_v37 = vcombine.low %v1151_v31, %v1158_v25  ;;  %v1210_v38 = vcombine.low %v1165_v32, %v1172_v26 }
 0x141   : > { %v1175_v15 = vmax.f32 %v1173_v1, %v1174_v9  ;;  %v1181_v16 = vrot.slane %v1180_v10, 4  ;;  %v1189_v19 = vmax.f32 %v1187_v4, %v1188_v13  ;;  %v1195_v20 = vrot.slane %v1194_v41, 4 }
 0x142   : > { %v1219_v46 = vrot.slane %v1209_v37, %v1218_v34  ;;  %v1226_v47 = vrot.slane %v1210_v38, %v1218_v34 }
 0x143   : > { %v1176_v23 = vrot.slane %v1175_v15, 2  ;;  %v1182_v24 = vmax.f32 %v1180_v10, %v1181_v16  ;;  %v1190_v27 = vrot.slane %v1189_v19, 2  ;;  %v1196_v28 = vmax.f32 %v1194_v41, %v1195_v20 }
 0x144   : > { %v1241_v53 = vcombine.low %v1219_v46, %v1226_v47 }
 0x145   : > { %v1177_v29 = vmax.f32 %v1175_v15, %v1176_v23  ;;  %v1183_v30 = vrot.slane %v1182_v24, 2  ;;  %v1191_v14 = vmax.f32 %v1189_v19, %v1190_v27  ;;  %v1197_v33 = vrot.slane %v1196_v28, 2 }
 0x146   : > { %v1249_v55 = vrot.slane %v1241_v53, %v1218_v34 }
 0x147   : > { %v1178_v35 = vrot.slane %v1177_v29, 1  ;;  %v1184_v36 = vmax.f32 %v1182_v24, %v1183_v30  ;;  %v1192_v39 = vrot.slane %v1191_v14, 1  ;;  %v1198_v21 = vmax.f32 %v1196_v28, %v1197_v33 }
 0x149   : > { %v1185_v40 = vrot.slane %v1184_v36, 1  ;;  %v1199_v42 = vrot.slane %v1198_v21, 1  ;;  %v1179_v44 = vmax.f32 %v1177_v29, %v1178_v35  ;;  %v1193_v48 = vmax.f32 %v1191_v14, %v1192_v39 }
 0x14b   : > { %v1186_v45 = vmax.f32 %v1184_v36, %v1185_v40  ;;  %v1200_v49 = vmax.f32 %v1198_v21, %v1199_v42 }
 0x14d   : > { %v1211_v50 = vcombine.low %v1179_v44, %v1186_v45  ;;  %v1212_v51 = vcombine.low %v1193_v48, %v1200_v49 }
 0x14f   : > { %v1233_v52 = vrot.slane %v1211_v50, %v1218_v34  ;;  %v1240_v8 = vrot.slane %v1212_v51, %v1218_v34 }
 0x151   : > { %v1242_v54 = vcombine.low %v1233_v52, %v1240_v8 }
 0x153   : > { %v1256_v56 = vrot.slane %v1242_v54, %v1218_v34 }
 0x155   : > { %v1257_v57 = vcombine.low %v1249_v55, %v1256_v56 }
 0x157   : > { %1260 = vst [vmem:[%s226_s27] sm:$0xff] %v1257_v57 }
 0x158 PF: > { %s14_s17 = sadd.s32 1, %s1495_s17   ;;  %s1896_s15 = smov %s1491_s16 }
 0x159   : > { %p11_p5 = scmp.ge.s32.totalorder %s14_s17, 4   ;;  %s1897_s16 = smov %s1899_s18 }
 0x15b   :  { %13 = sbr.rel (!%p11_p5) target bundleno = 2 (0x2), region = 70 }

// kernel: dgcnn_forward.15
= control target key start
LH: loop header
LB: loop body
LE: loop exit
PB: predicated region body
PF: predicated region fallthrough
CT: control target
= control target key end

     0   :  { %s2075_s30 = smov 0   ;;  %s2077_s10 = smov 0   ;;  %s2585_s0 = inlined_call_operand.vmem [shape: f32[2,1,512], index: 0, kind: input, shape index: {}]   ;;  %s2586_s1 = inlined_call_operand.vmem [shape: bf16[2,16,192], index: 1, kind: input, shape index: {}]   ;;  %s2587_s2 = inlined_call_operand.vmem [shape: bf16[192,512], index: 2, kind: input, shape index: {}]   ;;  %s2588_s3 = inlined_call_operand.vmem [shape: f32[1,512], index: 3, kind: input, shape index: {}]   ;;  %s2589_s4 = inlined_call_operand.vmem [shape: f32[1,512], index: 4, kind: input, shape index: {}]   ;;  %s2590_s5 = inlined_call_operand.vmem [shape: bf16[512,256], index: 5, kind: input, shape index: {}]   ;;  %s2591_s6 = inlined_call_operand.vmem [shape: f32[1,256], index: 6, kind: input, shape index: {}]   ;;  %s2592_s7 = inlined_call_operand.vmem [shape: f32[1,256], index: 7, kind: input, shape index: {}]   ;;  %s2593_s8 = inlined_call_operand.vmem [shape: f32[256,16], index: 8, kind: input, shape index: {}]   ;;  %s2594_s9 = inlined_call_operand.vmem [shape: f32[2,16,16], index: 9, kind: output, shape index: {}]  }
   0x1   :  { %s2079_s11 = smov 0  }
   0x2 LB: > { %s31_s12 = sadd.s32 1, %s2019_s10  ;;  %p1610_p0 = scmp.ge.s32.totalorder %s2023_s11, 1  ;;  %s2023_s11 = sphi %s2079_s11, %s19_s11   ;;  %s2019_s10 = sphi %s2077_s10, %s2596_s10   ;;  %s2015_s30 = sphi %s2075_s30, %s2595_s30  }
   0x3   : > { %p33_p1 = scmp.ge.s32.totalorder %s31_s12, 2  ;;  %p318_p2 = scmp.lt.s32.totalorder %s2023_s11, 3 }
   0x5   : > { %s2598_s12 = smov (%p33_p1, %s31_s12), 0  ;;  %p319_p3 = pnand %p1610_p0, %p318_p2 }
   0x6   : > { %p367_p4 = scmp.lt.s32.totalorder (!%p319_p3), %s2015_s30, 1 }
   0x7   : > { %322 = sbr.rel (%p319_p3) target bundleno = 682 (0x2aa), region = 56 }
   0xc   : > { %v1830_v0 = vld [vmem:[%s2587_s2 + $0xe4] ss:$16 sps:$4 sm:$0xff]   ;;  %v1832_v1 = vld [vmem:[%s2587_s2 + $0xec] ss:$16 sps:$4 sm:$0xff]   ;;  %v1834_v2 = vld [vmem:[%s2587_s2 + $0xe0] ss:$16 sps:$4 sm:$0xff]  }
   0xd   : > { %718 = vmatprep.subr.bf16.mxu0 %v1830_v0  ;;  %v1835_v3 = vld [vmem:[%s2587_s2 + $0xe8] ss:$16 sps:$4 sm:$0xff]   ;;  %761 = vmatprep.subr.bf16.mxu1 %v1832_v1  ;;  %v1836_v4 = vld [vmem:[%s2587_s2 + $0xc4] ss:$16 sps:$4 sm:$0xff]   ;;  %v1838_v5 = vld [vmem:[%s2587_s2 + $0xcc] ss:$16 sps:$4 sm:$0xff]  }
   0xe   : > { %719 = vmatpush1.bf16.msra.mxu0 %v1834_v2  ;;  %762 = vmatpush1.bf16.msra.mxu1 %v1835_v3  ;;  %v1840_v6 = vld [vmem:[%s2587_s2 + $0xc0] ss:$16 sps:$4 sm:$0xff]   ;;  %v1841_v7 = vld [vmem:[%s2587_s2 + $0xc8] ss:$16 sps:$4 sm:$0xff]   ;;  %v1842_v8 = vld [vmem:[%s2587_s2 + $0xa4] ss:$16 sps:$4 sm:$0xff]  }
   0xf   : > { %720 = vmatprep.subr.bf16.mxu0 %v1836_v4  ;;  %763 = vmatprep.subr.bf16.mxu1 %v1838_v5  ;;  %v1844_v9 = vld [vmem:[%s2587_s2 + $0xac] ss:$16 sps:$4 sm:$0xff]   ;;  %v1846_v10 = vld [vmem:[%s2587_s2 + $0xa0] ss:$16 sps:$4 sm:$0xff]   ;;  %v1847_v11 = vld [vmem:[%s2587_s2 + $0xa8] ss:$16 sps:$4 sm:$0xff]  }
  0x10   : > { %v1848_v12 = vld [vmem:[%s2587_s2 + $0x84] ss:$16 sps:$4 sm:$0xff]   ;;  %v1850_v13 = vld [vmem:[%s2587_s2 + $0x8c] ss:$16 sps:$4 sm:$0xff]   ;;  %v1852_v14 = vld [vmem:[%s2587_s2 + $0x80] ss:$16 sps:$4 sm:$0xff]  }
  0x11   : > { %v1853_v15 = vld [vmem:[%s2587_s2 + $0x88] ss:$16 sps:$4 sm:$0xff]   ;;  %v1854_v16 = vld [vmem:[%s2587_s2 + $0x64] ss:$16 sps:$4 sm:$0xff]   ;;  %v1856_v17 = vld [vmem:[%s2587_s2 + $0x6c] ss:$16 sps:$4 sm:$0xff]  }
  0x12   : > { %721 = vmatpush1.bf16.msra.mxu0 %v1840_v6  ;;  %764 = vmatpush1.bf16.msra.mxu1 %v1841_v7  ;;  %v1858_v18 = vld [vmem:[%s2587_s2 + $0x60] ss:$16 sps:$4 sm:$0xff]   ;;  %v1859_v19 = vld [vmem:[%s2587_s2 + $0x68] ss:$16 sps:$4 sm:$0xff]   ;;  %v1860_v20 = vld [vmem:[%s2587_s2 + $0x44] ss:$16 sps:$4 sm:$0xff]  }
  0x13   : > { %722 = vmatprep.subr.bf16.mxu0 %v1842_v8  ;;  %765 = vmatprep.subr.bf16.mxu1 %v1844_v9  ;;  %v1862_v21 = vld [vmem:[%s2587_s2 + $0x4c] ss:$16 sps:$4 sm:$0xff]   ;;  %v1864_v22 = vld [vmem:[%s2587_s2 + $0x40] ss:$16 sps:$4 sm:$0xff]   ;;  %v1865_v23 = vld [vmem:[%s2587_s2 + $0x48] ss:$16 sps:$4 sm:$0xff]  }
  0x14   : > { %v1866_v24 = vld [vmem:[%s2587_s2 + $0x24] ss:$16 sps:$4 sm:$0xff]   ;;  %v1868_v25 = vld [vmem:[%s2587_s2 + $0x2c] ss:$16 sps:$4 sm:$0xff]   ;;  %v1870_v26 = vld [vmem:[%s2587_s2 + $0x20] ss:$16 sps:$4 sm:$0xff]  }
  0x15   : > { %v1871_v27 = vld [vmem:[%s2587_s2 + $0x28] ss:$16 sps:$4 sm:$0xff]   ;;  %s2600_s30 = smov (!%p367_p4, %s2015_s30), 1  ;;  %v1872_v28 = vld [vmem:[%s2587_s2 + $0x4] ss:$16 sps:$4 sm:$0xff]   ;;  %vm714_vm0 = vcmask 523264  }
  0x16   : > { %723 = vmatpush1.bf16.msra.mxu0 %v1846_v10  ;;  %766 = vmatpush1.bf16.msra.mxu1 %v1847_v11  ;;  %v1874_v29 = vld [vmem:[%s2587_s2 + $0xc] ss:$16 sps:$4 sm:$0xff]   ;;  %v1876_v30 = vld [vmem:[%s2587_s2] ss:$16 sps:$4 sm:$0xff]   ;;  %s1734_s24 = sshll.u32 %s2600_s30, 4  ;;  %s1611_s17 = sshll.u32 %s2600_s30, 2 }
  0x17   : > { %724 = vmatprep.subr.bf16.mxu0 %v1848_v12  ;;  %767 = vmatprep.subr.bf16.mxu1 %v1850_v13  ;;  %v1877_v31 = vld [vmem:[%s2587_s2 + $0x8] ss:$16 sps:$4 sm:$0xff]   ;;  %v1878_v32 = vld [vmem:[%s2587_s2 + $0x164] ss:$16 sps:$4 sm:$0xff]   ;;  %v1880_v33 = vld [vmem:[%s2587_s2 + $0x16c] ss:$16 sps:$4 sm:$0xff]   ;;  %s2207_s16 = scalar_lea.vmem %s2586_s1, %s1734_s24  ;;  %s370_s20 = scalar_lea.vmem %s2585_s0, %s1611_s17 }
  0x18   : > { %v1882_v34 = vld [vmem:[%s2587_s2 + $0x160] ss:$16 sps:$4 sm:$0xff]   ;;  %v1883_v35 = vld [vmem:[%s2587_s2 + $0x168] ss:$16 sps:$4 sm:$0xff]   ;;  %v1884_v36 = vld [vmem:[%s2587_s2 + $0x144] ss:$16 sps:$4 sm:$0xff]   ;;  %s390_s29 = scalar_lea.vmem %s2594_s9, %s1734_s24 }
  0x19   : > { %v1886_v37 = vld [vmem:[%s2587_s2 + $0x14c] ss:$16 sps:$4 sm:$0xff]   ;;  %v1888_v39 = vld [vmem:[%s2587_s2 + $0x140] ss:$16 sps:$4 sm:$0xff]   ;;  %v1889_v40 = vld [vmem:[%s2587_s2 + $0x148] ss:$16 sps:$4 sm:$0xff]  }
  0x1a   : > { %725 = vmatpush1.bf16.msra.mxu0 %v1852_v14  ;;  %768 = vmatpush1.bf16.msra.mxu1 %v1853_v15  ;;  %v1904_v38 = vld [vmem:[%s2207_s16 + $0x4] ss:$8 sps:$4 sm:$0xff]   ;;  %v1894_v43 = vld [vmem:[%s2587_s2 + $0x120] ss:$16 sps:$4 sm:$0xff]   ;;  %v1895_v44 = vld [vmem:[%s2587_s2 + $0x128] ss:$16 sps:$4 sm:$0xff]  }
  0x1b   : > { %726 = vmatprep.subr.bf16.mxu0 %v1854_v16  ;;  %769 = vmatprep.subr.bf16.mxu1 %v1856_v17  ;;  %v1890_v41 = vld [vmem:[%s2587_s2 + $0x124] ss:$16 sps:$4 sm:$0xff]   ;;  %v1892_v42 = vld [vmem:[%s2587_s2 + $0x12c] ss:$16 sps:$4 sm:$0xff]   ;;  %v1900_v47 = vld [vmem:[%s2587_s2 + $0x100] ss:$16 sps:$4 sm:$0xff]  }
  0x1c   : > { %1666 = vmatprep.mubr.msk.bf16.mxu0 %vm714_vm0, %v1904_v38  ;;  %1667 = vmatprep.mubr.msk.bf16.mxu1 %vm714_vm0, %v1904_v38  ;;  %v1896_v45 = vld [vmem:[%s2587_s2 + $0x104] ss:$16 sps:$4 sm:$0xff]   ;;  %v1898_v46 = vld [vmem:[%s2587_s2 + $0x10c] ss:$16 sps:$4 sm:$0xff]   ;;  %v1901_v48 = vld [vmem:[%s2587_s2 + $0x108] ss:$16 sps:$4 sm:$0xff]  }
  0x1d   : > { %v1907_v49 = vld [vmem:[%s2590_s5 + $0x74] ss:$8 sps:$4 sm:$0xff]   ;;  %v1902_v51 = vld [vmem:[%s2207_s16] ss:$8 sps:$4 sm:$0xff]   ;;  %v1905_v52 = vld [vmem:[%s2590_s5 + $0x70] ss:$8 sps:$4 sm:$0xff]  }
  0x1e   : > { %727 = vmatpush1.bf16.msra.mxu0 %v1858_v18  ;;  %770 = vmatpush1.bf16.msra.mxu1 %v1859_v19  ;;  %v1910_v50 = vld [vmem:[%s2590_s5 + $0x174] ss:$8 sps:$4 sm:$0xff]   ;;  %v1908_v53 = vld [vmem:[%s2590_s5 + $0x170] ss:$8 sps:$4 sm:$0xff]   ;;  %v1913_v54 = vld [vmem:[%s2590_s5 + $0x64] ss:$8 sps:$4 sm:$0xff]  }
  0x1f   : > { %728 = vmatprep.subr.bf16.mxu0 %v1860_v20  ;;  %771 = vmatprep.subr.bf16.mxu1 %v1862_v21  ;;  %v1916_v55 = vld [vmem:[%s2590_s5 + $0x164] ss:$8 sps:$4 sm:$0xff]   ;;  %v1911_v56 = vld [vmem:[%s2590_s5 + $0x60] ss:$8 sps:$4 sm:$0xff]   ;;  %v1919_v58 = vld [vmem:[%s2590_s5 + $0x54] ss:$8 sps:$4 sm:$0xff]  }
  0x20   : > { %v1914_v57 = vld [vmem:[%s2590_s5 + $0x160] ss:$8 sps:$4 sm:$0xff]   ;;  %v1922_v59 = vld [vmem:[%s2590_s5 + $0x154] ss:$8 sps:$4 sm:$0xff]   ;;  %v1917_v60 = vld [vmem:[%s2590_s5 + $0x50] ss:$8 sps:$4 sm:$0xff]  }
  0x21   : > { %v1920_v61 = vld [vmem:[%s2590_s5 + $0x150] ss:$8 sps:$4 sm:$0xff]   ;;  %v1925_v62 = vld [vmem:[%s2590_s5 + $0x44] ss:$8 sps:$4 sm:$0xff]   ;;  %v1923_v0 = vld [vmem:[%s2590_s5 + $0x40] ss:$8 sps:$4 sm:$0xff]  }
  0x22   : > { %729 = vmatpush1.bf16.msra.mxu0 %v1864_v22  ;;  %772 = vmatpush1.bf16.msra.mxu1 %v1865_v23  ;;  %v1928_v63 = vld [vmem:[%s2590_s5 + $0x144] ss:$8 sps:$4 sm:$0xff]   ;;  %v1926_v1 = vld [vmem:[%s2590_s5 + $0x140] ss:$8 sps:$4 sm:$0xff]   ;;  %v1931_v2 = vld [vmem:[%s2590_s5 + $0x34] ss:$8 sps:$4 sm:$0xff]  }
  0x23   : > { %730 = vmatprep.subr.bf16.mxu0 %v1866_v24  ;;  %773 = vmatprep.subr.bf16.mxu1 %v1868_v25  ;;  %v1934_v3 = vld [vmem:[%s2590_s5 + $0x134] ss:$8 sps:$4 sm:$0xff]   ;;  %v1929_v4 = vld [vmem:[%s2590_s5 + $0x30] ss:$8 sps:$4 sm:$0xff]   ;;  %v1937_v6 = vld [vmem:[%s2590_s5 + $0x24] ss:$8 sps:$4 sm:$0xff]  }
  0x24   : > { %v1932_v5 = vld [vmem:[%s2590_s5 + $0x130] ss:$8 sps:$4 sm:$0xff]   ;;  %v1940_v7 = vld [vmem:[%s2590_s5 + $0x124] ss:$8 sps:$4 sm:$0xff]   ;;  %v1935_v8 = vld [vmem:[%s2590_s5 + $0x20] ss:$8 sps:$4 sm:$0xff]  }
  0x25   : > { %v1938_v9 = vld [vmem:[%s2590_s5 + $0x120] ss:$8 sps:$4 sm:$0xff]   ;;  %v1943_v10 = vld [vmem:[%s2590_s5 + $0x14] ss:$8 sps:$4 sm:$0xff]   ;;  %v1941_v12 = vld [vmem:[%s2590_s5 + $0x10] ss:$8 sps:$4 sm:$0xff]  }
  0x26   : > { %731 = vmatpush1.bf16.msra.mxu0 %v1870_v26  ;;  %774 = vmatpush1.bf16.msra.mxu1 %v1871_v27  ;;  %v1946_v11 = vld [vmem:[%s2590_s5 + $0x114] ss:$8 sps:$4 sm:$0xff]   ;;  %v1944_v13 = vld [vmem:[%s2590_s5 + $0x110] ss:$8 sps:$4 sm:$0xff]   ;;  %v1949_v14 = vld [vmem:[%s2590_s5 + $0x4] ss:$8 sps:$4 sm:$0xff]  }
  0x27   : > { %732 = vmatprep.subr.bf16.mxu0 %v1872_v28  ;;  %775 = vmatprep.subr.bf16.mxu1 %v1874_v29  ;;  %v1952_v15 = vld [vmem:[%s2590_s5 + $0x104] ss:$8 sps:$4 sm:$0xff]   ;;  %v1947_v16 = vld [vmem:[%s2590_s5] ss:$8 sps:$4 sm:$0xff]   ;;  %v1955_v18 = vld [vmem:[%s2590_s5 + $0xf4] ss:$8 sps:$4 sm:$0xff]  }
  0x28   : > { %v1950_v17 = vld [vmem:[%s2590_s5 + $0x100] ss:$8 sps:$4 sm:$0xff]   ;;  %v1958_v19 = vld [vmem:[%s2590_s5 + $0x1f4] ss:$8 sps:$4 sm:$0xff]   ;;  %v1953_v20 = vld [vmem:[%s2590_s5 + $0xf0] ss:$8 sps:$4 sm:$0xff]  }
  0x29   : > { %v1956_v21 = vld [vmem:[%s2590_s5 + $0x1f0] ss:$8 sps:$4 sm:$0xff]   ;;  %v1961_v22 = vld [vmem:[%s2590_s5 + $0xe4] ss:$8 sps:$4 sm:$0xff]   ;;  %v1959_v24 = vld [vmem:[%s2590_s5 + $0xe0] ss:$8 sps:$4 sm:$0xff]  }
  0x2a   : > { %733 = vmatpush1.bf16.msra.mxu0 %v1876_v30  ;;  %776 = vmatpush1.bf16.msra.mxu1 %v1877_v31  ;;  %v1964_v23 = vld [vmem:[%s2590_s5 + $0x1e4] ss:$8 sps:$4 sm:$0xff]   ;;  %v1962_v25 = vld [vmem:[%s2590_s5 + $0x1e0] ss:$8 sps:$4 sm:$0xff]   ;;  %v1967_v26 = vld [vmem:[%s2590_s5 + $0xd4] ss:$8 sps:$4 sm:$0xff]  }
  0x2b   : > { %742 = vmatprep.subr.bf16.mxu0 %v1878_v32  ;;  %785 = vmatprep.subr.bf16.mxu1 %v1880_v33  ;;  %v1970_v27 = vld [vmem:[%s2590_s5 + $0x1d4] ss:$8 sps:$4 sm:$0xff]   ;;  %v1965_v28 = vld [vmem:[%s2590_s5 + $0xd0] ss:$8 sps:$4 sm:$0xff]   ;;  %v1973_v30 = vld [vmem:[%s2590_s5 + $0xc4] ss:$8 sps:$4 sm:$0xff]  }
  0x2c   : > { %v1968_v29 = vld [vmem:[%s2590_s5 + $0x1d0] ss:$8 sps:$4 sm:$0xff]   ;;  %v1976_v31 = vld [vmem:[%s2590_s5 + $0x1c4] ss:$8 sps:$4 sm:$0xff]   ;;  %v1971_v32 = vld [vmem:[%s2590_s5 + $0xc0] ss:$8 sps:$4 sm:$0xff]  }
  0x2d   : > { %v1974_v33 = vld [vmem:[%s2590_s5 + $0x1c0] ss:$8 sps:$4 sm:$0xff]   ;;  %v1985_v38 = vld [vmem:[%s2590_s5 + $0xa4] ss:$8 sps:$4 sm:$0xff]   ;;  %vm1501_vm1 = vcmask 130048  }
  0x2e   : > { %743 = vmatpush2.bf16.msra.mxu0 %v1882_v34  ;;  %786 = vmatpush2.bf16.msra.mxu1 %v1883_v35  ;;  %v1979_v34 = vld [vmem:[%s2590_s5 + $0xb4] ss:$8 sps:$4 sm:$0xff]  }
  0x2f   : > { %744 = vmatprep.subr.bf16.mxu0 %v1884_v36  ;;  %787 = vmatprep.subr.bf16.mxu1 %v1886_v37  ;;  %v1982_v35 = vld [vmem:[%s2590_s5 + $0x1b4] ss:$8 sps:$4 sm:$0xff]   ;;  %v1977_v36 = vld [vmem:[%s2590_s5 + $0xb0] ss:$8 sps:$4 sm:$0xff]  }
  0x30   : > { %v1980_v37 = vld [vmem:[%s2590_s5 + $0x1b0] ss:$8 sps:$4 sm:$0xff]  }
  0x32   : > { %745 = vmatpush2.bf16.msra.mxu0 %v1888_v39  ;;  %788 = vmatpush2.bf16.msra.mxu1 %v1889_v40  ;;  %v1988_v39 = vld [vmem:[%s2590_s5 + $0x1a4] ss:$8 sps:$4 sm:$0xff]   ;;  %v1983_v40 = vld [vmem:[%s2590_s5 + $0xa0] ss:$8 sps:$4 sm:$0xff]  }
  0x33   : > { %746 = vmatprep.subr.bf16.mxu0 %v1890_v41  ;;  %789 = vmatprep.subr.bf16.mxu1 %v1892_v42  ;;  %v1986_v41 = vld [vmem:[%s2590_s5 + $0x1a0] ss:$8 sps:$4 sm:$0xff]   ;;  %v1991_v42 = vld [vmem:[%s2590_s5 + $0x94] ss:$8 sps:$4 sm:$0xff]  }
  0x36   : > { %747 = vmatpush2.bf16.msra.mxu0 %v1894_v43  ;;  %790 = vmatpush2.bf16.msra.mxu1 %v1895_v44  ;;  %v1994_v43 = vld [vmem:[%s2590_s5 + $0x194] ss:$8 sps:$4 sm:$0xff]   ;;  %v1989_v44 = vld [vmem:[%s2590_s5 + $0x90] ss:$8 sps:$4 sm:$0xff]  }
  0x37   : > { %748 = vmatprep.subr.bf16.mxu0 %v1896_v45  ;;  %791 = vmatprep.subr.bf16.mxu1 %v1898_v46  ;;  %v1992_v45 = vld [vmem:[%s2590_s5 + $0x190] ss:$8 sps:$4 sm:$0xff]   ;;  %v1995_v46 = vld [vmem:[%s2590_s5 + $0x80] ss:$8 sps:$4 sm:$0xff]  }
  0x3a   : > { %749 = vmatpush2.bf16.msra.mxu0 %v1900_v47  ;;  %792 = vmatpush2.bf16.msra.mxu1 %v1901_v48  ;;  %v1997_v47 = vld [vmem:[%s2590_s5 + $0x84] ss:$8 sps:$4 sm:$0xff]   ;;  %v1998_v48 = vld [vmem:[%s2590_s5 + $0x180] ss:$8 sps:$4 sm:$0xff]  }
  0x3b   : > { %1268 = vmatprep.subr.bf16.mxu0 %v1907_v49  ;;  %1311 = vmatprep.subr.bf16.mxu1 %v1910_v50  ;;  %v2000_v49 = vld [vmem:[%s2590_s5 + $0x184] ss:$8 sps:$4 sm:$0xff]   ;;  %v1425_v50 = vld [vmem:[%s2593_s8 + $0xf8] sm:$0xff] }
  0x3d   : > { %751 = vmatmul.mubr.bf16.vlgmr.msra.gmra.mxu0 %v1902_v51  ;;  %794 = vmatmul.mubr.bf16.vlgmr.msra.gmra.mxu1 %v1902_v51  ;;  %v445_v51 = vlaneseq }
  0x3e   : > { %1269 = vmatpush1.bf16.msra.mxu0 %v1905_v52  ;;  %1312 = vmatpush1.bf16.msra.mxu1 %v1908_v53 }
  0x3f   : > { %1270 = vmatprep.subr.bf16.mxu0 %v1913_v54  ;;  %1313 = vmatprep.subr.bf16.mxu1 %v1916_v55  ;;  %v446_v52 = vshrl.u32 %v445_v51, 7  ;;  %v443_v55 = vld [vmem:[%s370_s20] sm:$0xf] }
  0x41   : > { %v2452_v53 = vsub.s32 0, %v446_v52  ;;  %v455_v54 = vsub.s32 2, %v446_v52 }
  0x42   : > { %1271 = vmatpush1.bf16.msra.mxu0 %v1911_v56  ;;  %1314 = vmatpush1.bf16.msra.mxu1 %v1914_v57  ;;  %v2454_v56 = vsub.s32 1, %v446_v52  ;;  %v459_v57 = vsub.s32 3, %v446_v52 }
  0x43   : > { %1272 = vmatprep.subr.bf16.mxu0 %v1919_v58  ;;  %1315 = vmatprep.subr.bf16.mxu1 %v1922_v59  ;;  %v448_v58 = vrot.slane %v443_v55, %v2452_v53  ;;  %v804_v59 = vld [vmem:[%s2588_s3] sm:$0xf] }
  0x46   : > { %1273 = vmatpush1.bf16.msra.mxu0 %v1917_v60  ;;  %1316 = vmatpush1.bf16.msra.mxu1 %v1920_v61  ;;  %v456_v60 = vrot.slane %v443_v55, %v455_v54  ;;  %v452_v61 = vrot.slane %v443_v55, %v2454_v56 }
  0x47   : > { %1274 = vmatprep.subr.bf16.mxu0 %v1925_v62  ;;  %1317 = vmatprep.subr.bf16.mxu1 %v1928_v63  ;;  %v460_v62 = vrot.slane %v443_v55, %v459_v57 }
  0x4a   : > { %1275 = vmatpush1.bf16.msra.mxu0 %v1923_v0  ;;  %1318 = vmatpush1.bf16.msra.mxu1 %v1926_v1  ;;  %v809_v0 = vrot.slane %v804_v59, %v2452_v53 }
  0x4b   : > { %1276 = vmatprep.subr.bf16.mxu0 %v1931_v2  ;;  %1319 = vmatprep.subr.bf16.mxu1 %v1934_v3  ;;  %v817_v2 = vrot.slane %v804_v59, %v455_v54 }
  0x4e   : > { %1277 = vmatpush1.bf16.msra.mxu0 %v1929_v4  ;;  %1320 = vmatpush1.bf16.msra.mxu1 %v1932_v5  ;;  %v834_v4 = vld [vmem:[%s2589_s4] sm:$0xf] }
  0x4f   : > { %1278 = vmatprep.subr.bf16.mxu0 %v1937_v6  ;;  %1321 = vmatprep.subr.bf16.mxu1 %v1940_v7  ;;  %v813_v6 = vrot.slane %v804_v59, %v2454_v56  ;;  %v821_v7 = vrot.slane %v804_v59, %v459_v57 }
  0x52   : > { %1279 = vmatpush1.bf16.msra.mxu0 %v1935_v8  ;;  %1322 = vmatpush1.bf16.msra.mxu1 %v1938_v9 }
  0x53   : > { %1280 = vmatprep.subr.bf16.mxu0 %v1943_v10  ;;  %1323 = vmatprep.subr.bf16.mxu1 %v1946_v11  ;;  %v843_v11 = vrot.slane %v834_v4, %v2454_v56 }
  0x56   : > { %1281 = vmatpush1.bf16.msra.mxu0 %v1941_v12  ;;  %1324 = vmatpush1.bf16.msra.mxu1 %v1944_v13  ;;  %v851_v13 = vrot.slane %v834_v4, %v459_v57 }
  0x57   : > { %1282 = vmatprep.subr.bf16.mxu0 %v1949_v14  ;;  %1325 = vmatprep.subr.bf16.mxu1 %v1952_v15  ;;  %v839_v14 = vrot.slane %v834_v4, %v2452_v53  ;;  %v847_v15 = vrot.slane %v834_v4, %v455_v54  ;;  %v1406_v4 = vld [vmem:[%s2593_s8 + $0x60] sm:$0xff] }
  0x5a   : > { %1283 = vmatpush1.bf16.msra.mxu0 %v1947_v16  ;;  %1326 = vmatpush1.bf16.msra.mxu1 %v1950_v17 }
  0x5b   : > { %1284 = vmatprep.subr.bf16.mxu0 %v1955_v18  ;;  %1327 = vmatprep.subr.bf16.mxu1 %v1958_v19 }
  0x5e   : > { %1285 = vmatpush2.bf16.msra.mxu0 %v1953_v20  ;;  %1328 = vmatpush2.bf16.msra.mxu1 %v1956_v21 }
  0x5f   : > { %1286 = vmatprep.subr.bf16.mxu0 %v1961_v22  ;;  %1329 = vmatprep.subr.bf16.mxu1 %v1964_v23 }
  0x62   : > { %1287 = vmatpush2.bf16.msra.mxu0 %v1959_v24  ;;  %1330 = vmatpush2.bf16.msra.mxu1 %v1962_v25 }
  0x63   : > { %1288 = vmatprep.subr.bf16.mxu0 %v1967_v26  ;;  %1331 = vmatprep.subr.bf16.mxu1 %v1970_v27 }
  0x66   : > { %1289 = vmatpush2.bf16.msra.mxu0 %v1965_v28  ;;  %1332 = vmatpush2.bf16.msra.mxu1 %v1968_v29 }
  0x67   : > { %1290 = vmatprep.subr.bf16.mxu0 %v1973_v30  ;;  %1333 = vmatprep.subr.bf16.mxu1 %v1976_v31 }
  0x6a   : > { %1291 = vmatpush2.bf16.msra.mxu0 %v1971_v32  ;;  %1334 = vmatpush2.bf16.msra.mxu1 %v1974_v33 }
  0x6b   : > { %1292 = vmatprep.subr.bf16.mxu0 %v1979_v34  ;;  %1335 = vmatprep.subr.bf16.mxu1 %v1982_v35 }
  0x6e   : > { %1293 = vmatpush2.bf16.msra.mxu0 %v1977_v36  ;;  %1336 = vmatpush2.bf16.msra.mxu1 %v1980_v37 }
  0x6f   : > { %1294 = vmatprep.subr.bf16.mxu0 %v1985_v38  ;;  %1337 = vmatprep.subr.bf16.mxu1 %v1988_v39 }
  0x72   : > { %1295 = vmatpush2.bf16.msra.mxu0 %v1983_v40  ;;  %1338 = vmatpush2.bf16.msra.mxu1 %v1986_v41 }
  0x73   : > { %1296 = vmatprep.subr.bf16.mxu0 %v1991_v42  ;;  %1339 = vmatprep.subr.bf16.mxu1 %v1994_v43 }
  0x76   : > { %1297 = vmatpush2.bf16.msra.mxu0 %v1989_v44  ;;  %1340 = vmatpush2.bf16.msra.mxu1 %v1992_v45 }
  0x77   : > { %1298 = vmatprep.subr.bf16.mxu0 %v1997_v47  ;;  %1341 = vmatprep.subr.bf16.mxu1 %v2000_v49 }
  0x7a   : > { %1299 = vmatpush2.bf16.msra.mxu0 %v1995_v46  ;;  %1342 = vmatpush2.bf16.msra.mxu1 %v1998_v48 }
  0x7b   : > { %1736 = vmatprep.subr.mxu0 %v1425_v50  ;;  %1774 = vmatprep.subr.mxu1 %v1425_v50 }
  0xfd   : > { %v752_v63 = vpop.f32.mrf.mxu0  ;;  %v795_v1 = vpop.f32.mrf.mxu1 }
  0xfe   : > { %v753_v3 = vadd.f32 %v752_v63, %v448_v58  ;;  %v796_v5 = vadd.f32 %v795_v1, %v456_v60  ;;  %v1424_v63 = vld [vmem:[%s2593_s8 + $0xf0] sm:$0xff]  ;;  %v1423_v1 = vld [vmem:[%s2593_s8 + $0xe8] sm:$0xff] }
  0xff   : > { %v754_v8 = vpop.f32.mrf.mxu0  ;;  %v797_v9 = vpop.f32.mrf.mxu1 }
 0x100   : > { %v755_v10 = vadd.f32 %v754_v8, %v452_v61  ;;  %v798_v12 = vadd.f32 %v797_v9, %v460_v62  ;;  %v826_v18 = vmul.f32 %v809_v0, %v753_v3  ;;  %v828_v19 = vmul.f32 %v817_v2, %v796_v5  ;;  %v1422_v3 = vld [vmem:[%s2593_s8 + $0xe0] sm:$0xff]  ;;  %v1421_v5 = vld [vmem:[%s2593_s8 + $0xd8] sm:$0xff]  ;;  %v1404_v8 = vld [vmem:[%s2593_s8 + $0x50] sm:$0xff] }
 0x101   : > { %v756_v16 = vpop.f32.mrf.mxu0  ;;  %v799_v17 = vpop.f32.mrf.mxu1  ;;  %v1419_v9 = vld [vmem:[%s2593_s8 + $0xc8] sm:$0xff] }
 0x102   : > { %v827_v20 = vmul.f32 %v813_v6, %v755_v10  ;;  %v829_v21 = vmul.f32 %v821_v7, %v798_v12  ;;  %v757_v22 = vadd.f32 %v756_v16, %v448_v58  ;;  %v800_v23 = vadd.f32 %v799_v17, %v456_v60  ;;  %v1403_v10 = vld [vmem:[%s2593_s8 + $0x48] sm:$0xff]  ;;  %v1402_v12 = vld [vmem:[%s2593_s8 + $0x40] sm:$0xff]  ;;  %v1400_v16 = vld [vmem:[%s2593_s8 + $0x30] sm:$0xff] }
 0x103   : > { %v758_v24 = vpop.f32.mrf.mxu0  ;;  %v801_v25 = vpop.f32.mrf.mxu1  ;;  %v856_v32 = vadd.f32 %v839_v14, %v826_v18  ;;  %v858_v33 = vadd.f32 %v847_v15, %v828_v19  ;;  %v1415_v17 = vld [vmem:[%s2593_s8 + $0xa8] sm:$0xff]  ;;  %v1414_v19 = vld [vmem:[%s2593_s8 + $0xa0] sm:$0xff] }
 0x104   : > { %v857_v26 = vadd.f32 %v843_v11, %v827_v20  ;;  %v859_v27 = vadd.f32 %v851_v13, %v829_v21  ;;  %v830_v28 = vmul.f32 %v809_v0, %v757_v22  ;;  %v832_v29 = vmul.f32 %v817_v2, %v800_v23  ;;  %v1408_v0 = vld [vmem:[%s2593_s8 + $0x70] sm:$0xff]  ;;  %v1407_v2 = vld [vmem:[%s2593_s8 + $0x68] sm:$0xff]  ;;  %v1398_v20 = vld [vmem:[%s2593_s8 + $0x20] sm:$0xff] }
 0x105   : > { %v759_v30 = vadd.f32 %v758_v24, %v452_v61  ;;  %v802_v31 = vadd.f32 %v801_v25, %v460_v62  ;;  %v864_v44 = vmul.f32 0.2, %v856_v32  ;;  %v866_v45 = vmul.f32 0.2, %v858_v33  ;;  %v1409_v62 = vld [vmem:[%s2593_s8 + $0x78] sm:$0xff]  ;;  %v1399_v18 = vld [vmem:[%s2593_s8 + $0x28] sm:$0xff] }
 0x106   : > { %v860_v34 = vadd.f32 %v839_v14, %v830_v28  ;;  %v862_v35 = vadd.f32 %v847_v15, %v832_v29  ;;  %v865_v38 = vmul.f32 0.2, %v857_v26  ;;  %v867_v39 = vmul.f32 0.2, %v859_v27  ;;  %v1401_v14 = vld [vmem:[%s2593_s8 + $0x38] sm:$0xff]  ;;  %v1416_v15 = vld [vmem:[%s2593_s8 + $0xb0] sm:$0xff] }
 0x107   : > { %v831_v36 = vmul.f32 %v813_v6, %v759_v30  ;;  %v833_v37 = vmul.f32 %v821_v7, %v802_v31  ;;  %v872_v55 = vmax.f32 %v856_v32, %v864_v44  ;;  %v874_v57 = vmax.f32 %v858_v33, %v866_v45  ;;  %v1405_v6 = vld [vmem:[%s2593_s8 + $0x58] sm:$0xff]  ;;  %v1420_v7 = vld [vmem:[%s2593_s8 + $0xd0] sm:$0xff]  ;;  %v1411_v25 = vld [vmem:[%s2593_s8 + $0x88] sm:$0xff] }
 0x108   : > { %v868_v40 = vmul.f32 0.2, %v860_v34  ;;  %v870_v41 = vmul.f32 0.2, %v862_v35  ;;  %v873_v50 = vmax.f32 %v857_v26, %v865_v38  ;;  %v875_v52 = vmax.f32 %v859_v27, %v867_v39  ;;  %v1413_v21 = vld [vmem:[%s2593_s8 + $0x98] sm:$0xff]  ;;  %v1412_v23 = vld [vmem:[%s2593_s8 + $0x90] sm:$0xff] }
 0x109   : > { %v861_v42 = vadd.f32 %v843_v11, %v831_v36  ;;  %v863_v43 = vadd.f32 %v851_v13, %v833_v37  ;;  %v1418_v11 = vld [vmem:[%s2593_s8 + $0xc0] sm:$0xff]  ;;  %v1417_v13 = vld [vmem:[%s2593_s8 + $0xb8] sm:$0xff]  ;;  %v1396_v24 = vld [vmem:[%s2593_s8 + $0x10] sm:$0xff] }
 0x10a   : > { %v876_v48 = vmax.f32 %v860_v34, %v868_v40  ;;  %v878_v49 = vmax.f32 %v862_v35, %v870_v41  ;;  %v1397_v22 = vld [vmem:[%s2593_s8 + $0x18] sm:$0xff]  ;;  %v1395_v26 = vld [vmem:[%s2593_s8 + $0x8] sm:$0xff]  ;;  %v1410_v27 = vld [vmem:[%s2593_s8 + $0x80] sm:$0xff] }
 0x10b   : > { %v869_v46 = vmul.f32 0.2, %v861_v42  ;;  %v871_v47 = vmul.f32 0.2, %v863_v43  ;;  %v1394_v28 = vld [vmem:[%s2593_s8] sm:$0xff] }
 0x10c   : > { %v880_v60 = vpack.c.bf16 %v876_v48, %v872_v55  ;;  %v882_v61 = vpack.c.bf16 %v878_v49, %v874_v57  ;;  %v1354_v29 = vld [vmem:[%s2591_s6] sm:$0x3] }
 0x10d   : > { %v877_v51 = vmax.f32 %v861_v42, %v869_v46  ;;  %v879_v54 = vmax.f32 %v863_v43, %v871_v47  ;;  %v1370_v30 = vld [vmem:[%s2592_s7] sm:$0x3]  ;;  %v1359_v31 = vrot.slane %v1354_v29, %v2452_v53  ;;  %v1363_v36 = vrot.slane %v1354_v29, %v2454_v56 }
 0x10e   : > { %v1375_v35 = vrot.slane %v1370_v30, %v2452_v53  ;;  %v1379_v41 = vrot.slane %v1370_v30, %v2454_v56 }
 0x10f   : > { %v881_v58 = vpack.c.bf16 %v877_v51, %v873_v50  ;;  %v883_v59 = vpack.c.bf16 %v879_v54, %v875_v52 }
 0x111   : > { %1300 = vmatprep.mubr.bf16.mxu0 %v881_v58  ;;  %1343 = vmatprep.mubr.bf16.mxu1 %v883_v59 }
 0x112   : > { %1301 = vmatmul.mubr.bf16.vlgmr.msra.gmra.mxu0 %v880_v60  ;;  %1344 = vmatmul.mubr.bf16.vlgmr.msra.gmra.mxu1 %v882_v61 }
 0x113   : > { %1737 = vmatpush3.msra.mxu0 %v1409_v62  ;;  %1790 = vmatpush3.msra.mxu1 %v1409_v62 }
 0x114   : > { %1738 = vmatprep.subr.mxu0 %v1424_v63  ;;  %1775 = vmatprep.subr.mxu1 %v1424_v63 }
 0x115   : > { %1739 = vmatpush3.msra.mxu0 %v1408_v0  ;;  %1791 = vmatpush3.msra.mxu1 %v1408_v0 }
 0x116   : > { %1740 = vmatprep.subr.mxu0 %v1423_v1  ;;  %1776 = vmatprep.subr.mxu1 %v1423_v1 }
 0x117   : > { %1741 = vmatpush3.msra.mxu0 %v1407_v2  ;;  %1792 = vmatpush3.msra.mxu1 %v1407_v2 }
 0x118   : > { %1742 = vmatprep.subr.mxu0 %v1422_v3  ;;  %1777 = vmatprep.subr.mxu1 %v1422_v3 }
 0x119   : > { %1743 = vmatpush3.msra.mxu0 %v1406_v4  ;;  %1793 = vmatpush3.msra.mxu1 %v1406_v4 }
 0x11a   : > { %1744 = vmatprep.subr.mxu0 %v1421_v5  ;;  %1778 = vmatprep.subr.mxu1 %v1421_v5 }
 0x11b   : > { %1745 = vmatpush3.msra.mxu0 %v1405_v6  ;;  %1794 = vmatpush3.msra.mxu1 %v1405_v6 }
 0x11c   : > { %1746 = vmatprep.subr.mxu0 %v1420_v7  ;;  %1779 = vmatprep.subr.mxu1 %v1420_v7 }
 0x11d   : > { %1747 = vmatpush3.msra.mxu0 %v1404_v8  ;;  %1795 = vmatpush3.msra.mxu1 %v1404_v8 }
 0x11e   : > { %1748 = vmatprep.subr.mxu0 %v1419_v9  ;;  %1780 = vmatprep.subr.mxu1 %v1419_v9 }
 0x11f   : > { %1749 = vmatpush3.msra.mxu0 %v1403_v10  ;;  %1796 = vmatpush3.msra.mxu1 %v1403_v10 }
 0x120   : > { %1750 = vmatprep.subr.mxu0 %v1418_v11  ;;  %1781 = vmatprep.subr.mxu1 %v1418_v11 }
 0x121   : > { %1751 = vmatpush3.msra.mxu0 %v1402_v12  ;;  %1797 = vmatpush3.msra.mxu1 %v1402_v12 }
 0x122   : > { %1752 = vmatprep.subr.mxu0 %v1417_v13  ;;  %1782 = vmatprep.subr.mxu1 %v1417_v13 }
 0x123   : > { %1753 = vmatpush3.msra.mxu0 %v1401_v14  ;;  %1798 = vmatpush3.msra.mxu1 %v1401_v14 }
 0x124   : > { %1754 = vmatprep.subr.mxu0 %v1416_v15  ;;  %1783 = vmatprep.subr.mxu1 %v1416_v15 }
 0x125   : > { %1755 = vmatpush3.msra.mxu0 %v1400_v16  ;;  %1799 = vmatpush3.msra.mxu1 %v1400_v16 }
 0x126   : > { %1756 = vmatprep.subr.mxu0 %v1415_v17  ;;  %1784 = vmatprep.subr.mxu1 %v1415_v17 }
 0x127   : > { %1757 = vmatpush3.msra.mxu0 %v1399_v18  ;;  %1800 = vmatpush3.msra.mxu1 %v1399_v18 }
 0x128   : > { %1758 = vmatprep.subr.mxu0 %v1414_v19  ;;  %1785 = vmatprep.subr.mxu1 %v1414_v19 }
 0x129   : > { %1759 = vmatpush3.msra.mxu0 %v1398_v20  ;;  %1801 = vmatpush3.msra.mxu1 %v1398_v20 }
 0x12a   : > { %1760 = vmatprep.subr.mxu0 %v1413_v21  ;;  %1786 = vmatprep.subr.mxu1 %v1413_v21 }
 0x12b   : > { %1761 = vmatpush3.msra.mxu0 %v1397_v22  ;;  %1802 = vmatpush3.msra.mxu1 %v1397_v22 }
 0x12c   : > { %1762 = vmatprep.subr.mxu0 %v1412_v23  ;;  %1787 = vmatprep.subr.mxu1 %v1412_v23 }
 0x12d   : > { %1763 = vmatpush3.msra.mxu0 %v1396_v24  ;;  %1803 = vmatpush3.msra.mxu1 %v1396_v24 }
 0x12e   : > { %1764 = vmatprep.subr.mxu0 %v1411_v25  ;;  %1788 = vmatprep.subr.mxu1 %v1411_v25 }
 0x12f   : > { %1765 = vmatpush3.msra.mxu0 %v1395_v26  ;;  %1804 = vmatpush3.msra.mxu1 %v1395_v26 }
 0x130   : > { %1766 = vmatprep.subr.mxu0 %v1410_v27  ;;  %1789 = vmatprep.subr.mxu1 %v1410_v27 }
 0x131   : > { %1767 = vmatpush3.msra.mxu0 %v1394_v28  ;;  %1805 = vmatpush3.msra.mxu1 %v1394_v28 }
 0x1d2   : > { %v1302_v32 = vpop.f32.mrf.mxu0  ;;  %v1345_v33 = vpop.f32.mrf.mxu1 }
 0x1d3   : > { %v1346_v34 = vadd.f32 %v1345_v33, %v1302_v32 }
 0x1d4   : > { %v1304_v37 = vpop.f32.mrf.mxu0  ;;  %v1347_v38 = vpop.f32.mrf.mxu1 }
 0x1d5   : > { %v1366_v39 = vmul.f32 %v1359_v31, %v1346_v34  ;;  %v1348_v40 = vadd.f32 %v1347_v38, %v1304_v37 }
 0x1d6   : > { %v1306_v42 = vpop.f32.mrf.mxu0  ;;  %v1349_v43 = vpop.f32.mrf.mxu1 }
 0x1d7   : > { %v1382_v44 = vadd.f32 %v1375_v35, %v1366_v39  ;;  %v1367_v45 = vmul.f32 %v1363_v36, %v1348_v40  ;;  %v1350_v46 = vadd.f32 %v1349_v43, %v1306_v42 }
 0x1d8   : > { %v1308_v47 = vpop.f32.mrf.mxu0  ;;  %v1351_v48 = vpop.f32.mrf.mxu1 }
 0x1d9   : > { %v1383_v49 = vadd.f32 %v1379_v41, %v1367_v45  ;;  %v1368_v50 = vmul.f32 %v1359_v31, %v1350_v46  ;;  %v1352_v51 = vadd.f32 %v1351_v48, %v1308_v47  ;;  %v1386_v52 = vmul.f32 0.2, %v1382_v44 }
 0x1db   : > { %v1384_v53 = vadd.f32 %v1375_v35, %v1368_v50  ;;  %v1369_v54 = vmul.f32 %v1363_v36, %v1352_v51  ;;  %v1387_v55 = vmul.f32 0.2, %v1383_v49  ;;  %v1390_v59 = vmax.f32 %v1382_v44, %v1386_v52 }
 0x1dd   : > { %v1385_v57 = vadd.f32 %v1379_v41, %v1369_v54  ;;  %v1391_v58 = vmax.f32 %v1383_v49, %v1387_v55  ;;  %v1388_v60 = vmul.f32 0.2, %v1384_v53 }
 0x1df   : > { %1490 = vmatprep.mubr.f32.mxu0 %v1391_v58  ;;  %v1389_v56 = vmul.f32 0.2, %v1385_v57  ;;  %v1392_v62 = vmax.f32 %v1384_v53, %v1388_v60 }
 0x1e0   : > { %1491 = vmatmul.mubr.f32.vlgmr.msra.gmra.mxu0 %v1390_v59 }
 0x1e1   : > { %v1393_v61 = vmax.f32 %v1385_v57, %v1389_v56 }
 0x1e3   : > { %1495 = vmatprep.mubr.f32.mxu1 %v1393_v61 }
 0x1e4   : > { %1496 = vmatmul.mubr.f32.vlgmr.msra.gmra.mxu1 %v1392_v62 }
 0x2a0   : > { %v1768_v63 = vpop.f32.mrf.mxu0 }
 0x2a2   : > { %v1769_v0 = vpop.f32.mrf.mxu0 }
 0x2a3   : > { %v1770_v1 = vadd.f32 %v1769_v0, %v1768_v63 }
 0x2a4   : > { %v1771_v2 = vpop.f32.mrf.mxu1 }
 0x2a5   : > { %1502 = vst.msk [vmem:[%s390_s29] sm:$0xff] %vm1501_vm1, %v1770_v1 }
 0x2a6   : > { %v1772_v3 = vpop.f32.mrf.mxu1 }
 0x2a7   : > { %v1773_v4 = vadd.f32 %v1772_v3, %v1771_v2 }
 0x2a9   : > { %1503 = vst.msk [vmem:[%s390_s29 + $0x8] sm:$0xff] %vm1501_vm1, %v1773_v4 }
 0x2aa PF: > { %s19_s11 = sadd.s32 1, %s2023_s11   ;;  %s2595_s30 = smov %s2019_s10 }
 0x2ab   : > { %p16_p5 = scmp.ge.s32.totalorder %s19_s11, 4   ;;  %s2596_s10 = smov %s2598_s12 }
 0x2ad   :  { %18 = sbr.rel (!%p16_p5) target bundleno = 2 (0x2), region = 89 }

</bundles_post_ra>
